<compile_context>
chip_gen: v5e
topology: v5e:2x2
jax: 0.10.0
libtpu: 0.0.40
codegen_flags: <defaults>
</compile_context>

<pallas_src>
import jax
import jax.numpy as jnp
from jax.experimental import pallas as pl
from jax.experimental.pallas import tpu as pltpu

BN_EPS = 1e-5
HIDDEN = 64  # LSTM hidden size


# ----------------------------------------------------------------------------
# Fused kernel: conv1->relu->bn1->pool1 -> conv2->relu->bn2->pool2 ->
#               BiLSTM(last step only) -> fc1->relu->fc2->relu->fc3
# ----------------------------------------------------------------------------
def _fused_forward_kernel(
    x4_ref,      # (TB, S, 4) batch tile: x[b, 4*s + j]
    pc1_ref,     # (8, 64): rows 0-2 conv1 taps, 3 conv1 bias, 4/5 BN1 scale/shift
    w2_ref,      # (192, 128): three conv2 taps stacked along the contraction dim
    pc2_ref,     # (8, 128): row 0 conv2 bias, rows 1/2 BN2 scale/shift
    wih_ref,     # (128, 512): [W_ih_fwd | W_ih_bwd], gate order (i, f, o, g)
    whh_ref,     # (64, 256): forward W_hh, gate order (i, f, o, g)
    bias_ref,    # (8, 512): row0 [b_fwd|b_bwd]; row1[:64] fc1; row2[:32] fc2; row3[:2] fc3
    wfc1_ref,    # (2, 64, 64): [0] multiplies h_fwd, [1] h_bwd (concat folded)
    wfc23_ref,   # (96, 32): rows 0:64 fc2 W^T, rows 64:96 fc3 W^T (lanes 0:2)
    o_ref,       # (TB, 2) logits
    y1e_ref, y1o_ref, patch_ref, gates_ref,    # VMEM scratch
):
    TB, S, _ = x4_ref.shape
    Tp = gates_ref.shape[1]          # padded timestep count (multiple of 8)
    T = S - 2                        # valid BiLSTM timesteps
    H = whh_ref.shape[0]
    NB = TB * Tp                     # rows per pooling branch in the patch buffer

    def dot(a, w):
        return jnp.dot(a, w, preferred_element_type=jnp.float32)

    # -------- conv1 + ReLU + BN1 + MaxPool1d(2): whole batch tile on the VPU --------
    w10, w11, w12 = pc1_ref[0:1, :], pc1_ref[1:2, :], pc1_ref[2:3, :]
    b1, sc1, sh1 = pc1_ref[3:4, :], pc1_ref[4:5, :], pc1_ref[5:6, :]

    def act1(z):     # conv bias -> ReLU -> BatchNorm(eval)
        return jnp.maximum(z + b1, 0.0) * sc1 + sh1

    c0 = x4_ref[:, :, 0:1]
    c1 = x4_ref[:, :, 1:2]
    c2 = x4_ref[:, :, 2:3]
    c3 = x4_ref[:, :, 3:4]                       # (TB, S, 1)
    m2 = x4_ref[:, 0:S - 1, 2:3]
    m3 = x4_ref[:, 0:S - 1, 3:4]
    n0 = x4_ref[:, 1:S, 0:1]
    n1 = x4_ref[:, 1:S, 1:2]                     # (TB, S-1, 1)

    # pooled conv1 output: even rows y1[2u] and odd rows y1[2u+1]
    y1e_ref[...] = jnp.maximum(act1(c0 * w10 + c1 * w11 + c2 * w12),
                               act1(c1 * w10 + c2 * w11 + c3 * w12))          # (TB,S,64)
    y1o_ref[:, 0:S - 1, :] = jnp.maximum(act1(m2 * w10 + m3 * w11 + n0 * w12),
                                         act1(m3 * w10 + n0 * w11 + n1 * w12))
    y1o_ref[:, S - 1:S, :] = jnp.zeros((TB, 1, 64), jnp.float32)              # pad row

    # -------- conv2 + ReLU + BN2 + MaxPool1d(2): single K=192 patch matmul --------
    # Patch rows laid out [branch, b, t]; rows with t >= T are zero padding whose
    # results are never consumed downstream.
    patch_ref[...] = jnp.zeros_like(patch_ref)
    R0 = min(Tp, S)
    for b in range(TB):                       # pure VMEM copies (no per-b matmuls)
        eb = b * Tp                           # even-branch rows for this element
        ob = NB + b * Tp                      # odd-branch rows
        ye = y1e_ref[b]                       # (S, 64)
        yo = y1o_ref[b]
        # even branch t: conv2 input rows y1[2t], y1[2t+1], y1[2t+2]
        patch_ref[eb:eb + R0, 0:64] = ye[0:R0]
        patch_ref[eb:eb + R0, 64:128] = yo[0:R0]
        patch_ref[eb:eb + T, 128:192] = ye[1:T + 1]
        # odd branch t: rows y1[2t+1], y1[2t+2], y1[2t+3]
        patch_ref[ob:ob + R0, 0:64] = yo[0:R0]
        patch_ref[ob:ob + T, 64:128] = ye[1:T + 1]
        patch_ref[ob:ob + T, 128:192] = yo[1:T + 1]

    b2, sc2, sh2 = pc2_ref[0:1, :], pc2_ref[1:2, :], pc2_ref[2:3, :]
    q = jnp.maximum(dot(patch_ref[...], w2_ref[...]) + b2, 0.0) * sc2 + sh2   # (2*NB,128)
    y2 = jnp.maximum(q[0:NB, :], q[NB:2 * NB, :])                             # (NB, 128)

    # -------- hoisted LSTM input projections (fwd + bwd gates in ONE matmul) --------
    gates = dot(y2, wih_ref[...]) + bias_ref[0:1, :]                          # (NB, 8H)
    for b in range(TB):
        gates_ref[b] = gates[b * Tp:(b + 1) * Tp, :]

    # -------- BiLSTM, last timestep only --------
    def lstm_cell(g, c_prev):        # gate columns ordered (i, f, o, g)
        s = jax.nn.sigmoid(g[:, 0:3 * H])
        i, f, o = s[:, 0:H], s[:, H:2 * H], s[:, 2 * H:3 * H]
        u = jnp.tanh(g[:, 3 * H:4 * H])
        c_new = f * c_prev + i * u
        return o * jnp.tanh(c_new), c_new

    # TODO(synk): optionally hold W_hh resident in the MXU across the unrolled
    # recurrence via pltpu.matmul_push_rhs/matmul_acc_lhs/matmul_pop.
    whh = whh_ref[...]
    h = jnp.zeros((TB, H), jnp.float32)
    c = jnp.zeros((TB, H), jnp.float32)
    for t in range(T):               # fully unrolled; only h @ W_hh is serial
        g = gates_ref[:, t, 0:4 * H] + dot(h, whh)
        h, c = lstm_cell(g, c)

    # lstm_out[:, -1, H:] is the backward hidden after ONE step on x[T-1] from a
    # zero state: W_hh_rev contributes exactly zero, but its bias is folded into
    # bias_ref row 0 (columns 4H:8H).
    h_bwd, _ = lstm_cell(gates_ref[:, T - 1, 4 * H:8 * H],
                         jnp.zeros((TB, H), jnp.float32))

    # -------- fc1 + ReLU + fc2 + ReLU + fc3 (concat folded into split fc1) --------
    z = dot(h, wfc1_ref[0]) + dot(h_bwd, wfc1_ref[1]) + bias_ref[1:2, 0:64]
    z = jnp.maximum(z, 0.0)
    z = jnp.maximum(dot(z, wfc23_ref[0:64, :]) + bias_ref[2:3, 0:32], 0.0)
    o_ref[...] = dot(z, wfc23_ref[64:96, 0:2]) + bias_ref[3:4, 0:2]


# ----------------------------------------------------------------------------
# Parameters in PyTorch layout (deterministic synthetic init)
# ----------------------------------------------------------------------------
def init_params(key):
    ks = jax.random.split(key, 25)
    n = lambda k, s, sc=0.1: jax.random.normal(k, s, jnp.float32) * sc
    p = {}
    p["conv1_w"] = n(ks[0], (64, 1, 3));    p["conv1_b"] = n(ks[1], (64,))
    p["bn1_gamma"] = 1.0 + n(ks[2], (64,)); p["bn1_beta"] = n(ks[3], (64,))
    p["bn1_mean"] = n(ks[4], (64,));        p["bn1_var"] = 1.0 + jnp.abs(n(ks[5], (64,)))
    p["conv2_w"] = n(ks[6], (128, 64, 3));  p["conv2_b"] = n(ks[7], (128,))
    p["bn2_gamma"] = 1.0 + n(ks[8], (128,)); p["bn2_beta"] = n(ks[9], (128,))
    p["bn2_mean"] = n(ks[10], (128,));      p["bn2_var"] = 1.0 + jnp.abs(n(ks[11], (128,)))
    # LSTM in PyTorch layout: (4H, in), gate order (i, f, g, o).
    p["lstm_w_ih"] = n(ks[12], (4 * HIDDEN, 128))
    p["lstm_w_hh"] = n(ks[13], (4 * HIDDEN, HIDDEN))
    p["lstm_b_ih"] = n(ks[14], (4 * HIDDEN,))
    p["lstm_b_hh"] = n(ks[15], (4 * HIDDEN,))
    # Reverse direction: W_hh_rev exists in the module but contributes exactly
    # zero to lstm_out[:, -1, H:] (backward initial state is zero), so it is
    # never materialized; both reverse biases still contribute and are kept.
    p["lstm_w_ih_rev"] = n(ks[16], (4 * HIDDEN, 128))
    p["lstm_b_ih_rev"] = n(ks[17], (4 * HIDDEN,))
    p["lstm_b_hh_rev"] = n(ks[18], (4 * HIDDEN,))
    p["fc1_w"] = n(ks[19], (64, 128));      p["fc1_b"] = n(ks[20], (64,))
    p["fc2_w"] = n(ks[21], (32, 64));       p["fc2_b"] = n(ks[22], (32,))
    p["fc3_w"] = n(ks[23], (2, 32));        p["fc3_b"] = n(ks[24], (2,))
    return p


# ----------------------------------------------------------------------------
# One-time packing: BN folding, conv2 tap stacking, LSTM gate reorder/bias fold,
# fc1 split, and small-operand consolidation (20 operands -> 9).
# ----------------------------------------------------------------------------
def pack_params(p):
    H = HIDDEN
    f32 = jnp.float32
    sc1 = p["bn1_gamma"] / jnp.sqrt(p["bn1_var"] + BN_EPS)
    sh1 = p["bn1_beta"] - p["bn1_mean"] * sc1
    sc2 = p["bn2_gamma"] / jnp.sqrt(p["bn2_var"] + BN_EPS)
    sh2 = p["bn2_beta"] - p["bn2_mean"] * sc2

    w1 = p["conv1_w"]                                    # (64, 1, 3)
    pc1 = jnp.zeros((8, 64), f32)
    pc1 = pc1.at[0].set(w1[:, 0, 0]).at[1].set(w1[:, 0, 1]).at[2].set(w1[:, 0, 2])
    pc1 = pc1.at[3].set(p["conv1_b"]).at[4].set(sc1).at[5].set(sh1)

    w2 = p["conv2_w"]                                    # (128, 64, 3)
    w2cat = jnp.concatenate([w2[:, :, 0].T, w2[:, :, 1].T, w2[:, :, 2].T], axis=0)
    pc2 = jnp.zeros((8, 128), f32)
    pc2 = pc2.at[0].set(p["conv2_b"]).at[1].set(sc2).at[2].set(sh2)

    # Gate reorder (i, f, g, o) -> (i, f, o, g); transpose to (in, 4H); fold biases.
    perm = jnp.concatenate([jnp.arange(2 * H), jnp.arange(3 * H, 4 * H),
                            jnp.arange(2 * H, 3 * H)])
    wih_f = p["lstm_w_ih"][perm].T                       # (128, 4H)
    whh_f = p["lstm_w_hh"][perm].T                       # (H, 4H)
    b_f = (p["lstm_b_ih"] + p["lstm_b_hh"])[perm]
    wih_b = p["lstm_w_ih_rev"][perm].T
    b_b = (p["lstm_b_ih_rev"] + p["lstm_b_hh_rev"])[perm]
    wih_cat = jnp.concatenate([wih_f, wih_b], axis=1)    # (128, 8H)

    w_fc1t = p["fc1_w"].T                                # (128, 64)
    wfc1 = jnp.stack([w_fc1t[0:64], w_fc1t[64:128]], axis=0)        # (2, 64, 64)
    wfc3_pad = jnp.zeros((32, 32), f32).at[:, 0:2].set(p["fc3_w"].T)
    wfc23 = jnp.concatenate([p["fc2_w"].T, wfc3_pad], axis=0)       # (96, 32)

    bias = jnp.zeros((8, 8 * H), f32)
    bias = bias.at[0].set(jnp.concatenate([b_f, b_b]))
    bias = bias.at[1, 0:64].set(p["fc1_b"])
    bias = bias.at[2, 0:32].set(p["fc2_b"])
    bias = bias.at[3, 0:2].set(p["fc3_b"])

    return dict(pc1=pc1, w2cat=w2cat, pc2=pc2, wih_cat=wih_cat, whh_f=whh_f,
                bias=bias, wfc1=wfc1, wfc23=wfc23)


# ----------------------------------------------------------------------------
# Full forward pass (single pallas_call, gridded over batch tiles)
# ----------------------------------------------------------------------------
def stress_cnn_bilstm_forward(x, pk, *, batch_tile=8):
    # x: (B, 1, L) -- same NCL layout as the PyTorch module input.
    B, cin, L = x.shape
    assert cin == 1 and L % 4 == 0 and L >= 12
    S = L // 4
    T = S - 2                               # timesteps reaching the BiLSTM
    Tp = ((T + 7) // 8) * 8                 # pad to a sublane multiple
    TB = min(batch_tile, B)                 # batch tile per grid step
    nb = pl.cdiv(B, TB)
    Bp = nb * TB

    x4 = x.reshape(B, S, 4).astype(jnp.float32)
    if Bp != B:
        x4 = jnp.concatenate([x4, jnp.zeros((Bp - B, S, 4), jnp.float32)], axis=0)

    def wspec(shape):                       # weights: resident, constant block 0
        zero = (0,) * len(shape)
        return pl.BlockSpec(shape, lambda i, z=zero: z)

    in_specs = [
        pl.BlockSpec((TB, S, 4), lambda i: (i, 0, 0)),
        wspec((8, 64)),
        wspec((192, 128)),
        wspec((8, 128)),
        wspec((128, 8 * HIDDEN)),
        wspec((HIDDEN, 4 * HIDDEN)),
        wspec((8, 8 * HIDDEN)),
        wspec((2, 64, 64)),
        wspec((96, 32)),
    ]

    # Per-grid-step VMEM (weights + scratch) is well under 1 MiB at these sizes,
    # far below v7x's 64 MiB per TensorCore; for much larger B/L, shrink TB and
    # set pltpu.CompilerParams(vmem_limit_bytes=...) so double-buffered tiles fit.
    out = pl.pallas_call(
        _fused_forward_kernel,
        out_shape=jax.ShapeDtypeStruct((Bp, 2), jnp.float32),
        grid=(nb,),
        in_specs=in_specs,
        out_specs=pl.BlockSpec((TB, 2), lambda i: (i, 0)),
        scratch_shapes=[
            pltpu.VMEM((TB, S, 64), jnp.float32),               # pooled conv1 even rows
            pltpu.VMEM((TB, S, 64), jnp.float32),               # pooled conv1 odd rows
            pltpu.VMEM((2 * TB * Tp, 192), jnp.float32),        # batched conv2 patches
            pltpu.VMEM((TB, Tp, 8 * HIDDEN), jnp.float32),      # fwd+bwd gate pre-acts
        ],
        compiler_params=pltpu.CompilerParams(dimension_semantics=("parallel",)),
    )(x4, pk["pc1"], pk["w2cat"], pk["pc2"], pk["wih_cat"], pk["whh_f"],
      pk["bias"], pk["wfc1"], pk["wfc23"])
    return out[:B]


if __name__ == "__main__":
    key = jax.random.PRNGKey(0)
    k_x, k_p = jax.random.split(key)
    # small EEG-like window: batch=2, 1 channel, 64 samples
    x = jax.random.normal(k_x, (2, 1, 64), jnp.float32)
    params = pack_params(init_params(k_p))

    fwd = jax.jit(stress_cnn_bilstm_forward)
    logits = jax.block_until_ready(fwd(x, params))
    assert logits.shape == (2, 2) and logits.dtype == jnp.float32
    print("KERNEL_OK")
</pallas_src>

<mosaic_0001>
module attributes {stable_mosaic.version = 11 : i64} {
  func.func @_fused_forward_kernel(%arg0: i32, %arg1: memref<2x16x4xf32, #tpu.memory_space<vmem>>, %arg2: memref<8x64xf32, #tpu.memory_space<vmem>>, %arg3: memref<192x128xf32, #tpu.memory_space<vmem>>, %arg4: memref<8x128xf32, #tpu.memory_space<vmem>>, %arg5: memref<128x512xf32, #tpu.memory_space<vmem>>, %arg6: memref<64x256xf32, #tpu.memory_space<vmem>>, %arg7: memref<8x512xf32, #tpu.memory_space<vmem>>, %arg8: memref<2x64x64xf32, #tpu.memory_space<vmem>>, %arg9: memref<96x32xf32, #tpu.memory_space<vmem>>, %arg10: memref<2x2xf32, #tpu.memory_space<vmem>>, %arg11: memref<2x16x64xf32, #tpu.memory_space<vmem>>, %arg12: memref<2x16x64xf32, #tpu.memory_space<vmem>>, %arg13: memref<64x192xf32, #tpu.memory_space<vmem>>, %arg14: memref<2x16x512xf32, #tpu.memory_space<vmem>>) attributes {dimension_semantics = [#tpu.dimension_semantics<parallel>], iteration_bounds = array<i64: 1>, scalar_prefetch = 0 : i64, scratch_operands = 4 : i64, tpu.core_type = #tpu.core_type<tc>, window_params = [{transform_indices = @transform_0, window_bounds = array<i64: 2, 16, 4>}, {pipeline_mode = #tpu.pipeline_mode<synchronous>, transform_indices = @transform_1, window_bounds = array<i64: 8, 64>}, {pipeline_mode = #tpu.pipeline_mode<synchronous>, transform_indices = @transform_2, window_bounds = array<i64: 192, 128>}, {pipeline_mode = #tpu.pipeline_mode<synchronous>, transform_indices = @transform_3, window_bounds = array<i64: 8, 128>}, {pipeline_mode = #tpu.pipeline_mode<synchronous>, transform_indices = @transform_4, window_bounds = array<i64: 128, 512>}, {pipeline_mode = #tpu.pipeline_mode<synchronous>, transform_indices = @transform_5, window_bounds = array<i64: 64, 256>}, {pipeline_mode = #tpu.pipeline_mode<synchronous>, transform_indices = @transform_6, window_bounds = array<i64: 8, 512>}, {pipeline_mode = #tpu.pipeline_mode<synchronous>, transform_indices = @transform_7, window_bounds = array<i64: 2, 64, 64>}, {pipeline_mode = #tpu.pipeline_mode<synchronous>, transform_indices = @transform_8, window_bounds = array<i64: 96, 32>}, {transform_indices = @transform_9, window_bounds = array<i64: 2, 2>}]} {
    %c0 = arith.constant 0 : index
    %c0_0 = arith.constant 0 : index
    %0 = vector.load %arg2[%c0, %c0_0] : memref<8x64xf32, #tpu.memory_space<vmem>>, vector<1x64xf32>
    %c1 = arith.constant 1 : index
    %c0_1 = arith.constant 0 : index
    %1 = vector.load %arg2[%c1, %c0_1] : memref<8x64xf32, #tpu.memory_space<vmem>>, vector<1x64xf32>
    %c2 = arith.constant 2 : index
    %c0_2 = arith.constant 0 : index
    %2 = vector.load %arg2[%c2, %c0_2] : memref<8x64xf32, #tpu.memory_space<vmem>>, vector<1x64xf32>
    %c3 = arith.constant 3 : index
    %c0_3 = arith.constant 0 : index
    %3 = vector.load %arg2[%c3, %c0_3] : memref<8x64xf32, #tpu.memory_space<vmem>>, vector<1x64xf32>
    %c4 = arith.constant 4 : index
    %c0_4 = arith.constant 0 : index
    %4 = vector.load %arg2[%c4, %c0_4] : memref<8x64xf32, #tpu.memory_space<vmem>>, vector<1x64xf32>
    %c5 = arith.constant 5 : index
    %c0_5 = arith.constant 0 : index
    %5 = vector.load %arg2[%c5, %c0_5] : memref<8x64xf32, #tpu.memory_space<vmem>>, vector<1x64xf32>
    %c0_6 = arith.constant 0 : index
    %c0_7 = arith.constant 0 : index
    %c0_8 = arith.constant 0 : index
    %6 = vector.load %arg1[%c0_6, %c0_7, %c0_8] : memref<2x16x4xf32, #tpu.memory_space<vmem>>, vector<2x16x1xf32>
    %c0_9 = arith.constant 0 : index
    %c0_10 = arith.constant 0 : index
    %c1_11 = arith.constant 1 : index
    %7 = vector.load %arg1[%c0_9, %c0_10, %c1_11] : memref<2x16x4xf32, #tpu.memory_space<vmem>>, vector<2x16x1xf32>
    %c0_12 = arith.constant 0 : index
    %c0_13 = arith.constant 0 : index
    %c2_14 = arith.constant 2 : index
    %8 = vector.load %arg1[%c0_12, %c0_13, %c2_14] : memref<2x16x4xf32, #tpu.memory_space<vmem>>, vector<2x16x1xf32>
    %c0_15 = arith.constant 0 : index
    %c0_16 = arith.constant 0 : index
    %c3_17 = arith.constant 3 : index
    %9 = vector.load %arg1[%c0_15, %c0_16, %c3_17] : memref<2x16x4xf32, #tpu.memory_space<vmem>>, vector<2x16x1xf32>
    %c0_18 = arith.constant 0 : index
    %c0_19 = arith.constant 0 : index
    %c2_20 = arith.constant 2 : index
    %10 = vector.load %arg1[%c0_18, %c0_19, %c2_20] : memref<2x16x4xf32, #tpu.memory_space<vmem>>, vector<2x15x1xf32>
    %c0_21 = arith.constant 0 : index
    %c0_22 = arith.constant 0 : index
    %c3_23 = arith.constant 3 : index
    %11 = vector.load %arg1[%c0_21, %c0_22, %c3_23] : memref<2x16x4xf32, #tpu.memory_space<vmem>>, vector<2x15x1xf32>
    %c0_24 = arith.constant 0 : index
    %c1_25 = arith.constant 1 : index
    %c0_26 = arith.constant 0 : index
    %12 = vector.load %arg1[%c0_24, %c1_25, %c0_26] : memref<2x16x4xf32, #tpu.memory_space<vmem>>, vector<2x15x1xf32>
    %c0_27 = arith.constant 0 : index
    %c1_28 = arith.constant 1 : index
    %c1_29 = arith.constant 1 : index
    %13 = vector.load %arg1[%c0_27, %c1_28, %c1_29] : memref<2x16x4xf32, #tpu.memory_space<vmem>>, vector<2x15x1xf32>
    %14 = vector.shape_cast %0 : vector<1x64xf32> to vector<1x1x64xf32>
    %15 = vector.broadcast %6 : vector<2x16x1xf32> to vector<2x16x64xf32>
    %16 = vector.broadcast %14 : vector<1x1x64xf32> to vector<2x16x64xf32>
    %17 = arith.mulf %15, %16 : vector<2x16x64xf32>
    %18 = vector.shape_cast %1 : vector<1x64xf32> to vector<1x1x64xf32>
    %19 = vector.broadcast %7 : vector<2x16x1xf32> to vector<2x16x64xf32>
    %20 = vector.broadcast %18 : vector<1x1x64xf32> to vector<2x16x64xf32>
    %21 = arith.mulf %19, %20 : vector<2x16x64xf32>
    %22 = arith.addf %17, %21 : vector<2x16x64xf32>
    %23 = vector.shape_cast %2 : vector<1x64xf32> to vector<1x1x64xf32>
    %24 = vector.broadcast %8 : vector<2x16x1xf32> to vector<2x16x64xf32>
    %25 = vector.broadcast %23 : vector<1x1x64xf32> to vector<2x16x64xf32>
    %26 = arith.mulf %24, %25 : vector<2x16x64xf32>
    %27 = arith.addf %22, %26 : vector<2x16x64xf32>
    %28 = vector.shape_cast %3 : vector<1x64xf32> to vector<1x1x64xf32>
    %29 = vector.broadcast %28 : vector<1x1x64xf32> to vector<2x16x64xf32>
    %30 = arith.addf %27, %29 : vector<2x16x64xf32>
    %cst = arith.constant 0.000000e+00 : f32
    %31 = vector.broadcast %cst : f32 to vector<2x16x64xf32>
    %32 = arith.maximumf %30, %31 : vector<2x16x64xf32>
    %33 = vector.shape_cast %4 : vector<1x64xf32> to vector<1x1x64xf32>
    %34 = vector.broadcast %33 : vector<1x1x64xf32> to vector<2x16x64xf32>
    %35 = arith.mulf %32, %34 : vector<2x16x64xf32>
    %36 = vector.shape_cast %5 : vector<1x64xf32> to vector<1x1x64xf32>
    %37 = vector.broadcast %36 : vector<1x1x64xf32> to vector<2x16x64xf32>
    %38 = arith.addf %35, %37 : vector<2x16x64xf32>
    %39 = vector.shape_cast %0 : vector<1x64xf32> to vector<1x1x64xf32>
    %40 = vector.broadcast %7 : vector<2x16x1xf32> to vector<2x16x64xf32>
    %41 = vector.broadcast %39 : vector<1x1x64xf32> to vector<2x16x64xf32>
    %42 = arith.mulf %40, %41 : vector<2x16x64xf32>
    %43 = vector.shape_cast %1 : vector<1x64xf32> to vector<1x1x64xf32>
    %44 = vector.broadcast %8 : vector<2x16x1xf32> to vector<2x16x64xf32>
    %45 = vector.broadcast %43 : vector<1x1x64xf32> to vector<2x16x64xf32>
    %46 = arith.mulf %44, %45 : vector<2x16x64xf32>
    %47 = arith.addf %42, %46 : vector<2x16x64xf32>
    %48 = vector.shape_cast %2 : vector<1x64xf32> to vector<1x1x64xf32>
    %49 = vector.broadcast %9 : vector<2x16x1xf32> to vector<2x16x64xf32>
    %50 = vector.broadcast %48 : vector<1x1x64xf32> to vector<2x16x64xf32>
    %51 = arith.mulf %49, %50 : vector<2x16x64xf32>
    %52 = arith.addf %47, %51 : vector<2x16x64xf32>
    %53 = vector.shape_cast %3 : vector<1x64xf32> to vector<1x1x64xf32>
    %54 = vector.broadcast %53 : vector<1x1x64xf32> to vector<2x16x64xf32>
    %55 = arith.addf %52, %54 : vector<2x16x64xf32>
    %cst_30 = arith.constant 0.000000e+00 : f32
    %56 = vector.broadcast %cst_30 : f32 to vector<2x16x64xf32>
    %57 = arith.maximumf %55, %56 : vector<2x16x64xf32>
    %58 = vector.shape_cast %4 : vector<1x64xf32> to vector<1x1x64xf32>
    %59 = vector.broadcast %58 : vector<1x1x64xf32> to vector<2x16x64xf32>
    %60 = arith.mulf %57, %59 : vector<2x16x64xf32>
    %61 = vector.shape_cast %5 : vector<1x64xf32> to vector<1x1x64xf32>
    %62 = vector.broadcast %61 : vector<1x1x64xf32> to vector<2x16x64xf32>
    %63 = arith.addf %60, %62 : vector<2x16x64xf32>
    %64 = arith.maximumf %38, %63 : vector<2x16x64xf32>
    %c0_31 = arith.constant 0 : index
    %c0_32 = arith.constant 0 : index
    %c0_33 = arith.constant 0 : index
    %65 = vector.load %arg11[%c0_31, %c0_32, %c0_33] : memref<2x16x64xf32, #tpu.memory_space<vmem>>, vector<2x16x64xf32>
    tpu.vector_store %arg11[%c0_31, %c0_32, %c0_33], %64 {strides = array<i32>} : memref<2x16x64xf32, #tpu.memory_space<vmem>>, vector<2x16x64xf32>,
    %66 = vector.shape_cast %0 : vector<1x64xf32> to vector<1x1x64xf32>
    %67 = vector.broadcast %10 : vector<2x15x1xf32> to vector<2x15x64xf32>
    %68 = vector.broadcast %66 : vector<1x1x64xf32> to vector<2x15x64xf32>
    %69 = arith.mulf %67, %68 : vector<2x15x64xf32>
    %70 = vector.shape_cast %1 : vector<1x64xf32> to vector<1x1x64xf32>
    %71 = vector.broadcast %11 : vector<2x15x1xf32> to vector<2x15x64xf32>
    %72 = vector.broadcast %70 : vector<1x1x64xf32> to vector<2x15x64xf32>
    %73 = arith.mulf %71, %72 : vector<2x15x64xf32>
    %74 = arith.addf %69, %73 : vector<2x15x64xf32>
    %75 = vector.shape_cast %2 : vector<1x64xf32> to vector<1x1x64xf32>
    %76 = vector.broadcast %12 : vector<2x15x1xf32> to vector<2x15x64xf32>
    %77 = vector.broadcast %75 : vector<1x1x64xf32> to vector<2x15x64xf32>
    %78 = arith.mulf %76, %77 : vector<2x15x64xf32>
    %79 = arith.addf %74, %78 : vector<2x15x64xf32>
    %80 = vector.shape_cast %3 : vector<1x64xf32> to vector<1x1x64xf32>
    %81 = vector.broadcast %80 : vector<1x1x64xf32> to vector<2x15x64xf32>
    %82 = arith.addf %79, %81 : vector<2x15x64xf32>
    %cst_34 = arith.constant 0.000000e+00 : f32
    %83 = vector.broadcast %cst_34 : f32 to vector<2x15x64xf32>
    %84 = arith.maximumf %82, %83 : vector<2x15x64xf32>
    %85 = vector.shape_cast %4 : vector<1x64xf32> to vector<1x1x64xf32>
    %86 = vector.broadcast %85 : vector<1x1x64xf32> to vector<2x15x64xf32>
    %87 = arith.mulf %84, %86 : vector<2x15x64xf32>
    %88 = vector.shape_cast %5 : vector<1x64xf32> to vector<1x1x64xf32>
    %89 = vector.broadcast %88 : vector<1x1x64xf32> to vector<2x15x64xf32>
    %90 = arith.addf %87, %89 : vector<2x15x64xf32>
    %91 = vector.shape_cast %0 : vector<1x64xf32> to vector<1x1x64xf32>
    %92 = vector.broadcast %11 : vector<2x15x1xf32> to vector<2x15x64xf32>
    %93 = vector.broadcast %91 : vector<1x1x64xf32> to vector<2x15x64xf32>
    %94 = arith.mulf %92, %93 : vector<2x15x64xf32>
    %95 = vector.shape_cast %1 : vector<1x64xf32> to vector<1x1x64xf32>
    %96 = vector.broadcast %12 : vector<2x15x1xf32> to vector<2x15x64xf32>
    %97 = vector.broadcast %95 : vector<1x1x64xf32> to vector<2x15x64xf32>
    %98 = arith.mulf %96, %97 : vector<2x15x64xf32>
    %99 = arith.addf %94, %98 : vector<2x15x64xf32>
    %100 = vector.shape_cast %2 : vector<1x64xf32> to vector<1x1x64xf32>
    %101 = vector.broadcast %13 : vector<2x15x1xf32> to vector<2x15x64xf32>
    %102 = vector.broadcast %100 : vector<1x1x64xf32> to vector<2x15x64xf32>
    %103 = arith.mulf %101, %102 : vector<2x15x64xf32>
    %104 = arith.addf %99, %103 : vector<2x15x64xf32>
    %105 = vector.shape_cast %3 : vector<1x64xf32> to vector<1x1x64xf32>
    %106 = vector.broadcast %105 : vector<1x1x64xf32> to vector<2x15x64xf32>
    %107 = arith.addf %104, %106 : vector<2x15x64xf32>
    %cst_35 = arith.constant 0.000000e+00 : f32
    %108 = vector.broadcast %cst_35 : f32 to vector<2x15x64xf32>
    %109 = arith.maximumf %107, %108 : vector<2x15x64xf32>
    %110 = vector.shape_cast %4 : vector<1x64xf32> to vector<1x1x64xf32>
    %111 = vector.broadcast %110 : vector<1x1x64xf32> to vector<2x15x64xf32>
    %112 = arith.mulf %109, %111 : vector<2x15x64xf32>
    %113 = vector.shape_cast %5 : vector<1x64xf32> to vector<1x1x64xf32>
    %114 = vector.broadcast %113 : vector<1x1x64xf32> to vector<2x15x64xf32>
    %115 = arith.addf %112, %114 : vector<2x15x64xf32>
    %116 = arith.maximumf %90, %115 : vector<2x15x64xf32>
    %c0_36 = arith.constant 0 : index
    %c0_37 = arith.constant 0 : index
    %c0_38 = arith.constant 0 : index
    %117 = vector.load %arg12[%c0_36, %c0_37, %c0_38] : memref<2x16x64xf32, #tpu.memory_space<vmem>>, vector<2x15x64xf32>
    tpu.vector_store %arg12[%c0_36, %c0_37, %c0_38], %116 {strides = array<i32>} : memref<2x16x64xf32, #tpu.memory_space<vmem>>, vector<2x15x64xf32>,
    %cst_39 = arith.constant 0.000000e+00 : f32
    %118 = vector.broadcast %cst_39 : f32 to vector<2x1x64xf32>
    %c0_40 = arith.constant 0 : index
    %c15 = arith.constant 15 : index
    %c0_41 = arith.constant 0 : index
    %119 = vector.load %arg12[%c0_40, %c15, %c0_41] : memref<2x16x64xf32, #tpu.memory_space<vmem>>, vector<2x1x64xf32>
    tpu.vector_store %arg12[%c0_40, %c15, %c0_41], %118 {strides = array<i32>} : memref<2x16x64xf32, #tpu.memory_space<vmem>>, vector<2x1x64xf32>,
    %cst_42 = arith.constant 0.000000e+00 : f32
    %120 = vector.broadcast %cst_42 : f32 to vector<64x192xf32>
    %c0_43 = arith.constant 0 : index
    %c0_44 = arith.constant 0 : index
    %121 = vector.load %arg13[%c0_43, %c0_44] : memref<64x192xf32, #tpu.memory_space<vmem>>, vector<64x192xf32>
    tpu.vector_store %arg13[%c0_43, %c0_44], %120 {strides = array<i32>} : memref<64x192xf32, #tpu.memory_space<vmem>>, vector<64x192xf32>,
    %c0_45 = arith.constant 0 : index
    %c0_46 = arith.constant 0 : index
    %c0_47 = arith.constant 0 : index
    %122 = vector.load %arg11[%c0_45, %c0_46, %c0_47] : memref<2x16x64xf32, #tpu.memory_space<vmem>>, vector<1x16x64xf32>
    %123 = vector.shape_cast %122 : vector<1x16x64xf32> to vector<16x64xf32>
    %c0_48 = arith.constant 0 : index
    %c0_49 = arith.constant 0 : index
    %c0_50 = arith.constant 0 : index
    %124 = vector.load %arg12[%c0_48, %c0_49, %c0_50] : memref<2x16x64xf32, #tpu.memory_space<vmem>>, vector<1x16x64xf32>
    %125 = vector.shape_cast %124 : vector<1x16x64xf32> to vector<16x64xf32>
    %c0_51 = arith.constant 0 : index
    %c0_52 = arith.constant 0 : index
    %126 = vector.load %arg13[%c0_51, %c0_52] : memref<64x192xf32, #tpu.memory_space<vmem>>, vector<16x64xf32>
    tpu.vector_store %arg13[%c0_51, %c0_52], %123 {strides = array<i32>} : memref<64x192xf32, #tpu.memory_space<vmem>>, vector<16x64xf32>,
    %c0_53 = arith.constant 0 : index
    %c64 = arith.constant 64 : index
    %127 = vector.load %arg13[%c0_53, %c64] : memref<64x192xf32, #tpu.memory_space<vmem>>, vector<16x64xf32>
    tpu.vector_store %arg13[%c0_53, %c64], %125 {strides = array<i32>} : memref<64x192xf32, #tpu.memory_space<vmem>>, vector<16x64xf32>,
    %128 = vector.extract_strided_slice %123 {offsets = [1, 0], sizes = [14, 64], strides = [1, 1]} : vector<16x64xf32> to vector<14x64xf32>
    %c0_54 = arith.constant 0 : index
    %c128 = arith.constant 128 : index
    %129 = vector.load %arg13[%c0_54, %c128] : memref<64x192xf32, #tpu.memory_space<vmem>>, vector<14x64xf32>
    tpu.vector_store %arg13[%c0_54, %c128], %128 {strides = array<i32>} : memref<64x192xf32, #tpu.memory_space<vmem>>, vector<14x64xf32>,
    %c32 = arith.constant 32 : index
    %c0_55 = arith.constant 0 : index
    %130 = vector.load %arg13[%c32, %c0_55] : memref<64x192xf32, #tpu.memory_space<vmem>>, vector<16x64xf32>
    tpu.vector_store %arg13[%c32, %c0_55], %125 {strides = array<i32>} : memref<64x192xf32, #tpu.memory_space<vmem>>, vector<16x64xf32>,
    %131 = vector.extract_strided_slice %123 {offsets = [1, 0], sizes = [14, 64], strides = [1, 1]} : vector<16x64xf32> to vector<14x64xf32>
    %c32_56 = arith.constant 32 : index
    %c64_57 = arith.constant 64 : index
    %132 = vector.load %arg13[%c32_56, %c64_57] : memref<64x192xf32, #tpu.memory_space<vmem>>, vector<14x64xf32>
    tpu.vector_store %arg13[%c32_56, %c64_57], %131 {strides = array<i32>} : memref<64x192xf32, #tpu.memory_space<vmem>>, vector<14x64xf32>,
    %133 = vector.extract_strided_slice %125 {offsets = [1, 0], sizes = [14, 64], strides = [1, 1]} : vector<16x64xf32> to vector<14x64xf32>
    %c32_58 = arith.constant 32 : index
    %c128_59 = arith.constant 128 : index
    %134 = vector.load %arg13[%c32_58, %c128_59] : memref<64x192xf32, #tpu.memory_space<vmem>>, vector<14x64xf32>
    tpu.vector_store %arg13[%c32_58, %c128_59], %133 {strides = array<i32>} : memref<64x192xf32, #tpu.memory_space<vmem>>, vector<14x64xf32>,
    %c1_60 = arith.constant 1 : index
    %c0_61 = arith.constant 0 : index
    %c0_62 = arith.constant 0 : index
    %135 = vector.load %arg11[%c1_60, %c0_61, %c0_62] : memref<2x16x64xf32, #tpu.memory_space<vmem>>, vector<1x16x64xf32>
    %136 = vector.shape_cast %135 : vector<1x16x64xf32> to vector<16x64xf32>
    %c1_63 = arith.constant 1 : index
    %c0_64 = arith.constant 0 : index
    %c0_65 = arith.constant 0 : index
    %137 = vector.load %arg12[%c1_63, %c0_64, %c0_65] : memref<2x16x64xf32, #tpu.memory_space<vmem>>, vector<1x16x64xf32>
    %138 = vector.shape_cast %137 : vector<1x16x64xf32> to vector<16x64xf32>
    %c16 = arith.constant 16 : index
    %c0_66 = arith.constant 0 : index
    %139 = vector.load %arg13[%c16, %c0_66] : memref<64x192xf32, #tpu.memory_space<vmem>>, vector<16x64xf32>
    tpu.vector_store %arg13[%c16, %c0_66], %136 {strides = array<i32>} : memref<64x192xf32, #tpu.memory_space<vmem>>, vector<16x64xf32>,
    %c16_67 = arith.constant 16 : index
    %c64_68 = arith.constant 64 : index
    %140 = vector.load %arg13[%c16_67, %c64_68] : memref<64x192xf32, #tpu.memory_space<vmem>>, vector<16x64xf32>
    tpu.vector_store %arg13[%c16_67, %c64_68], %138 {strides = array<i32>} : memref<64x192xf32, #tpu.memory_space<vmem>>, vector<16x64xf32>,
    %141 = vector.extract_strided_slice %136 {offsets = [1, 0], sizes = [14, 64], strides = [1, 1]} : vector<16x64xf32> to vector<14x64xf32>
    %c16_69 = arith.constant 16 : index
    %c128_70 = arith.constant 128 : index
    %142 = vector.load %arg13[%c16_69, %c128_70] : memref<64x192xf32, #tpu.memory_space<vmem>>, vector<14x64xf32>
    tpu.vector_store %arg13[%c16_69, %c128_70], %141 {strides = array<i32>} : memref<64x192xf32, #tpu.memory_space<vmem>>, vector<14x64xf32>,
    %c48 = arith.constant 48 : index
    %c0_71 = arith.constant 0 : index
    %143 = vector.load %arg13[%c48, %c0_71] : memref<64x192xf32, #tpu.memory_space<vmem>>, vector<16x64xf32>
    tpu.vector_store %arg13[%c48, %c0_71], %138 {strides = array<i32>} : memref<64x192xf32, #tpu.memory_space<vmem>>, vector<16x64xf32>,
    %144 = vector.extract_strided_slice %136 {offsets = [1, 0], sizes = [14, 64], strides = [1, 1]} : vector<16x64xf32> to vector<14x64xf32>
    %c48_72 = arith.constant 48 : index
    %c64_73 = arith.constant 64 : index
    %145 = vector.load %arg13[%c48_72, %c64_73] : memref<64x192xf32, #tpu.memory_space<vmem>>, vector<14x64xf32>
    tpu.vector_store %arg13[%c48_72, %c64_73], %144 {strides = array<i32>} : memref<64x192xf32, #tpu.memory_space<vmem>>, vector<14x64xf32>,
    %146 = vector.extract_strided_slice %138 {offsets = [1, 0], sizes = [14, 64], strides = [1, 1]} : vector<16x64xf32> to vector<14x64xf32>
    %c48_74 = arith.constant 48 : index
    %c128_75 = arith.constant 128 : index
    %147 = vector.load %arg13[%c48_74, %c128_75] : memref<64x192xf32, #tpu.memory_space<vmem>>, vector<14x64xf32>
    tpu.vector_store %arg13[%c48_74, %c128_75], %146 {strides = array<i32>} : memref<64x192xf32, #tpu.memory_space<vmem>>, vector<14x64xf32>,
    %c0_76 = arith.constant 0 : index
    %c0_77 = arith.constant 0 : index
    %148 = vector.load %arg4[%c0_76, %c0_77] : memref<8x128xf32, #tpu.memory_space<vmem>>, vector<1x128xf32>
    %c1_78 = arith.constant 1 : index
    %c0_79 = arith.constant 0 : index
    %149 = vector.load %arg4[%c1_78, %c0_79] : memref<8x128xf32, #tpu.memory_space<vmem>>, vector<1x128xf32>
    %c2_80 = arith.constant 2 : index
    %c0_81 = arith.constant 0 : index
    %150 = vector.load %arg4[%c2_80, %c0_81] : memref<8x128xf32, #tpu.memory_space<vmem>>, vector<1x128xf32>
    %c0_82 = arith.constant 0 : index
    %c0_83 = arith.constant 0 : index
    %151 = vector.load %arg13[%c0_82, %c0_83] : memref<64x192xf32, #tpu.memory_space<vmem>>, vector<64x192xf32>
    %c0_84 = arith.constant 0 : index
    %c0_85 = arith.constant 0 : index
    %152 = vector.load %arg3[%c0_84, %c0_85] : memref<192x128xf32, #tpu.memory_space<vmem>>, vector<192x128xf32>
    %cst_86 = arith.constant dense<0.000000e+00> : vector<64x128xf32>
    %153 = tpu.matmul %151, %152, %cst_86 {dimension_numbers = #tpu.dot_dimension_numbers<[1], [0], [0], [1], [0, 0, 1, 1], [], []>} : vector<64x192xf32>, vector<192x128xf32>, vector<64x128xf32> -> vector<64x128xf32>
    %154 = vector.broadcast %148 : vector<1x128xf32> to vector<64x128xf32>
    %155 = arith.addf %153, %154 : vector<64x128xf32>
    %cst_87 = arith.constant 0.000000e+00 : f32
    %156 = vector.broadcast %cst_87 : f32 to vector<64x128xf32>
    %157 = arith.maximumf %155, %156 : vector<64x128xf32>
    %158 = vector.broadcast %149 : vector<1x128xf32> to vector<64x128xf32>
    %159 = arith.mulf %157, %158 : vector<64x128xf32>
    %160 = vector.broadcast %150 : vector<1x128xf32> to vector<64x128xf32>
    %161 = arith.addf %159, %160 : vector<64x128xf32>
    %162 = vector.extract_strided_slice %161 {offsets = [0, 0], sizes = [32, 128], strides = [1, 1]} : vector<64x128xf32> to vector<32x128xf32>
    %163 = vector.extract_strided_slice %161 {offsets = [32, 0], sizes = [32, 128], strides = [1, 1]} : vector<64x128xf32> to vector<32x128xf32>
    %164 = arith.maximumf %162, %163 : vector<32x128xf32>
    %c0_88 = arith.constant 0 : index
    %c0_89 = arith.constant 0 : index
    %165 = vector.load %arg5[%c0_88, %c0_89] : memref<128x512xf32, #tpu.memory_space<vmem>>, vector<128x512xf32>
    %cst_90 = arith.constant dense<0.000000e+00> : vector<32x512xf32>
    %166 = tpu.matmul %164, %165, %cst_90 {dimension_numbers = #tpu.dot_dimension_numbers<[1], [0], [0], [1], [0, 0, 1, 1], [], []>} : vector<32x128xf32>, vector<128x512xf32>, vector<32x512xf32> -> vector<32x512xf32>
    %c0_91 = arith.constant 0 : index
    %c0_92 = arith.constant 0 : index
    %167 = vector.load %arg7[%c0_91, %c0_92] : memref<8x512xf32, #tpu.memory_space<vmem>>, vector<1x512xf32>
    %168 = vector.broadcast %167 : vector<1x512xf32> to vector<32x512xf32>
    %169 = arith.addf %166, %168 : vector<32x512xf32>
    %170 = vector.extract_strided_slice %169 {offsets = [0, 0], sizes = [16, 512], strides = [1, 1]} : vector<32x512xf32> to vector<16x512xf32>
    %c0_93 = arith.constant 0 : index
    %c0_94 = arith.constant 0 : index
    %c0_95 = arith.constant 0 : index
    %171 = vector.load %arg14[%c0_93, %c0_94, %c0_95] : memref<2x16x512xf32, #tpu.memory_space<vmem>>, vector<1x16x512xf32>
    %172 = vector.shape_cast %171 : vector<1x16x512xf32> to vector<16x512xf32>
    %173 = vector.shape_cast %170 : vector<16x512xf32> to vector<1x16x512xf32>
    tpu.vector_store %arg14[%c0_93, %c0_94, %c0_95], %173 {strides = array<i32>} : memref<2x16x512xf32, #tpu.memory_space<vmem>>, vector<1x16x512xf32>,
    %174 = vector.extract_strided_slice %169 {offsets = [16, 0], sizes = [16, 512], strides = [1, 1]} : vector<32x512xf32> to vector<16x512xf32>
    %c1_96 = arith.constant 1 : index
    %c0_97 = arith.constant 0 : index
    %c0_98 = arith.constant 0 : index
    %175 = vector.load %arg14[%c1_96, %c0_97, %c0_98] : memref<2x16x512xf32, #tpu.memory_space<vmem>>, vector<1x16x512xf32>
    %176 = vector.shape_cast %175 : vector<1x16x512xf32> to vector<16x512xf32>
    %177 = vector.shape_cast %174 : vector<16x512xf32> to vector<1x16x512xf32>
    tpu.vector_store %arg14[%c1_96, %c0_97, %c0_98], %177 {strides = array<i32>} : memref<2x16x512xf32, #tpu.memory_space<vmem>>, vector<1x16x512xf32>,
    %c0_99 = arith.constant 0 : index
    %c0_100 = arith.constant 0 : index
    %178 = vector.load %arg6[%c0_99, %c0_100] : memref<64x256xf32, #tpu.memory_space<vmem>>, vector<64x256xf32>
    %cst_101 = arith.constant 0.000000e+00 : f32
    %179 = vector.broadcast %cst_101 : f32 to vector<2x64xf32>
    %cst_102 = arith.constant 0.000000e+00 : f32
    %180 = vector.broadcast %cst_102 : f32 to vector<2x64xf32>
    %c0_103 = arith.constant 0 : index
    %c0_104 = arith.constant 0 : index
    %c0_105 = arith.constant 0 : index
    %181 = vector.load %arg14[%c0_103, %c0_104, %c0_105] : memref<2x16x512xf32, #tpu.memory_space<vmem>>, vector<2x1x256xf32>
    %182 = vector.shape_cast %181 : vector<2x1x256xf32> to vector<2x256xf32>
    %cst_106 = arith.constant dense<0.000000e+00> : vector<2x256xf32>
    %183 = tpu.matmul %179, %178, %cst_106 {dimension_numbers = #tpu.dot_dimension_numbers<[1], [0], [0], [1], [0, 0, 1, 1], [], []>} : vector<2x64xf32>, vector<64x256xf32>, vector<2x256xf32> -> vector<2x256xf32>
    %184 = arith.addf %182, %183 : vector<2x256xf32>
    %185 = vector.extract_strided_slice %184 {offsets = [0, 0], sizes = [2, 192], strides = [1, 1]} : vector<2x256xf32> to vector<2x192xf32>
    %186 = arith.negf %185 : vector<2x192xf32>
    %187 = math.exp %186 : vector<2x192xf32>
    %cst_107 = arith.constant 1.000000e+00 : f32
    %188 = vector.broadcast %cst_107 : f32 to vector<2x192xf32>
    %189 = arith.addf %188, %187 : vector<2x192xf32>
    %190 = arith.divf %188, %189 : vector<2x192xf32>
    %191 = vector.extract_strided_slice %190 {offsets = [0, 0], sizes = [2, 64], strides = [1, 1]} : vector<2x192xf32> to vector<2x64xf32>
    %192 = vector.extract_strided_slice %190 {offsets = [0, 64], sizes = [2, 64], strides = [1, 1]} : vector<2x192xf32> to vector<2x64xf32>
    %193 = vector.extract_strided_slice %190 {offsets = [0, 128], sizes = [2, 64], strides = [1, 1]} : vector<2x192xf32> to vector<2x64xf32>
    %194 = vector.extract_strided_slice %184 {offsets = [0, 192], sizes = [2, 64], strides = [1, 1]} : vector<2x256xf32> to vector<2x64xf32>
    %195 = math.tanh %194 : vector<2x64xf32>
    %196 = arith.mulf %192, %180 : vector<2x64xf32>
    %197 = arith.mulf %191, %195 : vector<2x64xf32>
    %198 = arith.addf %196, %197 : vector<2x64xf32>
    %199 = math.tanh %198 : vector<2x64xf32>
    %200 = arith.mulf %193, %199 : vector<2x64xf32>
    %c0_108 = arith.constant 0 : index
    %c1_109 = arith.constant 1 : index
    %c0_110 = arith.constant 0 : index
    %201 = vector.load %arg14[%c0_108, %c1_109, %c0_110] : memref<2x16x512xf32, #tpu.memory_space<vmem>>, vector<2x1x256xf32>
    %202 = vector.shape_cast %201 : vector<2x1x256xf32> to vector<2x256xf32>
    %cst_111 = arith.constant dense<0.000000e+00> : vector<2x256xf32>
    %203 = tpu.matmul %200, %178, %cst_111 {dimension_numbers = #tpu.dot_dimension_numbers<[1], [0], [0], [1], [0, 0, 1, 1], [], []>} : vector<2x64xf32>, vector<64x256xf32>, vector<2x256xf32> -> vector<2x256xf32>
    %204 = arith.addf %202, %203 : vector<2x256xf32>
    %205 = vector.extract_strided_slice %204 {offsets = [0, 0], sizes = [2, 192], strides = [1, 1]} : vector<2x256xf32> to vector<2x192xf32>
    %206 = arith.negf %205 : vector<2x192xf32>
    %207 = math.exp %206 : vector<2x192xf32>
    %cst_112 = arith.constant 1.000000e+00 : f32
    %208 = vector.broadcast %cst_112 : f32 to vector<2x192xf32>
    %209 = arith.addf %208, %207 : vector<2x192xf32>
    %210 = arith.divf %208, %209 : vector<2x192xf32>
    %211 = vector.extract_strided_slice %210 {offsets = [0, 0], sizes = [2, 64], strides = [1, 1]} : vector<2x192xf32> to vector<2x64xf32>
    %212 = vector.extract_strided_slice %210 {offsets = [0, 64], sizes = [2, 64], strides = [1, 1]} : vector<2x192xf32> to vector<2x64xf32>
    %213 = vector.extract_strided_slice %210 {offsets = [0, 128], sizes = [2, 64], strides = [1, 1]} : vector<2x192xf32> to vector<2x64xf32>
    %214 = vector.extract_strided_slice %204 {offsets = [0, 192], sizes = [2, 64], strides = [1, 1]} : vector<2x256xf32> to vector<2x64xf32>
    %215 = math.tanh %214 : vector<2x64xf32>
    %216 = arith.mulf %212, %198 : vector<2x64xf32>
    %217 = arith.mulf %211, %215 : vector<2x64xf32>
    %218 = arith.addf %216, %217 : vector<2x64xf32>
    %219 = math.tanh %218 : vector<2x64xf32>
    %220 = arith.mulf %213, %219 : vector<2x64xf32>
    %c0_113 = arith.constant 0 : index
    %c2_114 = arith.constant 2 : index
    %c0_115 = arith.constant 0 : index
    %221 = vector.load %arg14[%c0_113, %c2_114, %c0_115] : memref<2x16x512xf32, #tpu.memory_space<vmem>>, vector<2x1x256xf32>
    %222 = vector.shape_cast %221 : vector<2x1x256xf32> to vector<2x256xf32>
    %cst_116 = arith.constant dense<0.000000e+00> : vector<2x256xf32>
    %223 = tpu.matmul %220, %178, %cst_116 {dimension_numbers = #tpu.dot_dimension_numbers<[1], [0], [0], [1], [0, 0, 1, 1], [], []>} : vector<2x64xf32>, vector<64x256xf32>, vector<2x256xf32> -> vector<2x256xf32>
    %224 = arith.addf %222, %223 : vector<2x256xf32>
    %225 = vector.extract_strided_slice %224 {offsets = [0, 0], sizes = [2, 192], strides = [1, 1]} : vector<2x256xf32> to vector<2x192xf32>
    %226 = arith.negf %225 : vector<2x192xf32>
    %227 = math.exp %226 : vector<2x192xf32>
    %cst_117 = arith.constant 1.000000e+00 : f32
    %228 = vector.broadcast %cst_117 : f32 to vector<2x192xf32>
    %229 = arith.addf %228, %227 : vector<2x192xf32>
    %230 = arith.divf %228, %229 : vector<2x192xf32>
    %231 = vector.extract_strided_slice %230 {offsets = [0, 0], sizes = [2, 64], strides = [1, 1]} : vector<2x192xf32> to vector<2x64xf32>
    %232 = vector.extract_strided_slice %230 {offsets = [0, 64], sizes = [2, 64], strides = [1, 1]} : vector<2x192xf32> to vector<2x64xf32>
    %233 = vector.extract_strided_slice %230 {offsets = [0, 128], sizes = [2, 64], strides = [1, 1]} : vector<2x192xf32> to vector<2x64xf32>
    %234 = vector.extract_strided_slice %224 {offsets = [0, 192], sizes = [2, 64], strides = [1, 1]} : vector<2x256xf32> to vector<2x64xf32>
    %235 = math.tanh %234 : vector<2x64xf32>
    %236 = arith.mulf %232, %218 : vector<2x64xf32>
    %237 = arith.mulf %231, %235 : vector<2x64xf32>
    %238 = arith.addf %236, %237 : vector<2x64xf32>
    %239 = math.tanh %238 : vector<2x64xf32>
    %240 = arith.mulf %233, %239 : vector<2x64xf32>
    %c0_118 = arith.constant 0 : index
    %c3_119 = arith.constant 3 : index
    %c0_120 = arith.constant 0 : index
    %241 = vector.load %arg14[%c0_118, %c3_119, %c0_120] : memref<2x16x512xf32, #tpu.memory_space<vmem>>, vector<2x1x256xf32>
    %242 = vector.shape_cast %241 : vector<2x1x256xf32> to vector<2x256xf32>
    %cst_121 = arith.constant dense<0.000000e+00> : vector<2x256xf32>
    %243 = tpu.matmul %240, %178, %cst_121 {dimension_numbers = #tpu.dot_dimension_numbers<[1], [0], [0], [1], [0, 0, 1, 1], [], []>} : vector<2x64xf32>, vector<64x256xf32>, vector<2x256xf32> -> vector<2x256xf32>
    %244 = arith.addf %242, %243 : vector<2x256xf32>
    %245 = vector.extract_strided_slice %244 {offsets = [0, 0], sizes = [2, 192], strides = [1, 1]} : vector<2x256xf32> to vector<2x192xf32>
    %246 = arith.negf %245 : vector<2x192xf32>
    %247 = math.exp %246 : vector<2x192xf32>
    %cst_122 = arith.constant 1.000000e+00 : f32
    %248 = vector.broadcast %cst_122 : f32 to vector<2x192xf32>
    %249 = arith.addf %248, %247 : vector<2x192xf32>
    %250 = arith.divf %248, %249 : vector<2x192xf32>
    %251 = vector.extract_strided_slice %250 {offsets = [0, 0], sizes = [2, 64], strides = [1, 1]} : vector<2x192xf32> to vector<2x64xf32>
    %252 = vector.extract_strided_slice %250 {offsets = [0, 64], sizes = [2, 64], strides = [1, 1]} : vector<2x192xf32> to vector<2x64xf32>
    %253 = vector.extract_strided_slice %250 {offsets = [0, 128], sizes = [2, 64], strides = [1, 1]} : vector<2x192xf32> to vector<2x64xf32>
    %254 = vector.extract_strided_slice %244 {offsets = [0, 192], sizes = [2, 64], strides = [1, 1]} : vector<2x256xf32> to vector<2x64xf32>
    %255 = math.tanh %254 : vector<2x64xf32>
    %256 = arith.mulf %252, %238 : vector<2x64xf32>
    %257 = arith.mulf %251, %255 : vector<2x64xf32>
    %258 = arith.addf %256, %257 : vector<2x64xf32>
    %259 = math.tanh %258 : vector<2x64xf32>
    %260 = arith.mulf %253, %259 : vector<2x64xf32>
    %c0_123 = arith.constant 0 : index
    %c4_124 = arith.constant 4 : index
    %c0_125 = arith.constant 0 : index
    %261 = vector.load %arg14[%c0_123, %c4_124, %c0_125] : memref<2x16x512xf32, #tpu.memory_space<vmem>>, vector<2x1x256xf32>
    %262 = vector.shape_cast %261 : vector<2x1x256xf32> to vector<2x256xf32>
    %cst_126 = arith.constant dense<0.000000e+00> : vector<2x256xf32>
    %263 = tpu.matmul %260, %178, %cst_126 {dimension_numbers = #tpu.dot_dimension_numbers<[1], [0], [0], [1], [0, 0, 1, 1], [], []>} : vector<2x64xf32>, vector<64x256xf32>, vector<2x256xf32> -> vector<2x256xf32>
    %264 = arith.addf %262, %263 : vector<2x256xf32>
    %265 = vector.extract_strided_slice %264 {offsets = [0, 0], sizes = [2, 192], strides = [1, 1]} : vector<2x256xf32> to vector<2x192xf32>
    %266 = arith.negf %265 : vector<2x192xf32>
    %267 = math.exp %266 : vector<2x192xf32>
    %cst_127 = arith.constant 1.000000e+00 : f32
    %268 = vector.broadcast %cst_127 : f32 to vector<2x192xf32>
    %269 = arith.addf %268, %267 : vector<2x192xf32>
    %270 = arith.divf %268, %269 : vector<2x192xf32>
    %271 = vector.extract_strided_slice %270 {offsets = [0, 0], sizes = [2, 64], strides = [1, 1]} : vector<2x192xf32> to vector<2x64xf32>
    %272 = vector.extract_strided_slice %270 {offsets = [0, 64], sizes = [2, 64], strides = [1, 1]} : vector<2x192xf32> to vector<2x64xf32>
    %273 = vector.extract_strided_slice %270 {offsets = [0, 128], sizes = [2, 64], strides = [1, 1]} : vector<2x192xf32> to vector<2x64xf32>
    %274 = vector.extract_strided_slice %264 {offsets = [0, 192], sizes = [2, 64], strides = [1, 1]} : vector<2x256xf32> to vector<2x64xf32>
    %275 = math.tanh %274 : vector<2x64xf32>
    %276 = arith.mulf %272, %258 : vector<2x64xf32>
    %277 = arith.mulf %271, %275 : vector<2x64xf32>
    %278 = arith.addf %276, %277 : vector<2x64xf32>
    %279 = math.tanh %278 : vector<2x64xf32>
    %280 = arith.mulf %273, %279 : vector<2x64xf32>
    %c0_128 = arith.constant 0 : index
    %c5_129 = arith.constant 5 : index
    %c0_130 = arith.constant 0 : index
    %281 = vector.load %arg14[%c0_128, %c5_129, %c0_130] : memref<2x16x512xf32, #tpu.memory_space<vmem>>, vector<2x1x256xf32>
    %282 = vector.shape_cast %281 : vector<2x1x256xf32> to vector<2x256xf32>
    %cst_131 = arith.constant dense<0.000000e+00> : vector<2x256xf32>
    %283 = tpu.matmul %280, %178, %cst_131 {dimension_numbers = #tpu.dot_dimension_numbers<[1], [0], [0], [1], [0, 0, 1, 1], [], []>} : vector<2x64xf32>, vector<64x256xf32>, vector<2x256xf32> -> vector<2x256xf32>
    %284 = arith.addf %282, %283 : vector<2x256xf32>
    %285 = vector.extract_strided_slice %284 {offsets = [0, 0], sizes = [2, 192], strides = [1, 1]} : vector<2x256xf32> to vector<2x192xf32>
    %286 = arith.negf %285 : vector<2x192xf32>
    %287 = math.exp %286 : vector<2x192xf32>
    %cst_132 = arith.constant 1.000000e+00 : f32
    %288 = vector.broadcast %cst_132 : f32 to vector<2x192xf32>
    %289 = arith.addf %288, %287 : vector<2x192xf32>
    %290 = arith.divf %288, %289 : vector<2x192xf32>
    %291 = vector.extract_strided_slice %290 {offsets = [0, 0], sizes = [2, 64], strides = [1, 1]} : vector<2x192xf32> to vector<2x64xf32>
    %292 = vector.extract_strided_slice %290 {offsets = [0, 64], sizes = [2, 64], strides = [1, 1]} : vector<2x192xf32> to vector<2x64xf32>
    %293 = vector.extract_strided_slice %290 {offsets = [0, 128], sizes = [2, 64], strides = [1, 1]} : vector<2x192xf32> to vector<2x64xf32>
    %294 = vector.extract_strided_slice %284 {offsets = [0, 192], sizes = [2, 64], strides = [1, 1]} : vector<2x256xf32> to vector<2x64xf32>
    %295 = math.tanh %294 : vector<2x64xf32>
    %296 = arith.mulf %292, %278 : vector<2x64xf32>
    %297 = arith.mulf %291, %295 : vector<2x64xf32>
    %298 = arith.addf %296, %297 : vector<2x64xf32>
    %299 = math.tanh %298 : vector<2x64xf32>
    %300 = arith.mulf %293, %299 : vector<2x64xf32>
    %c0_133 = arith.constant 0 : index
    %c6 = arith.constant 6 : index
    %c0_134 = arith.constant 0 : index
    %301 = vector.load %arg14[%c0_133, %c6, %c0_134] : memref<2x16x512xf32, #tpu.memory_space<vmem>>, vector<2x1x256xf32>
    %302 = vector.shape_cast %301 : vector<2x1x256xf32> to vector<2x256xf32>
    %cst_135 = arith.constant dense<0.000000e+00> : vector<2x256xf32>
    %303 = tpu.matmul %300, %178, %cst_135 {dimension_numbers = #tpu.dot_dimension_numbers<[1], [0], [0], [1], [0, 0, 1, 1], [], []>} : vector<2x64xf32>, vector<64x256xf32>, vector<2x256xf32> -> vector<2x256xf32>
    %304 = arith.addf %302, %303 : vector<2x256xf32>
    %305 = vector.extract_strided_slice %304 {offsets = [0, 0], sizes = [2, 192], strides = [1, 1]} : vector<2x256xf32> to vector<2x192xf32>
    %306 = arith.negf %305 : vector<2x192xf32>
    %307 = math.exp %306 : vector<2x192xf32>
    %cst_136 = arith.constant 1.000000e+00 : f32
    %308 = vector.broadcast %cst_136 : f32 to vector<2x192xf32>
    %309 = arith.addf %308, %307 : vector<2x192xf32>
    %310 = arith.divf %308, %309 : vector<2x192xf32>
    %311 = vector.extract_strided_slice %310 {offsets = [0, 0], sizes = [2, 64], strides = [1, 1]} : vector<2x192xf32> to vector<2x64xf32>
    %312 = vector.extract_strided_slice %310 {offsets = [0, 64], sizes = [2, 64], strides = [1, 1]} : vector<2x192xf32> to vector<2x64xf32>
    %313 = vector.extract_strided_slice %310 {offsets = [0, 128], sizes = [2, 64], strides = [1, 1]} : vector<2x192xf32> to vector<2x64xf32>
    %314 = vector.extract_strided_slice %304 {offsets = [0, 192], sizes = [2, 64], strides = [1, 1]} : vector<2x256xf32> to vector<2x64xf32>
    %315 = math.tanh %314 : vector<2x64xf32>
    %316 = arith.mulf %312, %298 : vector<2x64xf32>
    %317 = arith.mulf %311, %315 : vector<2x64xf32>
    %318 = arith.addf %316, %317 : vector<2x64xf32>
    %319 = math.tanh %318 : vector<2x64xf32>
    %320 = arith.mulf %313, %319 : vector<2x64xf32>
    %c0_137 = arith.constant 0 : index
    %c7 = arith.constant 7 : index
    %c0_138 = arith.constant 0 : index
    %321 = vector.load %arg14[%c0_137, %c7, %c0_138] : memref<2x16x512xf32, #tpu.memory_space<vmem>>, vector<2x1x256xf32>
    %322 = vector.shape_cast %321 : vector<2x1x256xf32> to vector<2x256xf32>
    %cst_139 = arith.constant dense<0.000000e+00> : vector<2x256xf32>
    %323 = tpu.matmul %320, %178, %cst_139 {dimension_numbers = #tpu.dot_dimension_numbers<[1], [0], [0], [1], [0, 0, 1, 1], [], []>} : vector<2x64xf32>, vector<64x256xf32>, vector<2x256xf32> -> vector<2x256xf32>
    %324 = arith.addf %322, %323 : vector<2x256xf32>
    %325 = vector.extract_strided_slice %324 {offsets = [0, 0], sizes = [2, 192], strides = [1, 1]} : vector<2x256xf32> to vector<2x192xf32>
    %326 = arith.negf %325 : vector<2x192xf32>
    %327 = math.exp %326 : vector<2x192xf32>
    %cst_140 = arith.constant 1.000000e+00 : f32
    %328 = vector.broadcast %cst_140 : f32 to vector<2x192xf32>
    %329 = arith.addf %328, %327 : vector<2x192xf32>
    %330 = arith.divf %328, %329 : vector<2x192xf32>
    %331 = vector.extract_strided_slice %330 {offsets = [0, 0], sizes = [2, 64], strides = [1, 1]} : vector<2x192xf32> to vector<2x64xf32>
    %332 = vector.extract_strided_slice %330 {offsets = [0, 64], sizes = [2, 64], strides = [1, 1]} : vector<2x192xf32> to vector<2x64xf32>
    %333 = vector.extract_strided_slice %330 {offsets = [0, 128], sizes = [2, 64], strides = [1, 1]} : vector<2x192xf32> to vector<2x64xf32>
    %334 = vector.extract_strided_slice %324 {offsets = [0, 192], sizes = [2, 64], strides = [1, 1]} : vector<2x256xf32> to vector<2x64xf32>
    %335 = math.tanh %334 : vector<2x64xf32>
    %336 = arith.mulf %332, %318 : vector<2x64xf32>
    %337 = arith.mulf %331, %335 : vector<2x64xf32>
    %338 = arith.addf %336, %337 : vector<2x64xf32>
    %339 = math.tanh %338 : vector<2x64xf32>
    %340 = arith.mulf %333, %339 : vector<2x64xf32>
    %c0_141 = arith.constant 0 : index
    %c8 = arith.constant 8 : index
    %c0_142 = arith.constant 0 : index
    %341 = vector.load %arg14[%c0_141, %c8, %c0_142] : memref<2x16x512xf32, #tpu.memory_space<vmem>>, vector<2x1x256xf32>
    %342 = vector.shape_cast %341 : vector<2x1x256xf32> to vector<2x256xf32>
    %cst_143 = arith.constant dense<0.000000e+00> : vector<2x256xf32>
    %343 = tpu.matmul %340, %178, %cst_143 {dimension_numbers = #tpu.dot_dimension_numbers<[1], [0], [0], [1], [0, 0, 1, 1], [], []>} : vector<2x64xf32>, vector<64x256xf32>, vector<2x256xf32> -> vector<2x256xf32>
    %344 = arith.addf %342, %343 : vector<2x256xf32>
    %345 = vector.extract_strided_slice %344 {offsets = [0, 0], sizes = [2, 192], strides = [1, 1]} : vector<2x256xf32> to vector<2x192xf32>
    %346 = arith.negf %345 : vector<2x192xf32>
    %347 = math.exp %346 : vector<2x192xf32>
    %cst_144 = arith.constant 1.000000e+00 : f32
    %348 = vector.broadcast %cst_144 : f32 to vector<2x192xf32>
    %349 = arith.addf %348, %347 : vector<2x192xf32>
    %350 = arith.divf %348, %349 : vector<2x192xf32>
    %351 = vector.extract_strided_slice %350 {offsets = [0, 0], sizes = [2, 64], strides = [1, 1]} : vector<2x192xf32> to vector<2x64xf32>
    %352 = vector.extract_strided_slice %350 {offsets = [0, 64], sizes = [2, 64], strides = [1, 1]} : vector<2x192xf32> to vector<2x64xf32>
    %353 = vector.extract_strided_slice %350 {offsets = [0, 128], sizes = [2, 64], strides = [1, 1]} : vector<2x192xf32> to vector<2x64xf32>
    %354 = vector.extract_strided_slice %344 {offsets = [0, 192], sizes = [2, 64], strides = [1, 1]} : vector<2x256xf32> to vector<2x64xf32>
    %355 = math.tanh %354 : vector<2x64xf32>
    %356 = arith.mulf %352, %338 : vector<2x64xf32>
    %357 = arith.mulf %351, %355 : vector<2x64xf32>
    %358 = arith.addf %356, %357 : vector<2x64xf32>
    %359 = math.tanh %358 : vector<2x64xf32>
    %360 = arith.mulf %353, %359 : vector<2x64xf32>
    %c0_145 = arith.constant 0 : index
    %c9 = arith.constant 9 : index
    %c0_146 = arith.constant 0 : index
    %361 = vector.load %arg14[%c0_145, %c9, %c0_146] : memref<2x16x512xf32, #tpu.memory_space<vmem>>, vector<2x1x256xf32>
    %362 = vector.shape_cast %361 : vector<2x1x256xf32> to vector<2x256xf32>
    %cst_147 = arith.constant dense<0.000000e+00> : vector<2x256xf32>
    %363 = tpu.matmul %360, %178, %cst_147 {dimension_numbers = #tpu.dot_dimension_numbers<[1], [0], [0], [1], [0, 0, 1, 1], [], []>} : vector<2x64xf32>, vector<64x256xf32>, vector<2x256xf32> -> vector<2x256xf32>
    %364 = arith.addf %362, %363 : vector<2x256xf32>
    %365 = vector.extract_strided_slice %364 {offsets = [0, 0], sizes = [2, 192], strides = [1, 1]} : vector<2x256xf32> to vector<2x192xf32>
    %366 = arith.negf %365 : vector<2x192xf32>
    %367 = math.exp %366 : vector<2x192xf32>
    %cst_148 = arith.constant 1.000000e+00 : f32
    %368 = vector.broadcast %cst_148 : f32 to vector<2x192xf32>
    %369 = arith.addf %368, %367 : vector<2x192xf32>
    %370 = arith.divf %368, %369 : vector<2x192xf32>
    %371 = vector.extract_strided_slice %370 {offsets = [0, 0], sizes = [2, 64], strides = [1, 1]} : vector<2x192xf32> to vector<2x64xf32>
    %372 = vector.extract_strided_slice %370 {offsets = [0, 64], sizes = [2, 64], strides = [1, 1]} : vector<2x192xf32> to vector<2x64xf32>
    %373 = vector.extract_strided_slice %370 {offsets = [0, 128], sizes = [2, 64], strides = [1, 1]} : vector<2x192xf32> to vector<2x64xf32>
    %374 = vector.extract_strided_slice %364 {offsets = [0, 192], sizes = [2, 64], strides = [1, 1]} : vector<2x256xf32> to vector<2x64xf32>
    %375 = math.tanh %374 : vector<2x64xf32>
    %376 = arith.mulf %372, %358 : vector<2x64xf32>
    %377 = arith.mulf %371, %375 : vector<2x64xf32>
    %378 = arith.addf %376, %377 : vector<2x64xf32>
    %379 = math.tanh %378 : vector<2x64xf32>
    %380 = arith.mulf %373, %379 : vector<2x64xf32>
    %c0_149 = arith.constant 0 : index
    %c10 = arith.constant 10 : index
    %c0_150 = arith.constant 0 : index
    %381 = vector.load %arg14[%c0_149, %c10, %c0_150] : memref<2x16x512xf32, #tpu.memory_space<vmem>>, vector<2x1x256xf32>
    %382 = vector.shape_cast %381 : vector<2x1x256xf32> to vector<2x256xf32>
    %cst_151 = arith.constant dense<0.000000e+00> : vector<2x256xf32>
    %383 = tpu.matmul %380, %178, %cst_151 {dimension_numbers = #tpu.dot_dimension_numbers<[1], [0], [0], [1], [0, 0, 1, 1], [], []>} : vector<2x64xf32>, vector<64x256xf32>, vector<2x256xf32> -> vector<2x256xf32>
    %384 = arith.addf %382, %383 : vector<2x256xf32>
    %385 = vector.extract_strided_slice %384 {offsets = [0, 0], sizes = [2, 192], strides = [1, 1]} : vector<2x256xf32> to vector<2x192xf32>
    %386 = arith.negf %385 : vector<2x192xf32>
    %387 = math.exp %386 : vector<2x192xf32>
    %cst_152 = arith.constant 1.000000e+00 : f32
    %388 = vector.broadcast %cst_152 : f32 to vector<2x192xf32>
    %389 = arith.addf %388, %387 : vector<2x192xf32>
    %390 = arith.divf %388, %389 : vector<2x192xf32>
    %391 = vector.extract_strided_slice %390 {offsets = [0, 0], sizes = [2, 64], strides = [1, 1]} : vector<2x192xf32> to vector<2x64xf32>
    %392 = vector.extract_strided_slice %390 {offsets = [0, 64], sizes = [2, 64], strides = [1, 1]} : vector<2x192xf32> to vector<2x64xf32>
    %393 = vector.extract_strided_slice %390 {offsets = [0, 128], sizes = [2, 64], strides = [1, 1]} : vector<2x192xf32> to vector<2x64xf32>
    %394 = vector.extract_strided_slice %384 {offsets = [0, 192], sizes = [2, 64], strides = [1, 1]} : vector<2x256xf32> to vector<2x64xf32>
    %395 = math.tanh %394 : vector<2x64xf32>
    %396 = arith.mulf %392, %378 : vector<2x64xf32>
    %397 = arith.mulf %391, %395 : vector<2x64xf32>
    %398 = arith.addf %396, %397 : vector<2x64xf32>
    %399 = math.tanh %398 : vector<2x64xf32>
    %400 = arith.mulf %393, %399 : vector<2x64xf32>
    %c0_153 = arith.constant 0 : index
    %c11 = arith.constant 11 : index
    %c0_154 = arith.constant 0 : index
    %401 = vector.load %arg14[%c0_153, %c11, %c0_154] : memref<2x16x512xf32, #tpu.memory_space<vmem>>, vector<2x1x256xf32>
    %402 = vector.shape_cast %401 : vector<2x1x256xf32> to vector<2x256xf32>
    %cst_155 = arith.constant dense<0.000000e+00> : vector<2x256xf32>
    %403 = tpu.matmul %400, %178, %cst_155 {dimension_numbers = #tpu.dot_dimension_numbers<[1], [0], [0], [1], [0, 0, 1, 1], [], []>} : vector<2x64xf32>, vector<64x256xf32>, vector<2x256xf32> -> vector<2x256xf32>
    %404 = arith.addf %402, %403 : vector<2x256xf32>
    %405 = vector.extract_strided_slice %404 {offsets = [0, 0], sizes = [2, 192], strides = [1, 1]} : vector<2x256xf32> to vector<2x192xf32>
    %406 = arith.negf %405 : vector<2x192xf32>
    %407 = math.exp %406 : vector<2x192xf32>
    %cst_156 = arith.constant 1.000000e+00 : f32
    %408 = vector.broadcast %cst_156 : f32 to vector<2x192xf32>
    %409 = arith.addf %408, %407 : vector<2x192xf32>
    %410 = arith.divf %408, %409 : vector<2x192xf32>
    %411 = vector.extract_strided_slice %410 {offsets = [0, 0], sizes = [2, 64], strides = [1, 1]} : vector<2x192xf32> to vector<2x64xf32>
    %412 = vector.extract_strided_slice %410 {offsets = [0, 64], sizes = [2, 64], strides = [1, 1]} : vector<2x192xf32> to vector<2x64xf32>
    %413 = vector.extract_strided_slice %410 {offsets = [0, 128], sizes = [2, 64], strides = [1, 1]} : vector<2x192xf32> to vector<2x64xf32>
    %414 = vector.extract_strided_slice %404 {offsets = [0, 192], sizes = [2, 64], strides = [1, 1]} : vector<2x256xf32> to vector<2x64xf32>
    %415 = math.tanh %414 : vector<2x64xf32>
    %416 = arith.mulf %412, %398 : vector<2x64xf32>
    %417 = arith.mulf %411, %415 : vector<2x64xf32>
    %418 = arith.addf %416, %417 : vector<2x64xf32>
    %419 = math.tanh %418 : vector<2x64xf32>
    %420 = arith.mulf %413, %419 : vector<2x64xf32>
    %c0_157 = arith.constant 0 : index
    %c12 = arith.constant 12 : index
    %c0_158 = arith.constant 0 : index
    %421 = vector.load %arg14[%c0_157, %c12, %c0_158] : memref<2x16x512xf32, #tpu.memory_space<vmem>>, vector<2x1x256xf32>
    %422 = vector.shape_cast %421 : vector<2x1x256xf32> to vector<2x256xf32>
    %cst_159 = arith.constant dense<0.000000e+00> : vector<2x256xf32>
    %423 = tpu.matmul %420, %178, %cst_159 {dimension_numbers = #tpu.dot_dimension_numbers<[1], [0], [0], [1], [0, 0, 1, 1], [], []>} : vector<2x64xf32>, vector<64x256xf32>, vector<2x256xf32> -> vector<2x256xf32>
    %424 = arith.addf %422, %423 : vector<2x256xf32>
    %425 = vector.extract_strided_slice %424 {offsets = [0, 0], sizes = [2, 192], strides = [1, 1]} : vector<2x256xf32> to vector<2x192xf32>
    %426 = arith.negf %425 : vector<2x192xf32>
    %427 = math.exp %426 : vector<2x192xf32>
    %cst_160 = arith.constant 1.000000e+00 : f32
    %428 = vector.broadcast %cst_160 : f32 to vector<2x192xf32>
    %429 = arith.addf %428, %427 : vector<2x192xf32>
    %430 = arith.divf %428, %429 : vector<2x192xf32>
    %431 = vector.extract_strided_slice %430 {offsets = [0, 0], sizes = [2, 64], strides = [1, 1]} : vector<2x192xf32> to vector<2x64xf32>
    %432 = vector.extract_strided_slice %430 {offsets = [0, 64], sizes = [2, 64], strides = [1, 1]} : vector<2x192xf32> to vector<2x64xf32>
    %433 = vector.extract_strided_slice %430 {offsets = [0, 128], sizes = [2, 64], strides = [1, 1]} : vector<2x192xf32> to vector<2x64xf32>
    %434 = vector.extract_strided_slice %424 {offsets = [0, 192], sizes = [2, 64], strides = [1, 1]} : vector<2x256xf32> to vector<2x64xf32>
    %435 = math.tanh %434 : vector<2x64xf32>
    %436 = arith.mulf %432, %418 : vector<2x64xf32>
    %437 = arith.mulf %431, %435 : vector<2x64xf32>
    %438 = arith.addf %436, %437 : vector<2x64xf32>
    %439 = math.tanh %438 : vector<2x64xf32>
    %440 = arith.mulf %433, %439 : vector<2x64xf32>
    %c0_161 = arith.constant 0 : index
    %c13 = arith.constant 13 : index
    %c0_162 = arith.constant 0 : index
    %441 = vector.load %arg14[%c0_161, %c13, %c0_162] : memref<2x16x512xf32, #tpu.memory_space<vmem>>, vector<2x1x256xf32>
    %442 = vector.shape_cast %441 : vector<2x1x256xf32> to vector<2x256xf32>
    %cst_163 = arith.constant dense<0.000000e+00> : vector<2x256xf32>
    %443 = tpu.matmul %440, %178, %cst_163 {dimension_numbers = #tpu.dot_dimension_numbers<[1], [0], [0], [1], [0, 0, 1, 1], [], []>} : vector<2x64xf32>, vector<64x256xf32>, vector<2x256xf32> -> vector<2x256xf32>
    %444 = arith.addf %442, %443 : vector<2x256xf32>
    %445 = vector.extract_strided_slice %444 {offsets = [0, 0], sizes = [2, 192], strides = [1, 1]} : vector<2x256xf32> to vector<2x192xf32>
    %446 = arith.negf %445 : vector<2x192xf32>
    %447 = math.exp %446 : vector<2x192xf32>
    %cst_164 = arith.constant 1.000000e+00 : f32
    %448 = vector.broadcast %cst_164 : f32 to vector<2x192xf32>
    %449 = arith.addf %448, %447 : vector<2x192xf32>
    %450 = arith.divf %448, %449 : vector<2x192xf32>
    %451 = vector.extract_strided_slice %450 {offsets = [0, 0], sizes = [2, 64], strides = [1, 1]} : vector<2x192xf32> to vector<2x64xf32>
    %452 = vector.extract_strided_slice %450 {offsets = [0, 64], sizes = [2, 64], strides = [1, 1]} : vector<2x192xf32> to vector<2x64xf32>
    %453 = vector.extract_strided_slice %450 {offsets = [0, 128], sizes = [2, 64], strides = [1, 1]} : vector<2x192xf32> to vector<2x64xf32>
    %454 = vector.extract_strided_slice %444 {offsets = [0, 192], sizes = [2, 64], strides = [1, 1]} : vector<2x256xf32> to vector<2x64xf32>
    %455 = math.tanh %454 : vector<2x64xf32>
    %456 = arith.mulf %452, %438 : vector<2x64xf32>
    %457 = arith.mulf %451, %455 : vector<2x64xf32>
    %458 = arith.addf %456, %457 : vector<2x64xf32>
    %459 = math.tanh %458 : vector<2x64xf32>
    %460 = arith.mulf %453, %459 : vector<2x64xf32>
    %c0_165 = arith.constant 0 : index
    %c13_166 = arith.constant 13 : index
    %c256 = arith.constant 256 : index
    %461 = vector.load %arg14[%c0_165, %c13_166, %c256] : memref<2x16x512xf32, #tpu.memory_space<vmem>>, vector<2x1x256xf32>
    %462 = vector.shape_cast %461 : vector<2x1x256xf32> to vector<2x256xf32>
    %cst_167 = arith.constant 0.000000e+00 : f32
    %463 = vector.broadcast %cst_167 : f32 to vector<2x64xf32>
    %464 = vector.extract_strided_slice %462 {offsets = [0, 0], sizes = [2, 192], strides = [1, 1]} : vector<2x256xf32> to vector<2x192xf32>
    %465 = arith.negf %464 : vector<2x192xf32>
    %466 = math.exp %465 : vector<2x192xf32>
    %cst_168 = arith.constant 1.000000e+00 : f32
    %467 = vector.broadcast %cst_168 : f32 to vector<2x192xf32>
    %468 = arith.addf %467, %466 : vector<2x192xf32>
    %469 = arith.divf %467, %468 : vector<2x192xf32>
    %470 = vector.extract_strided_slice %469 {offsets = [0, 0], sizes = [2, 64], strides = [1, 1]} : vector<2x192xf32> to vector<2x64xf32>
    %471 = vector.extract_strided_slice %469 {offsets = [0, 64], sizes = [2, 64], strides = [1, 1]} : vector<2x192xf32> to vector<2x64xf32>
    %472 = vector.extract_strided_slice %469 {offsets = [0, 128], sizes = [2, 64], strides = [1, 1]} : vector<2x192xf32> to vector<2x64xf32>
    %473 = vector.extract_strided_slice %462 {offsets = [0, 192], sizes = [2, 64], strides = [1, 1]} : vector<2x256xf32> to vector<2x64xf32>
    %474 = math.tanh %473 : vector<2x64xf32>
    %475 = arith.mulf %471, %463 : vector<2x64xf32>
    %476 = arith.mulf %470, %474 : vector<2x64xf32>
    %477 = arith.addf %475, %476 : vector<2x64xf32>
    %478 = math.tanh %477 : vector<2x64xf32>
    %479 = arith.mulf %472, %478 : vector<2x64xf32>
    %c0_169 = arith.constant 0 : index
    %c0_170 = arith.constant 0 : index
    %c0_171 = arith.constant 0 : index
    %480 = vector.load %arg8[%c0_169, %c0_170, %c0_171] : memref<2x64x64xf32, #tpu.memory_space<vmem>>, vector<1x64x64xf32>
    %481 = vector.shape_cast %480 : vector<1x64x64xf32> to vector<64x64xf32>
    %cst_172 = arith.constant dense<0.000000e+00> : vector<2x64xf32>
    %482 = tpu.matmul %460, %481, %cst_172 {dimension_numbers = #tpu.dot_dimension_numbers<[1], [0], [0], [1], [0, 0, 1, 1], [], []>} : vector<2x64xf32>, vector<64x64xf32>, vector<2x64xf32> -> vector<2x64xf32>
    %c1_173 = arith.constant 1 : index
    %c0_174 = arith.constant 0 : index
    %c0_175 = arith.constant 0 : index
    %483 = vector.load %arg8[%c1_173, %c0_174, %c0_175] : memref<2x64x64xf32, #tpu.memory_space<vmem>>, vector<1x64x64xf32>
    %484 = vector.shape_cast %483 : vector<1x64x64xf32> to vector<64x64xf32>
    %cst_176 = arith.constant dense<0.000000e+00> : vector<2x64xf32>
    %485 = tpu.matmul %479, %484, %cst_176 {dimension_numbers = #tpu.dot_dimension_numbers<[1], [0], [0], [1], [0, 0, 1, 1], [], []>} : vector<2x64xf32>, vector<64x64xf32>, vector<2x64xf32> -> vector<2x64xf32>
    %486 = arith.addf %482, %485 : vector<2x64xf32>
    %c1_177 = arith.constant 1 : index
    %c0_178 = arith.constant 0 : index
    %487 = vector.load %arg7[%c1_177, %c0_178] : memref<8x512xf32, #tpu.memory_space<vmem>>, vector<1x64xf32>
    %488 = vector.broadcast %487 : vector<1x64xf32> to vector<2x64xf32>
    %489 = arith.addf %486, %488 : vector<2x64xf32>
    %cst_179 = arith.constant 0.000000e+00 : f32
    %490 = vector.broadcast %cst_179 : f32 to vector<2x64xf32>
    %491 = arith.maximumf %489, %490 : vector<2x64xf32>
    %c0_180 = arith.constant 0 : index
    %c0_181 = arith.constant 0 : index
    %492 = vector.load %arg9[%c0_180, %c0_181] : memref<96x32xf32, #tpu.memory_space<vmem>>, vector<64x32xf32>
    %cst_182 = arith.constant dense<0.000000e+00> : vector<2x32xf32>
    %493 = tpu.matmul %491, %492, %cst_182 {dimension_numbers = #tpu.dot_dimension_numbers<[1], [0], [0], [1], [0, 0, 1, 1], [], []>} : vector<2x64xf32>, vector<64x32xf32>, vector<2x32xf32> -> vector<2x32xf32>
    %c2_183 = arith.constant 2 : index
    %c0_184 = arith.constant 0 : index
    %494 = vector.load %arg7[%c2_183, %c0_184] : memref<8x512xf32, #tpu.memory_space<vmem>>, vector<1x32xf32>
    %495 = vector.broadcast %494 : vector<1x32xf32> to vector<2x32xf32>
    %496 = arith.addf %493, %495 : vector<2x32xf32>
    %cst_185 = arith.constant 0.000000e+00 : f32
    %497 = vector.broadcast %cst_185 : f32 to vector<2x32xf32>
    %498 = arith.maximumf %496, %497 : vector<2x32xf32>
    %c64_186 = arith.constant 64 : index
    %c0_187 = arith.constant 0 : index
    %499 = vector.load %arg9[%c64_186, %c0_187] : memref<96x32xf32, #tpu.memory_space<vmem>>, vector<32x2xf32>
    %cst_188 = arith.constant dense<0.000000e+00> : vector<2x2xf32>
    %500 = tpu.matmul %498, %499, %cst_188 {dimension_numbers = #tpu.dot_dimension_numbers<[1], [0], [0], [1], [0, 0, 1, 1], [], []>} : vector<2x32xf32>, vector<32x2xf32>, vector<2x2xf32> -> vector<2x2xf32>
    %c3_189 = arith.constant 3 : index
    %c0_190 = arith.constant 0 : index
    %501 = vector.load %arg7[%c3_189, %c0_190] : memref<8x512xf32, #tpu.memory_space<vmem>>, vector<1x2xf32>
    %502 = vector.broadcast %501 : vector<1x2xf32> to vector<2x2xf32>
    %503 = arith.addf %500, %502 : vector<2x2xf32>
    %c0_191 = arith.constant 0 : index
    %c0_192 = arith.constant 0 : index
    %504 = vector.load %arg10[%c0_191, %c0_192] : memref<2x2xf32, #tpu.memory_space<vmem>>, vector<2x2xf32>
    tpu.vector_store %arg10[%c0_191, %c0_192], %503 {strides = array<i32>} : memref<2x2xf32, #tpu.memory_space<vmem>>, vector<2x2xf32>,
    return
  }
  func.func @transform_0(%arg0: i32) -> (i32, i32, i32) {
    %c0_i32 = arith.constant 0 : i32
    %c0_i32_0 = arith.constant 0 : i32
    %c0_i32_1 = arith.constant 0 : i32
    return %arg0, %c0_i32, %c0_i32_0 : i32, i32, i32
  }
  func.func @transform_1(%arg0: i32) -> (i32, i32) {
    %c0_i32 = arith.constant 0 : i32
    %c0_i32_0 = arith.constant 0 : i32
    %c0_i32_1 = arith.constant 0 : i32
    return %c0_i32, %c0_i32_0 : i32, i32
  }
  func.func @transform_2(%arg0: i32) -> (i32, i32) {
    %c0_i32 = arith.constant 0 : i32
    %c0_i32_0 = arith.constant 0 : i32
    %c0_i32_1 = arith.constant 0 : i32
    return %c0_i32, %c0_i32_0 : i32, i32
  }
  func.func @transform_3(%arg0: i32) -> (i32, i32) {
    %c0_i32 = arith.constant 0 : i32
    %c0_i32_0 = arith.constant 0 : i32
    %c0_i32_1 = arith.constant 0 : i32
    return %c0_i32, %c0_i32_0 : i32, i32
  }
  func.func @transform_4(%arg0: i32) -> (i32, i32) {
    %c0_i32 = arith.constant 0 : i32
    %c0_i32_0 = arith.constant 0 : i32
    %c0_i32_1 = arith.constant 0 : i32
    return %c0_i32, %c0_i32_0 : i32, i32
  }
  func.func @transform_5(%arg0: i32) -> (i32, i32) {
    %c0_i32 = arith.constant 0 : i32
    %c0_i32_0 = arith.constant 0 : i32
    %c0_i32_1 = arith.constant 0 : i32
    return %c0_i32, %c0_i32_0 : i32, i32
  }
  func.func @transform_6(%arg0: i32) -> (i32, i32) {
    %c0_i32 = arith.constant 0 : i32
    %c0_i32_0 = arith.constant 0 : i32
    %c0_i32_1 = arith.constant 0 : i32
    return %c0_i32, %c0_i32_0 : i32, i32
  }
  func.func @transform_7(%arg0: i32) -> (i32, i32, i32) {
    %c0_i32 = arith.constant 0 : i32
    %c0_i32_0 = arith.constant 0 : i32
    %c0_i32_1 = arith.constant 0 : i32
    %c0_i32_2 = arith.constant 0 : i32
    return %c0_i32, %c0_i32_0, %c0_i32_1 : i32, i32, i32
  }
  func.func @transform_8(%arg0: i32) -> (i32, i32) {
    %c0_i32 = arith.constant 0 : i32
    %c0_i32_0 = arith.constant 0 : i32
    %c0_i32_1 = arith.constant 0 : i32
    return %c0_i32, %c0_i32_0 : i32, i32
  }
  func.func @transform_9(%arg0: i32) -> (i32, i32) {
    %c0_i32 = arith.constant 0 : i32
    %c0_i32_0 = arith.constant 0 : i32
    return %arg0, %c0_i32 : i32, i32
  }
}

</mosaic_0001>

<bundles_post_ra>
// kernel: stress_cnn_bilstm_forward.1
= control target key start
LH: loop header
LB: loop body
LE: loop exit
PB: predicated region body
PF: predicated region fallthrough
CT: control target
= control target key end

     0   :  { %14 = vsyncpa [#allocation7], 0  ;;  %s4907_s0 = inlined_call_operand.vmem [shape: f32[2,16,4], index: 0, kind: input, shape index: {}]   ;;  %s4908_s1 = inlined_call_operand.vmem [shape: f32[8,64], index: 1, kind: input, shape index: {}]   ;;  %s4909_s2 = inlined_call_operand.hbm [shape: f32[192,128], index: 2, kind: input, shape index: {}]   ;;  %s4910_s3 = inlined_call_operand.hbm [shape: f32[8,128], index: 3, kind: input, shape index: {}]   ;;  %s4911_s4 = inlined_call_operand.hbm [shape: f32[128,512], index: 4, kind: input, shape index: {}]   ;;  %s4912_s5 = inlined_call_operand.vmem [shape: f32[64,256], index: 5, kind: input, shape index: {}]   ;;  %s4913_s6 = inlined_call_operand.hbm [shape: f32[8,512], index: 6, kind: input, shape index: {}]   ;;  %s4914_s7 = inlined_call_operand.hbm [shape: f32[2,64,64], index: 7, kind: input, shape index: {}]   ;;  %s4915_s8 = inlined_call_operand.vmem [shape: f32[96,32], index: 8, kind: input, shape index: {}]   ;;  %s4916_s9 = inlined_call_operand.hbm [shape: f32[2,2], index: 9, kind: output, shape index: {}]  }
   0x1   :  { %15 = vsyncpa [#allocation10], 0 }
   0x2   :  { %16 = vsyncpa [#allocation13], 0  ;;  %s40_s11 = sshll.u32 %s4910_s3, 4  ;;  %s41_s11 = int_to_ptr.hbm [resolvable:$true] %s40_s11 }
   0x3   :  { %17 = vsyncpa [#allocation8], 0  ;;  %s3745_s12 = smov [#allocation9]   ;;  %s66_s16 = sshll.u32 %s4913_s6, 4  ;;  %s67_s16 = int_to_ptr.hbm [resolvable:$true] %s66_s16 }
   0x4   :  { %s42_s13 = sshll.u32 %s3745_s12, 4  ;;  %s3746_s17 = smov [#allocation12]   ;;  %s43_s13 = int_to_ptr.vmem [resolvable:$true] %s42_s13 }
   0x5   :  { %45 = dma.hbm_to_vmem [thread:$0]  %s41_s11, 128, %s43_s13, [#allocation10]  }
   0x6   :  { %s68_s18 = sshll.u32 %s3746_s17, 4  ;;  %s26_s21 = sshll.u32 %s4909_s2, 4  ;;  %s69_s18 = int_to_ptr.vmem [resolvable:$true] %s68_s18  ;;  %s27_s21 = int_to_ptr.hbm [resolvable:$true] %s26_s21 }
   0x7   :  { %71 = dma.hbm_to_vmem [thread:$0]  %s67_s16, 512, %s69_s18, [#allocation13]  }
   0x8   :  { %s3747_s3 = smov [#allocation6]   ;;  %s50_s25 = sshll.u32 %s4911_s4, 4  ;;  %s51_s25 = int_to_ptr.hbm [resolvable:$true] %s50_s25 }
   0x9   :  { %s28_s22 = sshll.u32 %s3747_s3, 4  ;;  %s3748_s26 = smov 128   ;;  %s29_s22 = int_to_ptr.vmem [resolvable:$true] %s28_s22 }
   0xa   :  { %s3749_s6 = smov 8   ;;  %s3750_s27 = smov [#allocation11]  }
   0xb   :  { %34 = dma.hbm_to_vmem [thread:$0]  %s27_s21, 3072, %s29_s22, [#allocation7], %s3748_s26, %s3748_s26, %s3749_s6  }
   0xc   :  { %s52_s28 = sshll.u32 %s3750_s27, 4  ;;  %s3751_s29 = smov 512   ;;  %s53_s28 = int_to_ptr.vmem [resolvable:$true] %s52_s28 }
   0xd   :  { %s3752_s30 = smov 32   ;;  %s76_s11 = sshll.u32 %s4914_s7, 4  ;;  %s77_s11 = int_to_ptr.hbm [resolvable:$true] %s76_s11 }
   0xe   :  { %58 = dma.hbm_to_vmem [thread:$0]  %s51_s25, 8192, %s53_s28, [#allocation10], %s3751_s29, %s3751_s29, %s3752_s30  }
   0xf   :  { %s3753_s12 = smov [#allocation14]  }
  0x10   :  { %s78_s13 = sshll.u32 %s3753_s12, 4  ;;  %s79_s13 = int_to_ptr.vmem [resolvable:$true] %s78_s13 }
  0x11   :  { %84 = dma.hbm_to_vmem [thread:$0]  %s77_s11, 2048, %s79_s13, [#allocation13], %s3748_s26, %s3748_s26, %s3749_s6  }
  0x12   :  { %3737 = dma.done.wait [#allocation7], 3072  }
  0x13   :  { %3738 = vsyncadd [#allocation7], 4294964224 }
  0x14   :  { %3739 = dma.done.wait [#allocation10], 8320  }
  0x15   :  { %3740 = vsyncadd [#allocation10], 4294958976 }
  0x16   :  { %3741 = dma.done.wait [#allocation13], 2560  }
  0x17   :  { %3742 = vsyncadd [#allocation13], 4294964736  ;;  %v3754_v0 = vmov 3   ;;  %v3755_v1 = vmov 0   ;;  %v3756_v2 = vmov 2   ;;  %v119_v3 = vld [vmem:[%s4907_s0 + $0x1] sm:$0xff] }
  0x18   :  { %3282 = vset.pattern.permute.xlu0 %v3754_v0  ;;  %3284 = vset.pattern.permute.xlu1 %v3755_v1  ;;  %v113_v4 = vld [vmem:[%s4907_s0] sm:$0xff]  ;;  %v117_v5 = vld [vmem:[%s4907_s0 + $0x8] sm:$0x7f]  ;;  %v3757_v6 = vmov 1   ;;  %v115_v7 = vld [vmem:[%s4907_s0 + $0x10] sm:$0xff]  ;;  %v3758_v19 = vmov 0.0  }
  0x19   :  { %3286 = vset.pattern.permute.xlu2 %v3756_v2  ;;  %326 = vperm.xlu1 %3284, %v119_v3   ;;  %v120_v8 = vld [vmem:[%s4907_s0 + $0x9] sm:$0x7f]  ;;  %v121_v9 = vld [vmem:[%s4907_s0 + $0x11] sm:$0xff]  ;;  %v122_v11 = vld [vmem:[%s4907_s0 + $0x19] sm:$0x7f]  ;;  %440 = vst [vmem:[#allocation4 + $0x40] sm:$0xff] %v3758_v19 }
  0x1a   :  { %301 = vperm.xlu0 %3282, %v113_v4   ;;  %284 = vperm.xlu2 %3286, %v117_v5   ;;  %v118_v10 = vld [vmem:[%s4907_s0 + $0x18] sm:$0x7f]  ;;  %v114_v12 = vld [vmem:[%s4907_s0 + $0x8] sm:$0xff]  ;;  %v3874_v20 = vld [vmem:[%s4908_s1] ss:$0 sm:$0xff]  ;;  %vm273_vm0 = vcmask 523264  }
  0x1b   :  { %v116_v13 = vld [vmem:[%s4907_s0 + $0x18] sm:$0xff]  ;;  %v3879_v21 = vld [vmem:[%s4908_s1 + $0x1] ss:$0 sm:$0xff]  ;;  %432 = vst [vmem:[#allocation4] sm:$0xff] %v3758_v19  ;;  %v3897_v25 = vld [vmem:[%s4908_s1 + $0x2] ss:$0 sm:$0xff] }
  0x1c   :  { %433 = vst.msk [vmem:[#allocation4 + $0x8] sm:$0xff] %vm273_vm0, %v3758_v19  ;;  %v3906_v30 = vld [vmem:[%s4908_s1 + $0x3] ss:$0 sm:$0xff]  ;;  %v3920_v36 = vld [vmem:[%s4908_s1 + $0x4] ss:$0 sm:$0xff]  ;;  %vm429_vm1 = vcmask 516096  }
  0x1d   :  { %434 = vst [vmem:[#allocation4 + $0x10] sm:$0xff] %v3758_v19  ;;  %v3938_v45 = vld [vmem:[%s4908_s1 + $0x5] ss:$0 sm:$0xff]  ;;  %vm425_vm2 = vcmask 522240   ;;  %s3759_s1 = smov 64   ;;  %vm474_vm3 = vcmask 521216  }
  0x1e   :  { %435 = vst.msk [vmem:[#allocation4 + $0x18] sm:$0xff] %vm273_vm0, %v3758_v19  ;;  %vm467_vm4 = vcmask 1046528   ;;  %vm462_vm5 = vcmask 1048064   ;;  %vm485_vm6 = vcmask 1046016   ;;  %vm990_vm7 = vcmask 1040384   ;;  %s3760_s26 = smov [#allocation15]  }
  0x1f   :  { %436 = vst [vmem:[#allocation4 + $0x20] sm:$0xff] %v3758_v19  ;;  %vm992_vm8 = vcmask 1041409   ;;  %s3184_s6 = sshll.u32 %s3760_s26, 4  ;;  %s3186_s29 = sshll.u32 %s4916_s9, 4  ;;  %s3185_s6 = int_to_ptr.vmem [resolvable:$true] %s3184_s6  ;;  %s3187_s29 = int_to_ptr.hbm [resolvable:$true] %s3186_s29 }
  0x20   :  { %437 = vst.msk [vmem:[#allocation4 + $0x28] sm:$0xff] %vm273_vm0, %v3758_v19 }
  0x21   :  { %3285 = vset.pattern.permute.xlu1 %v3757_v6  ;;  %438 = vst [vmem:[#allocation4 + $0x30] sm:$0xff] %v3758_v19 }
  0x22   :  { %3283 = vset.pattern.permute.xlu0 %v3756_v2  ;;  %381 = vperm.xlu1 %3285, %v119_v3   ;;  %439 = vst.msk [vmem:[#allocation4 + $0x38] sm:$0xff] %vm273_vm0, %v3758_v19 }
  0x23   :  { %279 = vperm.xlu0 %3283, %v113_v4   ;;  %3287 = vset.pattern.permute.xlu2 %v3754_v0  ;;  %441 = vst.msk [vmem:[#allocation4 + $0x48] sm:$0xff] %vm273_vm0, %v3758_v19 }
  0x24   :  { %305 = vperm.xlu2 %3287, %v117_v5   ;;  %442 = vst [vmem:[#allocation4 + $0x50] sm:$0xff] %v3758_v19 }
  0x25   :  { %443 = vst.msk [vmem:[#allocation4 + $0x58] sm:$0xff] %vm273_vm0, %v3758_v19 }
  0x26   :  { %444 = vst [vmem:[#allocation4 + $0x60] sm:$0xff] %v3758_v19 }
  0x27   :  { %445 = vst.msk [vmem:[#allocation4 + $0x68] sm:$0xff] %vm273_vm0, %v3758_v19 }
  0x28   :  { %446 = vst [vmem:[#allocation4 + $0x70] sm:$0xff] %v3758_v19 }
  0x29   :  { %447 = vst.msk [vmem:[#allocation4 + $0x78] sm:$0xff] %vm273_vm0, %v3758_v19 }
  0x2a   :  { %3288 = vset.pattern.permute.xlu1 %v3755_v1  ;;  %430 = vst.msk [vmem:[#allocation3 + $0xf] sm:$0x1] %vm429_vm1, %v3758_v19 }
  0x2b   :  { %288 = vperm.xlu0 %3283, %v115_v7   ;;  %331 = vperm.xlu1 %3288, %v120_v8   ;;  %431 = vst.msk [vmem:[#allocation3 + $0x1f] sm:$0x1] %vm429_vm1, %v3758_v19 }
  0x2c   :  { %3289 = vset.pattern.permute.xlu2 %v3757_v6 }
  0x2d   :  { %385 = vperm.xlu2 %3289, %v120_v8  }
  0x33   :  { %3297 = vset.pattern.permute.xlu0 %v3757_v6  ;;  %3290 = vset.pattern.permute.xlu1 %v3754_v0 }
  0x34   :  { %149 = vperm.xlu0 %3297, %v113_v4   ;;  %309 = vperm.xlu1 %3290, %v115_v7  }
  0x35   :  { %3291 = vset.pattern.permute.xlu2 %v3755_v1 }
  0x36   :  { %336 = vperm.xlu2 %3291, %v121_v9  }
  0x3c   :  { %3298 = vset.pattern.permute.xlu0 %v3754_v0  ;;  %3292 = vset.pattern.permute.xlu1 %v3757_v6 }
  0x3d   :  { %313 = vperm.xlu0 %3298, %v118_v10   ;;  %389 = vperm.xlu1 %3292, %v121_v9  }
  0x3e   :  { %3293 = vset.pattern.permute.xlu2 %v3756_v2 }
  0x3f   :  { %293 = vperm.xlu2 %3293, %v118_v10  }
  0x45   :  { %234 = vperm.xlu0 %3298, %v114_v12   ;;  %3294 = vset.pattern.permute.xlu1 %v3755_v1 }
  0x46   :  { %341 = vperm.xlu1 %3294, %v122_v11  }
  0x47   :  { %3295 = vset.pattern.permute.xlu2 %v3757_v6 }
  0x48   :  { %393 = vperm.xlu2 %3295, %v122_v11  }
  0x4d   :  { %3307 = vset.pattern.permute.xlu0 %v3756_v2 }
  0x4e   :  { %182 = vperm.xlu0 %3307, %v115_v7   ;;  %125 = vperm.xlu1 %3294, %v113_v4  }
  0x50   :  { %3296 = vset.pattern.permute.xlu2 %v3755_v1 }
  0x51   :  { %130 = vperm.xlu2 %3296, %v114_v12  }
  0x56   :  { %3311 = vset.pattern.permute.xlu0 %v3757_v6  ;;  %3299 = vset.pattern.permute.xlu1 %v3757_v6 }
  0x57   :  { %153 = vperm.xlu1 %3299, %v114_v12  }
  0x59   :  { %3300 = vset.pattern.permute.xlu2 %v3756_v2 }
  0x5a   :  { %174 = vperm.xlu2 %3300, %v113_v4  }
  0x5f   :  { %3301 = vset.pattern.permute.xlu1 %v3756_v2 }
  0x60   :  { %178 = vperm.xlu1 %3301, %v114_v12  }
  0x62   :  { %3302 = vset.pattern.permute.xlu2 %v3754_v0 }
  0x63   :  { %230 = vperm.xlu2 %3302, %v113_v4  }
  0x68   :  { %3303 = vset.pattern.permute.xlu1 %v3755_v1 }
  0x69   :  { %135 = vperm.xlu1 %3303, %v115_v7  }
  0x6b   :  { %3304 = vset.pattern.permute.xlu2 %v3755_v1 }
  0x6c   :  { %140 = vperm.xlu2 %3304, %v116_v13  }
  0x71   :  { %3305 = vset.pattern.permute.xlu1 %v3757_v6 }
  0x72   :  { %157 = vperm.xlu1 %3305, %v115_v7  }
  0x74   :  { %v285_v14 = vpop.permute.xlu2 %284  ;;  %3306 = vset.pattern.permute.xlu2 %v3757_v6 }
  0x75   :  { %161 = vperm.xlu2 %3306, %v116_v13   ;;  %v297_v40 = vmul.f32 %v3874_v20, %v285_v14 }
  0x7a   :  { %3308 = vset.pattern.permute.xlu1 %v3756_v2 }
  0x7b   :  { %186 = vperm.xlu1 %3308, %v116_v13  }
  0x7d   :  { %3309 = vset.pattern.permute.xlu2 %v3754_v0 }
  0x7e   :  { %v306_v15 = vpop.permute.xlu2 %305  ;;  %238 = vperm.xlu2 %3309, %v115_v7  }
  0x7f   :  { %v317_v41 = vmul.f32 %v3879_v21, %v306_v15  ;;  %v369_v44 = vmul.f32 %v3874_v20, %v306_v15 }
  0x81   :  { %v321_v49 = vadd.f32 %v317_v41, %v297_v40 }
  0x83   :  { %3310 = vset.pattern.permute.xlu1 %v3754_v0 }
  0x84   :  { %242 = vperm.xlu1 %3310, %v116_v13  }
  0x87   :  { %v386_v16 = vpop.permute.xlu2 %385 }
  0x88   :  { %v397_v50 = vmul.f32 %v3897_v25, %v386_v16 }
  0x8b   :  { %v327_v17 = vpop.permute.xlu1 %326 }
  0x8c   :  { %v302_v18 = vpop.permute.xlu0 %301  ;;  %v372_v23 = vmul.f32 %v3879_v21, %v327_v17  ;;  %v344_v33 = vmul.f32 %v3897_v25, %v327_v17 }
  0x8d   :  { %v368_v24 = vmul.f32 %v3874_v20, %v302_v18  ;;  %v316_v26 = vmul.f32 %v3879_v21, %v302_v18 }
  0x8f   :  { %v376_v29 = vadd.f32 %v372_v23, %v368_v24 }
  0x90   :  { %v3885_v22 = vpop.permute.xlu2 %336 }
  0x91   :  { %v346_v5 = vmul.f32 %v3897_v25, %v3885_v22  ;;  %v374_v14 = vmul.f32 %v3879_v21, %v3885_v22 }
  0x94   :  { %v382_v27 = vpop.permute.xlu1 %381 }
  0x95   :  { %v280_v28 = vpop.permute.xlu0 %279  ;;  %v396_v31 = vmul.f32 %v3897_v25, %v382_v27 }
  0x96   :  { %v296_v32 = vmul.f32 %v3874_v20, %v280_v28 }
  0x97   :  { %v400_v34 = vadd.f32 %v396_v31, %v376_v29 }
  0x98   :  { %v320_v35 = vadd.f32 %v316_v26, %v296_v32 }
  0x99   :  { %v404_v37 = vadd.f32 %v3906_v30, %v400_v34  ;;  %v3923_v39 = vpop.permute.xlu2 %293 }
  0x9a   :  { %v348_v38 = vadd.f32 %v344_v33, %v320_v35  ;;  %v299_v32 = vmul.f32 %v3874_v20, %v3923_v39 }
  0x9b   :  { %v408_v42 = vmax.f32 %v404_v37, 0.0 }
  0x9c   :  { %v352_v43 = vadd.f32 %v3906_v30, %v348_v38 }
  0x9d   :  { %v412_v46 = vmul.f32 %v3920_v36, %v408_v42  ;;  %v332_v48 = vpop.permute.xlu1 %331  ;;  %v289_v53 = vpop.permute.xlu0 %288 }
  0x9e   :  { %v356_v47 = vmax.f32 %v352_v43, 0.0  ;;  %v345_v51 = vmul.f32 %v3897_v25, %v332_v48  ;;  %v373_v52 = vmul.f32 %v3879_v21, %v332_v48  ;;  %v298_v1 = vmul.f32 %v3874_v20, %v289_v53 }
  0x9f   :  { %v416_v57 = vadd.f32 %v3938_v45, %v412_v46 }
  0xa0   :  { %v360_v54 = vmul.f32 %v3920_v36, %v356_v47  ;;  %v349_v55 = vadd.f32 %v345_v51, %v321_v49  ;;  %v377_v56 = vadd.f32 %v373_v52, %v369_v44 }
  0xa2   :  { %v364_v58 = vadd.f32 %v3938_v45, %v360_v54  ;;  %v353_v59 = vadd.f32 %v3906_v30, %v349_v55  ;;  %v401_v60 = vadd.f32 %v397_v50, %v377_v56  ;;  %v394_v61 = vpop.permute.xlu2 %393 }
  0xa3   :  { %v399_v47 = vmul.f32 %v3897_v25, %v394_v61 }
  0xa4   :  { %v420_v62 = vmax.f32 %v364_v58, %v416_v57  ;;  %v357_v63 = vmax.f32 %v353_v59, 0.0  ;;  %v405_v0 = vadd.f32 %v3906_v30, %v401_v60 }
  0xa6   :  { %424 = vst.msk [vmem:[#allocation3] sm:$0xff] %vm273_vm0, %v420_v62  ;;  %v361_v2 = vmul.f32 %v3920_v36, %v357_v63  ;;  %v409_v3 = vmax.f32 %v405_v0, 0.0  ;;  %v310_v4 = vpop.permute.xlu1 %309  ;;  %v150_v8 = vpop.permute.xlu0 %149 }
  0xa7   :  { %v318_v6 = vmul.f32 %v3879_v21, %v310_v4  ;;  %v370_v16 = vmul.f32 %v3874_v20, %v310_v4  ;;  %v217_v42 = vmul.f32 %v3874_v20, %v150_v8  ;;  %v165_v61 = vmul.f32 %v3879_v21, %v150_v8 }
  0xa8   :  { %v413_v7 = vmul.f32 %v3920_v36, %v409_v3  ;;  %v365_v10 = vadd.f32 %v3938_v45, %v361_v2 }
  0xa9   :  { %v322_v9 = vadd.f32 %v318_v6, %v298_v1  ;;  %v378_v24 = vadd.f32 %v374_v14, %v370_v16 }
  0xaa   :  { %v417_v11 = vadd.f32 %v3938_v45, %v413_v7 }
  0xab   :  { %v350_v12 = vadd.f32 %v346_v5, %v322_v9  ;;  %v3959_v13 = vpop.permute.xlu2 %130 }
  0xac   :  { %v421_v15 = vmax.f32 %v365_v10, %v417_v11 }
  0xad   :  { %v450_v17 = vld [vmem:[#allocation3] sm:$0xff]  ;;  %v354_v18 = vadd.f32 %v3906_v30, %v350_v12 }
  0xae   :  { %456 = vrot.lane.b32.xlu2 %v450_v17, %s3759_s1  ;;  %476 = vst.msk [vmem:[#allocation4 + $0x40] sm:$0xff] %vm273_vm0, %v450_v17  ;;  %v487_v37 = vrot.slane %v450_v17, 1 }
  0xaf   :  { %426 = vst.msk [vmem:[#allocation3 + $0x8] sm:$0x7f] %vm425_vm2, %v421_v15  ;;  %v390_v23 = vpop.permute.xlu1 %389  ;;  %v358_v27 = vmax.f32 %v354_v18, 0.0  ;;  %v314_v22 = vpop.permute.xlu0 %313  ;;  %v580_v18 = vld [vmem:[#allocation6 + $0xb8] sm:$0xff] }
  0xb0   :  { %v398_v26 = vmul.f32 %v3897_v25, %v390_v23  ;;  %v319_v33 = vmul.f32 %v3879_v21, %v314_v22  ;;  %v371_v41 = vmul.f32 %v3874_v20, %v314_v22  ;;  %655 = vmatpush.msra.mxu1 %v580_v18  ;;  %v578_v22 = vld [vmem:[#allocation6 + $0xa8] sm:$0xff] }
  0xb1   :  { %v362_v35 = vmul.f32 %v3920_v36, %v358_v27 }
  0xb2   :  { %v402_v28 = vadd.f32 %v398_v26, %v378_v24  ;;  %v323_v48 = vadd.f32 %v319_v33, %v299_v32  ;;  %v579_v26 = vld [vmem:[#allocation6 + $0xb0] sm:$0xff] }
  0xb3   :  { %v366_v51 = vadd.f32 %v3938_v45, %v362_v35  ;;  %656 = vmatpush.msra.mxu1 %v579_v26  ;;  %v576_v35 = vld [vmem:[#allocation6 + $0x98] sm:$0xff] }
  0xb4   :  { %v406_v29 = vadd.f32 %v3906_v30, %v402_v28  ;;  %v175_v31 = vpop.permute.xlu2 %174 }
  0xb5   :  { %v221_v44 = vmul.f32 %v3879_v21, %v175_v31  ;;  %v190_v4 = vmul.f32 %v3897_v25, %v175_v31  ;;  %657 = vmatpush.msra.mxu1 %v578_v22  ;;  %v577_v31 = vld [vmem:[#allocation6 + $0xa0] sm:$0xff] }
  0xb6   :  { %v451_v34 = vld [vmem:[#allocation3 + $0x8] sm:$0xff]  ;;  %v410_v38 = vmax.f32 %v406_v29, 0.0  ;;  %v561_v22 = vld [vmem:[#allocation6 + $0x20] sm:$0xff] }
  0xb7   :  { %458 = vrot.lane.b32.xlu0 %v451_v34, %s3759_s1  ;;  %477 = vst.msk [vmem:[#allocation4 + $0x50] sm:$0xff] %vm273_vm0, %v451_v34  ;;  %v488_v40 = vrot.slane %v451_v34, 1  ;;  %v225_v56 = vadd.f32 %v221_v44, %v217_v42  ;;  %658 = vmatpush.msra.mxu1 %v577_v31  ;;  %v572_v42 = vld [vmem:[#allocation6 + $0x78] sm:$0xff]  ;;  %v235_v44 = vpop.permute.xlu0 %234 }
  0xb8   :  { %v414_v39 = vmul.f32 %v3920_v36, %v410_v38  ;;  %v342_v43 = vpop.permute.xlu1 %341  ;;  %v145_v38 = vmul.f32 %v3874_v20, %v3959_v13  ;;  %606 = vmatpush.msra.mxu0 %v572_v42 }
  0xb9   :  { %493 = vst.msk [vmem:[#allocation4 + $0x58] sm:$0x3f] %vm474_vm3, %v488_v40  ;;  %v489_v46 = vsel %vm467_vm4, %v487_v37, %v488_v40  ;;  %v347_v49 = vmul.f32 %v3897_v25, %v342_v43  ;;  %v375_v50 = vmul.f32 %v3879_v21, %v342_v43  ;;  %659 = vmatpush.msra.mxu1 %v576_v35 }
  0xba   :  { %492 = vst.msk [vmem:[#allocation4 + $0x48] sm:$0xff] %vm273_vm0, %v489_v46  ;;  %v418_v52 = vadd.f32 %v3938_v45, %v414_v39  ;;  %v575_v39 = vld [vmem:[#allocation6 + $0x90] sm:$0xff] }
  0xbb   :  { %v351_v53 = vadd.f32 %v347_v49, %v323_v48  ;;  %v379_v54 = vadd.f32 %v375_v50, %v371_v41  ;;  %660 = vmatpush.msra.mxu1 %v575_v39  ;;  %v571_v50 = vld [vmem:[#allocation6 + $0x70] sm:$0xff] }
  0xbc   :  { %v422_v55 = vmax.f32 %v366_v51, %v418_v52  ;;  %v574_v51 = vld [vmem:[#allocation6 + $0x88] sm:$0xff]  ;;  %607 = vmatpush.msra.mxu0 %v571_v50  ;;  %v246_v52 = vmul.f32 %v3897_v25, %v235_v44  ;;  %v557_v50 = vld [vmem:[#allocation6] sm:$0xff] }
  0xbd   :  { %v355_v57 = vadd.f32 %v3906_v30, %v351_v53  ;;  %v403_v58 = vadd.f32 %v399_v47, %v379_v54  ;;  %v231_v59 = vpop.permute.xlu2 %230  ;;  %661 = vmatpush.msra.mxu1 %v574_v51 }
  0xbe   :  { %427 = vst.msk [vmem:[#allocation3 + $0x10] sm:$0xff] %vm273_vm0, %v422_v55  ;;  %v245_v60 = vmul.f32 %v3897_v25, %v231_v59  ;;  %v570_v55 = vld [vmem:[#allocation6 + $0x68] sm:$0xff]  ;;  %v569_v59 = vld [vmem:[#allocation6 + $0x60] sm:$0xff] }
  0xbf   :  { %v359_v62 = vmax.f32 %v355_v57, 0.0  ;;  %v407_v63 = vadd.f32 %v3906_v30, %v403_v58  ;;  %608 = vmatpush.msra.mxu0 %v570_v55 }
  0xc0   :  { %v126_v0 = vpop.permute.xlu1 %125  ;;  %v249_v1 = vadd.f32 %v245_v60, %v225_v56  ;;  %v573_v56 = vld [vmem:[#allocation6 + $0x80] sm:$0xff] }
  0xc1   :  { %v363_v2 = vmul.f32 %v3920_v36, %v359_v62  ;;  %v411_v3 = vmax.f32 %v407_v63, 0.0  ;;  %v144_v5 = vmul.f32 %v3874_v20, %v126_v0  ;;  %662 = vmatpush.msra.mxu1 %v573_v56  ;;  %609 = vmatpush.msra.mxu0 %v569_v59  ;;  %v568_v0 = vld [vmem:[#allocation6 + $0x58] sm:$0xff] }
  0xc2   :  { %v253_v6 = vadd.f32 %v3906_v30, %v249_v1 }
  0xc3   :  { %v415_v7 = vmul.f32 %v3920_v36, %v411_v3  ;;  %v169_v9 = vadd.f32 %v165_v61, %v144_v5  ;;  %v367_v8 = vadd.f32 %v3938_v45, %v363_v2  ;;  %610 = vmatpush.msra.mxu0 %v568_v0 }
  0xc4   :  { %v257_v10 = vmax.f32 %v253_v6, 0.0  ;;  %v566_v6 = vld [vmem:[#allocation6 + $0x48] sm:$0xff] }
  0xc5   :  { %v419_v11 = vadd.f32 %v3938_v45, %v415_v7  ;;  %v194_v12 = vadd.f32 %v190_v4, %v169_v9  ;;  %v498_v14 = vld [vmem:[#allocation3 + $0x10] sm:$0xff] }
  0xc6   :  { %504 = vrot.lane.b32.xlu1 %v498_v14, %s3759_s1  ;;  %521 = vst.msk [vmem:[#allocation4 + $0x60] sm:$0xff] %vm273_vm0, %v498_v14  ;;  %v261_v17 = vmul.f32 %v3920_v36, %v257_v10  ;;  %v4008_v32 = vpop.permute.xlu2 %140  ;;  %v531_v40 = vrot.slane %v498_v14, 1  ;;  %v567_v4 = vld [vmem:[#allocation6 + $0x50] sm:$0xff]  ;;  %v565_v10 = vld [vmem:[#allocation6 + $0x40] sm:$0xff] }
  0xc7   :  { %v423_v15 = vmax.f32 %v367_v8, %v419_v11  ;;  %v199_v16 = vadd.f32 %v3906_v30, %v194_v12  ;;  %611 = vmatpush.msra.mxu0 %v567_v4  ;;  %v183_v8 = vpop.permute.xlu0 %182  ;;  %v564_v12 = vld [vmem:[#allocation6 + $0x38] sm:$0xff] }
  0xc8   :  { %v265_v28 = vadd.f32 %v3938_v45, %v261_v17  ;;  %v192_v18 = vmul.f32 %v3897_v25, %v183_v8 }
  0xc9   :  { %428 = vst.msk [vmem:[#allocation3 + $0x18] sm:$0x7f] %vm425_vm2, %v423_v15  ;;  %v203_v23 = vmax.f32 %v199_v16, 0.0  ;;  %v154_v24 = vpop.permute.xlu1 %153  ;;  %612 = vmatpush.msra.mxu0 %v566_v6  ;;  %v223_v15 = vmul.f32 %v3879_v21, %v183_v8  ;;  %v563_v16 = vld [vmem:[#allocation6 + $0x30] sm:$0xff] }
  0xca   :  { %v166_v34 = vmul.f32 %v3879_v21, %v154_v24  ;;  %v218_v43 = vmul.f32 %v3874_v20, %v154_v24 }
  0xcb   :  { %v208_v27 = vmul.f32 %v3920_v36, %v203_v23  ;;  %613 = vmatpush.msra.mxu0 %v565_v10 }
  0xcc   :  { %v170_v47 = vadd.f32 %v166_v34, %v145_v38  ;;  %v147_v34 = vmul.f32 %v3874_v20, %v4008_v32 }
  0xcd   :  { %v213_v29 = vadd.f32 %v3938_v45, %v208_v27  ;;  %614 = vmatpush.msra.mxu0 %v564_v12 }
  0xcf   :  { %v269_v33 = vmax.f32 %v213_v29, %v265_v28  ;;  %v4024_v60 = vpop.permute.xlu2 %161  ;;  %615 = vmatpush.msra.mxu0 %v563_v16  ;;  %v562_v28 = vld [vmem:[#allocation6 + $0x28] sm:$0xff] }
  0xd0   :  { %v499_v37 = vld [vmem:[#allocation3 + $0x18] sm:$0xff]  ;;  %v168_v35 = vmul.f32 %v3879_v21, %v4024_v60 }
  0xd1   :  { %274 = vst.msk [vmem:[#allocation2] sm:$0xff] %vm273_vm0, %v269_v33  ;;  %v532_v41 = vrot.slane %v499_v37, 1  ;;  %506 = vrot.lane.b32.xlu2 %v499_v37, %s3759_s1  ;;  %616 = vmatpush.msra.mxu0 %v562_v28  ;;  %v560_v33 = vld [vmem:[#allocation6 + $0x18] sm:$0xff] }
  0xd2   :  { %522 = vst.msk [vmem:[#allocation4 + $0x70] sm:$0xff] %vm273_vm0, %v499_v37  ;;  %v179_v46 = vpop.permute.xlu1 %178  ;;  %v172_v32 = vadd.f32 %v168_v35, %v147_v34 }
  0xd3   :  { %537 = vst.msk [vmem:[#allocation4 + $0x78] sm:$0x3f] %vm474_vm3, %v532_v41  ;;  %v191_v13 = vmul.f32 %v3897_v25, %v179_v46  ;;  %v222_v48 = vmul.f32 %v3879_v21, %v179_v46  ;;  %v533_v49 = vsel %vm467_vm4, %v531_v40, %v532_v41  ;;  %617 = vmatpush.msra.mxu0 %v561_v22  ;;  %v559_v40 = vld [vmem:[#allocation6 + $0x10] sm:$0xff]  ;;  %v558_v46 = vld [vmem:[#allocation6 + $0x8] sm:$0xff] }
  0xd4   :  { %536 = vst.msk [vmem:[#allocation4 + $0x68] sm:$0xff] %vm273_vm0, %v533_v49 }
  0xd5   :  { %v195_v53 = vadd.f32 %v191_v13, %v170_v47  ;;  %v226_v54 = vadd.f32 %v222_v48, %v218_v43  ;;  %618 = vmatpush.msra.mxu0 %v560_v33 }
  0xd7   :  { %v200_v57 = vadd.f32 %v3906_v30, %v195_v53  ;;  %v250_v58 = vadd.f32 %v246_v52, %v226_v54  ;;  %619 = vmatpush.msra.mxu0 %v559_v40  ;;  %v220_v54 = vmul.f32 %v3874_v20, %v4024_v60 }
  0xd8   :  { %v4026_v61 = vld [vmem:[#allocation2] sm:$0xff]  ;;  %v239_v14 = vpop.permute.xlu2 %238 }
  0xd9   :  { %v204_v62 = vmax.f32 %v200_v57, 0.0  ;;  %v254_v63 = vadd.f32 %v3906_v30, %v250_v58  ;;  %452 = vst.msk [vmem:[#allocation4] sm:$0xff] %vm273_vm0, %v4026_v61  ;;  %v247_v27 = vmul.f32 %v3897_v25, %v239_v14  ;;  %v468_v44 = vrot.slane %v4026_v61, 1  ;;  %620 = vmatpush.msra.mxu0 %v558_v46  ;;  %v775_v46 = vld [vmem:[#allocation11 + $0x1c8] sm:$0xff] }
  0xdb   :  { %v209_v1 = vmul.f32 %v3920_v36, %v204_v62  ;;  %v258_v2 = vmax.f32 %v254_v63, 0.0  ;;  %v136_v3 = vpop.permute.xlu1 %135  ;;  %621 = vmatpush.msra.mxu0 %v557_v50  ;;  %v767_v50 = vld [vmem:[#allocation11 + $0x188] sm:$0xff] }
  0xdc   :  { %v146_v23 = vmul.f32 %v3874_v20, %v136_v3 }
  0xdd   :  { %v262_v5 = vmul.f32 %v3920_v36, %v258_v2  ;;  %v214_v7 = vadd.f32 %v3938_v45, %v209_v1 }
  0xdf   :  { %v266_v9 = vadd.f32 %v3938_v45, %v262_v5 }
  0xe1   :  { %v270_v11 = vmax.f32 %v214_v7, %v266_v9 }
  0xe3   :  { %275 = vst.msk [vmem:[#allocation2 + $0x8] sm:$0xff] %vm273_vm0, %v270_v11 }
  0xe4   :  { %v158_v17 = vpop.permute.xlu1 %157 }
  0xe5   :  { %v167_v24 = vmul.f32 %v3879_v21, %v158_v17  ;;  %v219_v26 = vmul.f32 %v3874_v20, %v158_v17 }
  0xe7   :  { %v171_v29 = vadd.f32 %v167_v24, %v146_v23  ;;  %v227_v31 = vadd.f32 %v223_v15, %v219_v26  ;;  %v550_v15 = vld [vmem:[#allocation4 + $0x48] sm:$0xff] }
  0xe8   :  { %v554_v24 = vld [vmem:[#allocation4 + $0x68] sm:$0xff] }
  0xe9   :  { %v196_v37 = vadd.f32 %v192_v18, %v171_v29  ;;  %v251_v38 = vadd.f32 %v247_v27, %v227_v31  ;;  %v552_v18 = vld [vmem:[#allocation4 + $0x58] sm:$0xff] }
  0xea   :  { %v449_v41 = vld [vmem:[#allocation2 + $0x8] sm:$0xff]  ;;  %v556_v27 = vld [vmem:[#allocation4 + $0x78] sm:$0xff] }
  0xeb   :  { %v201_v42 = vadd.f32 %v3906_v30, %v196_v37  ;;  %v255_v39 = vadd.f32 %v3906_v30, %v251_v38  ;;  %v469_v43 = vrot.slane %v449_v41, 1  ;;  %453 = vst.msk [vmem:[#allocation4 + $0x10] sm:$0xff] %vm273_vm0, %v449_v41  ;;  %v4096_v41 = vld [vmem:[%s4912_s5 + $0x78] sm:$0xff] }
  0xec   :  { %975 = vmatpush.msrb.mxu0 %v4096_v41 }
  0xed   :  { %v205_v47 = vmax.f32 %v201_v42, 0.0  ;;  %v259_v13 = vmax.f32 %v255_v39, 0.0  ;;  %v187_v48 = vpop.permute.xlu1 %186  ;;  %480 = vrot.lane.b32.xlu1 %v469_v43, %s3759_s1  ;;  %475 = vst.msk [vmem:[#allocation4 + $0x18] sm:$0x3f] %vm474_vm3, %v469_v43  ;;  %v470_v49 = vsel %vm467_vm4, %v468_v44, %v469_v43  ;;  %v4101_v42 = vld [vmem:[%s4912_s5 + $0x70] sm:$0xff]  ;;  %v779_v43 = vld [vmem:[#allocation11 + $0x1e8] sm:$0xff] }
  0xee   :  { %v193_v51 = vmul.f32 %v3897_v25, %v187_v48  ;;  %478 = vrot.lane.b32.xlu0 %v470_v49, %s3759_s1  ;;  %473 = vst.msk [vmem:[#allocation4 + $0x8] sm:$0xff] %vm273_vm0, %v470_v49  ;;  %v224_v58 = vmul.f32 %v3879_v21, %v187_v48  ;;  %v778_v39 = vld [vmem:[#allocation11 + $0x1e0] sm:$0xff]  ;;  %955 = vmatpush.msrb.mxu1 %v4101_v42  ;;  %v4114_v48 = vld [vmem:[%s4912_s5 + $0x60] sm:$0xff] }
  0xef   :  { %v210_v52 = vmul.f32 %v3920_v36, %v205_v47  ;;  %v263_v53 = vmul.f32 %v3920_v36, %v259_v13  ;;  %v774_v44 = vld [vmem:[#allocation11 + $0x1c0] sm:$0xff]  ;;  %792 = vmatpush.msra.mxu2 %v778_v39  ;;  %821 = vmatpush.msra.mxu3 %v779_v43  ;;  %v771_v13 = vld [vmem:[#allocation11 + $0x1a8] sm:$0xff]  ;;  %v4203_v39 = vld [vmem:[%s4912_s5] sm:$0xff] }
  0xf0   :  { %v197_v57 = vadd.f32 %v193_v51, %v172_v32  ;;  %v228_v62 = vadd.f32 %v224_v58, %v220_v54  ;;  %v4108_v32 = vld [vmem:[%s4912_s5 + $0x68] sm:$0xff]  ;;  %v770_v47 = vld [vmem:[#allocation11 + $0x1a0] sm:$0xff]  ;;  %956 = vmatpush.msrb.mxu1 %v4114_v48  ;;  %v4120_v51 = vld [vmem:[%s4912_s5 + $0x58] sm:$0xff] }
  0xf1   :  { %v215_v55 = vadd.f32 %v3938_v45, %v210_v52  ;;  %v267_v56 = vadd.f32 %v3938_v45, %v263_v53  ;;  %976 = vmatpush.msrb.mxu0 %v4108_v32  ;;  %793 = vmatpush.msra.mxu2 %v774_v44  ;;  %v766_v49 = vld [vmem:[#allocation11 + $0x180] sm:$0xff]  ;;  %v763_v54 = vld [vmem:[#allocation11 + $0x168] sm:$0xff]  ;;  %v768_v44 = vld [vmem:[#allocation11 + $0x190] sm:$0xff] }
  0xf2   :  { %v202_v61 = vadd.f32 %v3906_v30, %v197_v57  ;;  %822 = vmatpush.msra.mxu3 %v775_v46  ;;  %v4125_v52 = vld [vmem:[%s4912_s5 + $0x50] sm:$0xff]  ;;  %v755_v58 = vld [vmem:[#allocation11 + $0x128] sm:$0xff]  ;;  %v769_v46 = vld [vmem:[#allocation11 + $0x198] sm:$0xff] }
  0xf3   :  { %v271_v59 = vmax.f32 %v215_v55, %v267_v56  ;;  %794 = vmatpush.msra.mxu2 %v770_v47  ;;  %v762_v53 = vld [vmem:[#allocation11 + $0x160] sm:$0xff]  ;;  %977 = vmatpush.msrb.mxu0 %v4120_v51  ;;  %v759_v56 = vld [vmem:[#allocation11 + $0x148] sm:$0xff]  ;;  %v764_v47 = vld [vmem:[#allocation11 + $0x170] sm:$0xff] }
  0xf4   :  { %v206_v60 = vmax.f32 %v202_v61, 0.0  ;;  %v544_v5 = vld [vmem:[#allocation4 + $0x18] sm:$0xff]  ;;  %823 = vmatpush.msra.mxu3 %v771_v13  ;;  %957 = vmatpush.msrb.mxu1 %v4125_v52  ;;  %v758_v55 = vld [vmem:[#allocation11 + $0x140] sm:$0xff]  ;;  %v751_v61 = vld [vmem:[#allocation11 + $0x108] sm:$0xff] }
  0xf5   :  { %276 = vst.msk [vmem:[#allocation2 + $0x10] sm:$0xff] %vm273_vm0, %v271_v59  ;;  %v542_v63 = vld [vmem:[#allocation4 + $0x8] sm:$0xff]  ;;  %795 = vmatpush.msra.mxu2 %v766_v49  ;;  %v765_v49 = vld [vmem:[#allocation11 + $0x178] sm:$0xff] }
  0xf6   :  { %v243_v0 = vpop.permute.xlu1 %242  ;;  %3198 = vmatmul.msk.f32.vlgmr.msra.gmra.mxu1 %vm273_vm0, %v542_v63  ;;  %v211_v4 = vmul.f32 %v3920_v36, %v206_v60  ;;  %824 = vmatpush.msra.mxu3 %v767_v50  ;;  %v754_v57 = vld [vmem:[#allocation11 + $0x120] sm:$0xff] }
  0xf7   :  { %v248_v20 = vmul.f32 %v3897_v25, %v243_v0  ;;  %796 = vmatpush.msra.mxu2 %v762_v53  ;;  %v750_v59 = vld [vmem:[#allocation11 + $0x100] sm:$0xff]  ;;  %v747_v0 = vld [vmem:[#allocation11 + $0xe8] sm:$0xff]  ;;  %v4210_v53 = vld [vmem:[#allocation9 + $0x1] ss:$0 sm:$0xff] }
  0xf8   :  { %v216_v7 = vadd.f32 %v3938_v45, %v211_v4  ;;  %825 = vmatpush.msra.mxu3 %v763_v54  ;;  %v746_v63 = vld [vmem:[#allocation11 + $0xe0] sm:$0xff]  ;;  %v739_v4 = vld [vmem:[#allocation11 + $0xa8] sm:$0xff] }
  0xf9   :  { %v252_v1 = vadd.f32 %v248_v20, %v228_v62  ;;  %797 = vmatpush.msra.mxu2 %v758_v55  ;;  %v742_v60 = vld [vmem:[#allocation11 + $0xc0] sm:$0xff] }
  0xfa   :  { %826 = vmatpush.msra.mxu3 %v759_v56 }
  0xfb   :  { %v256_v2 = vadd.f32 %v3906_v30, %v252_v1  ;;  %798 = vmatpush.msra.mxu2 %v754_v57  ;;  %v743_v1 = vld [vmem:[#allocation11 + $0xc8] sm:$0xff]  ;;  %v760_v57 = vld [vmem:[#allocation11 + $0x150] sm:$0xff] }
  0xfc   :  { %v495_v3 = vld [vmem:[#allocation2 + $0x10] sm:$0xff]  ;;  %827 = vmatpush.msra.mxu3 %v755_v58 }
  0xfd   :  { %v260_v21 = vmax.f32 %v256_v2, 0.0  ;;  %500 = vst.msk [vmem:[#allocation4 + $0x20] sm:$0xff] %vm273_vm0, %v495_v3  ;;  %v514_v11 = vrot.slane %v495_v3, 1  ;;  %799 = vmatpush.msra.mxu2 %v750_v59  ;;  %v738_v3 = vld [vmem:[#allocation11 + $0xa0] sm:$0xff]  ;;  %v756_v59 = vld [vmem:[#allocation11 + $0x130] sm:$0xff] }
  0xfe   :  { %3199 = vmatmul.msk.f32.gmra.mxu1 %vm273_vm0, %v544_v5  ;;  %828 = vmatpush.msra.mxu3 %v751_v61  ;;  %v735_v5 = vld [vmem:[#allocation11 + $0x88] sm:$0xff]  ;;  %v757_v61 = vld [vmem:[#allocation11 + $0x138] sm:$0xff] }
  0xff   :  { %v264_v6 = vmul.f32 %v3920_v36, %v260_v21  ;;  %800 = vmatpush.msra.mxu2 %v746_v63  ;;  %v734_v21 = vld [vmem:[#allocation11 + $0x80] sm:$0xff]  ;;  %v4220_v63 = vld [vmem:[#allocation9 + $0x2] ss:$0 sm:$0xff] }
 0x100   :  { %829 = vmatpush.msra.mxu3 %v747_v0 }
 0x101   :  { %v268_v9 = vadd.f32 %v3938_v45, %v264_v6  ;;  %801 = vmatpush.msra.mxu2 %v742_v60  ;;  %v752_v60 = vld [vmem:[#allocation11 + $0x110] sm:$0xff] }
 0x102   :  { %830 = vmatpush.msra.mxu3 %v743_v1  ;;  %v753_v1 = vld [vmem:[#allocation11 + $0x118] sm:$0xff] }
 0x103   :  { %v272_v25 = vmax.f32 %v216_v7, %v268_v9  ;;  %802 = vmatpush.msra.mxu2 %v738_v3  ;;  %v730_v7 = vld [vmem:[#allocation11 + $0x60] sm:$0xff]  ;;  %v731_v9 = vld [vmem:[#allocation11 + $0x68] sm:$0xff] }
 0x104   :  { %831 = vmatpush.msra.mxu3 %v739_v4  ;;  %v748_v4 = vld [vmem:[#allocation11 + $0xf0] sm:$0xff] }
 0x105   :  { %277 = vst.msk [vmem:[#allocation2 + $0x18] sm:$0xff] %vm273_vm0, %v272_v25  ;;  %803 = vmatpush.msra.mxu2 %v734_v21  ;;  %v726_v25 = vld [vmem:[#allocation11 + $0x40] sm:$0xff]  ;;  %v749_v21 = vld [vmem:[#allocation11 + $0xf8] sm:$0xff] }
 0x106   :  { %832 = vmatpush.msra.mxu3 %v735_v5 }
 0x107   :  { %804 = vmatpush.msra.mxu2 %v730_v7 }
 0x108   :  { %v457_v30 = vpop.permute.xlu2 %456  ;;  %833 = vmatpush.msra.mxu3 %v731_v9 }
 0x109   :  { %463 = vst.msk [vmem:[#allocation4] sm:$0xff] %vm462_vm5, %v457_v30  ;;  %v727_v30 = vld [vmem:[#allocation11 + $0x48] sm:$0xff]  ;;  %805 = vmatpush.msra.mxu2 %v726_v25 }
 0x10a   :  { %834 = vmatpush.msra.mxu3 %v727_v30 }
 0x10c   :  { %v496_v10 = vld [vmem:[#allocation2 + $0x18] sm:$0xff] }
 0x10d   :  { %v515_v8 = vrot.slane %v496_v10, 1  ;;  %501 = vst.msk [vmem:[#allocation4 + $0x30] sm:$0xff] %vm273_vm0, %v496_v10  ;;  %v4138_v10 = vld [vmem:[%s4912_s5 + $0x48] sm:$0xff] }
 0x10e   :  { %978 = vmatpush.msrb.mxu0 %v4138_v10 }
 0x10f   :  { %520 = vst.msk [vmem:[#allocation4 + $0x38] sm:$0x3f] %vm474_vm3, %v515_v8  ;;  %525 = vrot.lane.b32.xlu0 %v515_v8, %s3759_s1  ;;  %v516_v36 = vsel %vm467_vm4, %v514_v11, %v515_v8  ;;  %v4143_v8 = vld [vmem:[%s4912_s5 + $0x40] sm:$0xff] }
 0x110   :  { %v541_v12 = vld [vmem:[#allocation4] sm:$0xff]  ;;  %523 = vrot.lane.b32.xlu2 %v516_v36, %s3759_s1  ;;  %519 = vst.msk [vmem:[#allocation4 + $0x28] sm:$0xff] %vm273_vm0, %v516_v36  ;;  %958 = vmatpush.msrb.mxu1 %v4143_v8  ;;  %v722_v36 = vld [vmem:[#allocation11 + $0x20] sm:$0xff] }
 0x111   :  { %622 = vmatmul.f32.vlgmr.msra.gmra.mxu0 %v541_v12  ;;  %v723_v12 = vld [vmem:[#allocation11 + $0x28] sm:$0xff]  ;;  %806 = vmatpush.msra.mxu2 %v722_v36  ;;  %v744_v36 = vld [vmem:[#allocation11 + $0xd0] sm:$0xff] }
 0x112   :  { %835 = vmatpush.msra.mxu3 %v723_v12  ;;  %v745_v12 = vld [vmem:[#allocation11 + $0xd8] sm:$0xff] }
 0x116   :  { %v548_v14 = vld [vmem:[#allocation4 + $0x38] sm:$0xff] }
 0x117   :  { %v546_v45 = vld [vmem:[#allocation4 + $0x28] sm:$0xff] }
 0x118   :  { %3200 = vmatmul.msk.f32.gmra.mxu1 %vm273_vm0, %v546_v45  ;;  %v718_v45 = vld [vmem:[#allocation11] sm:$0xff] }
 0x119   :  { %807 = vmatpush.msra.mxu2 %v718_v45  ;;  %v740_v45 = vld [vmem:[#allocation11 + $0xb0] sm:$0xff] }
 0x120   :  { %3201 = vmatmul.msk.f32.gmra.mxu1 %vm273_vm0, %v548_v14  ;;  %v719_v14 = vld [vmem:[#allocation11 + $0x8] sm:$0xff] }
 0x121   :  { %836 = vmatpush.msra.mxu3 %v719_v14 }
 0x128   :  { %3202 = vmatmul.msk.f32.gmra.mxu1 %vm273_vm0, %v550_v15 }
 0x129   :  { %v459_v16 = vpop.permute.xlu0 %458 }
 0x12a   :  { %464 = vst.msk [vmem:[#allocation4 + $0x10] sm:$0xff] %vm462_vm5, %v459_v16  ;;  %v4154_v16 = vld [vmem:[%s4912_s5 + $0x38] sm:$0xff] }
 0x12b   :  { %v507_v17 = vpop.permute.xlu2 %506  ;;  %979 = vmatpush.msrb.mxu0 %v4154_v16 }
 0x12c   :  { %511 = vst.msk [vmem:[#allocation4 + $0x30] sm:$0xff] %vm462_vm5, %v507_v17  ;;  %v4159_v17 = vld [vmem:[%s4912_s5 + $0x30] sm:$0xff] }
 0x12d   :  { %959 = vmatpush.msrb.mxu1 %v4159_v17 }
 0x130   :  { %3203 = vmatmul.msk.f32.gmra.mxu1 %vm273_vm0, %v552_v18  ;;  %v4163_v18 = vld [vmem:[#allocation9] ss:$0 sm:$0xff] }
 0x131   :  { %v543_v23 = vld [vmem:[#allocation4 + $0x10] sm:$0xff] }
 0x132   :  { %625 = vmatmul.f32.gmra.mxu0 %v543_v23 }
 0x133   :  { %v547_v22 = vld [vmem:[#allocation4 + $0x30] sm:$0xff] }
 0x138   :  { %v505_v26 = vpop.permute.xlu1 %504  ;;  %3204 = vmatmul.msk.f32.gmra.mxu1 %vm273_vm0, %v554_v24  ;;  %v4170_v24 = vld [vmem:[%s4912_s5 + $0x28] sm:$0xff] }
 0x139   :  { %510 = vst.msk [vmem:[#allocation4 + $0x20] sm:$0xff] %vm462_vm5, %v505_v26  ;;  %980 = vmatpush.msrb.mxu0 %v4170_v24  ;;  %v4176_v26 = vld [vmem:[%s4912_s5 + $0x20] sm:$0xff] }
 0x13a   :  { %960 = vmatpush.msrb.mxu1 %v4176_v26 }
 0x140   :  { %3205 = vmatmul.msk.f32.gmra.mxu1 %vm273_vm0, %v556_v27  ;;  %v545_v28 = vld [vmem:[#allocation4 + $0x20] sm:$0xff]  ;;  %v780_v27 = vld [vmem:[#allocation11 + $0x1f0] sm:$0xff] }
 0x141   :  { %628 = vmatmul.f32.gmra.mxu0 %v545_v28  ;;  %v781_v28 = vld [vmem:[#allocation11 + $0x1f8] sm:$0xff]  ;;  %850 = vmatpush.msrb.mxu2 %v780_v27 }
 0x142   :  { %879 = vmatpush.msrb.mxu3 %v781_v28  ;;  %v741_v28 = vld [vmem:[#allocation11 + $0xb8] sm:$0xff] }
 0x149   :  { %631 = vmatmul.f32.gmra.mxu0 %v547_v22 }
 0x15f   :  { %v481_v29 = vpop.permute.xlu1 %480 }
 0x160   :  { %486 = vst.msk [vmem:[#allocation4 + $0x50] sm:$0x3f] %vm485_vm6, %v481_v29  ;;  %v479_v31 = vpop.permute.xlu0 %478 }
 0x161   :  { %484 = vst.msk [vmem:[#allocation4 + $0x40] sm:$0xff] %vm462_vm5, %v479_v31  ;;  %v4185_v31 = vld [vmem:[%s4912_s5 + $0x18] sm:$0xff] }
 0x162   :  { %981 = vmatpush.msrb.mxu0 %v4185_v31 }
 0x167   :  { %v551_v35 = vld [vmem:[#allocation4 + $0x50] sm:$0xff] }
 0x168   :  { %v549_v33 = vld [vmem:[#allocation4 + $0x40] sm:$0xff] }
 0x169   :  { %634 = vmatmul.f32.gmra.mxu0 %v549_v33  ;;  %v776_v33 = vld [vmem:[#allocation11 + $0x1d0] sm:$0xff] }
 0x16a   :  { %v524_v34 = vpop.permute.xlu2 %523  ;;  %851 = vmatpush.msrb.mxu2 %v776_v33 }
 0x16b   :  { %529 = vst.msk [vmem:[#allocation4 + $0x60] sm:$0xff] %vm462_vm5, %v524_v34  ;;  %v777_v34 = vld [vmem:[#allocation11 + $0x1d8] sm:$0xff] }
 0x16c   :  { %880 = vmatpush.msrb.mxu3 %v777_v34 }
 0x171   :  { %637 = vmatmul.f32.gmra.mxu0 %v551_v35  ;;  %v4191_v35 = vld [vmem:[%s4912_s5 + $0x10] sm:$0xff] }
 0x172   :  { %v553_v37 = vld [vmem:[#allocation4 + $0x60] sm:$0xff]  ;;  %961 = vmatpush.msrb.mxu1 %v4191_v35 }
 0x173   :  { %v4129_v62 = vpop.f32.mrf.mxu1 }
 0x174   :  { %962 = vmatpush.msrb.mxu1 %v4203_v39 }
 0x175   :  { %963 = vmatmul.f32.vlgmr.msrb.gmra.mxu1 %v3758_v19 }
 0x176   :  { %1101 = vmatpush.msra.mxu1 %v4101_v42 }
 0x178   :  { %1102 = vmatpush.msra.mxu1 %v4114_v48 }
 0x179   :  { %640 = vmatmul.f32.gmra.mxu0 %v553_v37  ;;  %v4197_v37 = vld [vmem:[%s4912_s5 + $0x8] sm:$0xff] }
 0x17a   :  { %982 = vmatpush.msrb.mxu0 %v4197_v37  ;;  %1103 = vmatpush.msra.mxu1 %v4125_v52 }
 0x17b   :  { %v4131_v2 = vpop.f32.mrf.mxu1 }
 0x17c   :  { %1265 = vmatpush.msra.mxu0 %v4096_v41  ;;  %1104 = vmatpush.msra.mxu1 %v4143_v8 }
 0x17e   :  { %1266 = vmatpush.msra.mxu0 %v4108_v32  ;;  %1105 = vmatpush.msra.mxu1 %v4159_v17 }
 0x180   :  { %1267 = vmatpush.msra.mxu0 %v4120_v51  ;;  %1106 = vmatpush.msra.mxu1 %v4176_v26 }
 0x181   :  { %v526_v38 = vpop.permute.xlu0 %525 }
 0x182   :  { %530 = vst.msk [vmem:[#allocation4 + $0x70] sm:$0x3f] %vm485_vm6, %v526_v38  ;;  %v772_v38 = vld [vmem:[#allocation11 + $0x1b0] sm:$0xff]  ;;  %1268 = vmatpush.msra.mxu0 %v4138_v10  ;;  %1107 = vmatpush.msra.mxu1 %v4191_v35 }
 0x183   :  { %852 = vmatpush.msrb.mxu2 %v772_v38  ;;  %v737_v38 = vld [vmem:[#allocation11 + $0x98] sm:$0xff] }
 0x184   :  { %1269 = vmatpush.msra.mxu0 %v4154_v16  ;;  %1108 = vmatpush.msra.mxu1 %v4203_v39 }
 0x185   :  { %853 = vmatpush.msrb.mxu2 %v768_v44  ;;  %v733_v44 = vld [vmem:[#allocation11 + $0x78] sm:$0xff] }
 0x186   :  { %1270 = vmatpush.msra.mxu0 %v4170_v24  ;;  %1389 = vmatpush.msrb.mxu1 %v4101_v42 }
 0x187   :  { %854 = vmatpush.msrb.mxu2 %v764_v47 }
 0x188   :  { %1271 = vmatpush.msra.mxu0 %v4185_v31  ;;  %1390 = vmatpush.msrb.mxu1 %v4114_v48 }
 0x189   :  { %v555_v40 = vld [vmem:[#allocation4 + $0x70] sm:$0xff]  ;;  %855 = vmatpush.msrb.mxu2 %v760_v57 }
 0x18a   :  { %643 = vmatmul.f32.gmra.mxu0 %v555_v40  ;;  %v773_v40 = vld [vmem:[#allocation11 + $0x1b8] sm:$0xff]  ;;  %1391 = vmatpush.msrb.mxu1 %v4125_v52 }
 0x18b   :  { %881 = vmatpush.msrb.mxu3 %v773_v40  ;;  %856 = vmatpush.msrb.mxu2 %v756_v59  ;;  %v732_v40 = vld [vmem:[#allocation11 + $0x70] sm:$0xff] }
 0x18c   :  { %1272 = vmatpush.msra.mxu0 %v4197_v37  ;;  %v720_v59 = vld [vmem:[#allocation11 + $0x10] sm:$0xff]  ;;  %1392 = vmatpush.msrb.mxu1 %v4143_v8 }
 0x18d   :  { %882 = vmatpush.msrb.mxu3 %v769_v46  ;;  %857 = vmatpush.msrb.mxu2 %v752_v60  ;;  %v728_v46 = vld [vmem:[#allocation11 + $0x50] sm:$0xff] }
 0x18e   :  { %v623_v20 = vpop.f32.mrf.mxu0  ;;  %1393 = vmatpush.msrb.mxu1 %v4159_v17 }
 0x18f   :  { %v624_v22 = vadd.f32 %v4163_v18, %v623_v20  ;;  %883 = vmatpush.msrb.mxu3 %v765_v49  ;;  %858 = vmatpush.msrb.mxu2 %v748_v4 }
 0x190   :  { %1394 = vmatpush.msrb.mxu1 %v4176_v26 }
 0x191   :  { %v665_v43 = vadd.f32 %v4129_v62, %v624_v22  ;;  %859 = vmatpush.msrb.mxu2 %v744_v36  ;;  %v736_v22 = vld [vmem:[#allocation11 + $0x90] sm:$0xff] }
 0x192   :  { %983 = vmatmul.f32.vlgmr.msrb.gmra.mxu0 %v3758_v19  ;;  %v761_v19 = vld [vmem:[#allocation11 + $0x158] sm:$0xff]  ;;  %1395 = vmatpush.msrb.mxu1 %v4191_v35 }
 0x193   :  { %v688_v50 = vmax.f32 %v665_v43, 0.0  ;;  %884 = vmatpush.msrb.mxu3 %v761_v19  ;;  %860 = vmatpush.msrb.mxu2 %v740_v45 }
 0x194   :  { %1553 = vmatpush.msrb.mxu0 %v4096_v41  ;;  %1396 = vmatpush.msrb.mxu1 %v4203_v39 }
 0x195   :  { %v4145_v11 = vpop.f32.mrf.mxu1  ;;  %v697_v62 = vmul.f32 %v4210_v53, %v688_v50  ;;  %885 = vmatpush.msrb.mxu3 %v757_v61  ;;  %861 = vmatpush.msrb.mxu2 %v736_v22 }
 0x196   :  { %1554 = vmatpush.msrb.mxu0 %v4108_v32 }
 0x197   :  { %886 = vmatpush.msrb.mxu3 %v753_v1  ;;  %v706_v5 = vadd.f32 %v4220_v63, %v697_v62  ;;  %862 = vmatpush.msrb.mxu2 %v732_v40 }
 0x198   :  { %1555 = vmatpush.msrb.mxu0 %v4120_v51 }
 0x199   :  { %887 = vmatpush.msrb.mxu3 %v749_v21  ;;  %863 = vmatpush.msrb.mxu2 %v728_v46 }
 0x19a   :  { %1556 = vmatpush.msrb.mxu0 %v4138_v10 }
 0x19b   :  { %888 = vmatpush.msrb.mxu3 %v745_v12 }
 0x19c   :  { %1557 = vmatpush.msrb.mxu0 %v4154_v16 }
 0x19d   :  { %v4165_v23 = vpop.f32.mrf.mxu1  ;;  %889 = vmatpush.msrb.mxu3 %v741_v28 }
 0x19e   :  { %1558 = vmatpush.msrb.mxu0 %v4170_v24 }
 0x19f   :  { %890 = vmatpush.msrb.mxu3 %v737_v38 }
 0x1a0   :  { %1559 = vmatpush.msrb.mxu0 %v4185_v31 }
 0x1a1   :  { %891 = vmatpush.msrb.mxu3 %v733_v44 }
 0x1a2   :  { %1560 = vmatpush.msrb.mxu0 %v4197_v37 }
 0x1a5   :  { %v676_v13 = vpop.f32.mrf.mxu1 }
 0x1af   :  { %v4133_v6 = vpop.f32.mrf.mxu0 }
 0x1b0   :  { %v627_v55 = vadd.f32 %v4163_v18, %v4133_v6  ;;  %v679_v6 = vpop.f32.mrf.mxu1 }
 0x1b2   :  { %v668_v0 = vadd.f32 %v4131_v2, %v627_v55  ;;  %v724_v55 = vld [vmem:[#allocation11 + $0x30] sm:$0xff] }
 0x1b3   :  { %864 = vmatpush.msrb.mxu2 %v724_v55 }
 0x1b4   :  { %v689_v7 = vmax.f32 %v668_v0, 0.0  ;;  %v721_v0 = vld [vmem:[#allocation11 + $0x18] sm:$0xff] }
 0x1b5   :  { %865 = vmatpush.msrb.mxu2 %v720_v59 }
 0x1be   :  { %v4149_v15 = vpop.f32.mrf.mxu0 }
 0x1bf   :  { %v630_v9 = vadd.f32 %v4163_v18, %v4149_v15  ;;  %v698_v15 = vmul.f32 %v4210_v53, %v689_v7 }
 0x1c1   :  { %v671_v33 = vadd.f32 %v4145_v11, %v630_v9  ;;  %v707_v11 = vadd.f32 %v4220_v63, %v698_v15 }
 0x1c6   :  { %v4179_v29 = vpop.f32.mrf.mxu0 }
 0x1e6   :  { %v635_v54 = vpop.f32.mrf.mxu0 }
 0x1e7   :  { %v636_v56 = vadd.f32 %v4163_v18, %v635_v54  ;;  %v729_v54 = vld [vmem:[#allocation11 + $0x58] sm:$0xff] }
 0x1e8   :  { %892 = vmatpush.msrb.mxu3 %v729_v54 }
 0x1e9   :  { %v677_v58 = vadd.f32 %v676_v13, %v636_v56  ;;  %v690_v13 = vmax.f32 %v671_v33, 0.0  ;;  %v682_v56 = vpop.f32.mrf.mxu1 }
 0x1eb   :  { %v692_v20 = vmax.f32 %v677_v58, 0.0  ;;  %v725_v58 = vld [vmem:[#allocation11 + $0x38] sm:$0xff]  ;;  %v699_v61 = vmul.f32 %v4210_v53, %v690_v13 }
 0x1ec   :  { %893 = vmatpush.msrb.mxu3 %v725_v58 }
 0x1ed   :  { %v701_v3 = vmul.f32 %v4210_v53, %v692_v20  ;;  %v708_v60 = vadd.f32 %v4220_v63, %v699_v61 }
 0x1ee   :  { %v638_v2 = vpop.f32.mrf.mxu0  ;;  %894 = vmatpush.msrb.mxu3 %v721_v0 }
 0x1ef   :  { %v710_v25 = vadd.f32 %v4220_v63, %v701_v3  ;;  %v639_v30 = vadd.f32 %v4163_v18, %v638_v2  ;;  %v633_v3 = vadd.f32 %v4163_v18, %v4179_v29 }
 0x1f1   :  { %v680_v14 = vadd.f32 %v679_v6, %v639_v30  ;;  %v4236_v27 = vmax.f32 %v706_v5, %v710_v25  ;;  %v674_v21 = vadd.f32 %v4165_v23, %v633_v3  ;;  %v685_v6 = vpop.f32.mrf.mxu1 }
 0x1f3   :  { %v693_v34 = vmax.f32 %v680_v14, 0.0  ;;  %808 = vmatmul.f32.vlgmr.msra.gmra.mxu2 %v4236_v27  ;;  %837 = vmatmul.f32.vlgmr.msra.gmra.mxu3 %v4236_v27  ;;  %v691_v5 = vmax.f32 %v674_v21, 0.0 }
 0x1f4   :  { %1121 = vmatpush.msra.mxu2 %v4096_v41  ;;  %1245 = vmatpush.msra.mxu3 %v4101_v42 }
 0x1f5   :  { %v702_v43 = vmul.f32 %v4210_v53, %v693_v34  ;;  %v700_v7 = vmul.f32 %v4210_v53, %v691_v5 }
 0x1f6   :  { %v641_v47 = vpop.f32.mrf.mxu0  ;;  %1122 = vmatpush.msra.mxu2 %v4108_v32  ;;  %1246 = vmatpush.msra.mxu3 %v4114_v48 }
 0x1f7   :  { %v711_v49 = vadd.f32 %v4220_v63, %v702_v43  ;;  %v642_v50 = vadd.f32 %v4163_v18, %v641_v47  ;;  %v709_v25 = vadd.f32 %v4220_v63, %v700_v7 }
 0x1f8   :  { %1123 = vmatpush.msra.mxu2 %v4120_v51  ;;  %1247 = vmatpush.msra.mxu3 %v4125_v52 }
 0x1f9   :  { %v683_v57 = vadd.f32 %v682_v56, %v642_v50  ;;  %v4252_v19 = vmax.f32 %v707_v11, %v711_v49  ;;  %v964_v33 = vpop.f32.mrf.mxu1 }
 0x1fa   :  { %1124 = vmatpush.msra.mxu2 %v4138_v10  ;;  %1248 = vmatpush.msra.mxu3 %v4143_v8 }
 0x1fb   :  { %v694_v62 = vmax.f32 %v683_v57, 0.0  ;;  %811 = vmatmul.f32.gmra.mxu2 %v4252_v19  ;;  %840 = vmatmul.f32.gmra.mxu3 %v4252_v19 }
 0x1fc   :  { %1125 = vmatpush.msra.mxu2 %v4154_v16  ;;  %1249 = vmatpush.msra.mxu3 %v4159_v17 }
 0x1fd   :  { %v703_v20 = vmul.f32 %v4210_v53, %v694_v62 }
 0x1fe   :  { %1126 = vmatpush.msra.mxu2 %v4170_v24  ;;  %1250 = vmatpush.msra.mxu3 %v4176_v26 }
 0x1ff   :  { %v712_v1 = vadd.f32 %v4220_v63, %v703_v20 }
 0x200   :  { %1127 = vmatpush.msra.mxu2 %v4185_v31  ;;  %1251 = vmatpush.msra.mxu3 %v4191_v35 }
 0x201   :  { %v716_v4 = vmax.f32 %v708_v60, %v712_v1 }
 0x202   :  { %1128 = vmatpush.msra.mxu2 %v4197_v37  ;;  %1252 = vmatpush.msra.mxu3 %v4203_v39 }
 0x203   :  { %814 = vmatmul.f32.gmra.mxu2 %v716_v4  ;;  %843 = vmatmul.f32.gmra.mxu3 %v716_v4 }
 0x207   :  { %v644_v29 = vpop.f32.mrf.mxu0 }
 0x208   :  { %v645_v23 = vadd.f32 %v4163_v18, %v644_v29 }
 0x20a   :  { %v686_v2 = vadd.f32 %v685_v6, %v645_v23 }
 0x20c   :  { %v695_v9 = vmax.f32 %v686_v2, 0.0 }
 0x20e   :  { %v704_v18 = vmul.f32 %v4210_v53, %v695_v9  ;;  %v782_v53 = vld [vmem:[#allocation12] ss:$8 sm:$0xf] }
 0x20f   :  { %v785_v12 = vperm.slane %v782_v53, 1  ;;  %v984_v22 = vpop.f32.mrf.mxu0  ;;  %v786_v62 = vperm.slane %v782_v53, 2  ;;  %v787_v0 = vperm.slane %v782_v53, 3 }
 0x210   :  { %v713_v30 = vadd.f32 %v4220_v63, %v704_v18  ;;  %v784_v63 = vperm.slane %v782_v53, 0  ;;  %v989_v15 = vrot.slane %v984_v22, 7 }
 0x212   :  { %v717_v36 = vmax.f32 %v709_v25, %v713_v30  ;;  %v991_v44 = vsel %vm990_vm7, %v964_v33, %v989_v15  ;;  %v993_v54 = vsel %vm992_vm8, %v964_v33, %v989_v15 }
 0x213   :  { %v994_v55 = vrot.slane %v993_v54, 1 }
 0x214   :  { %817 = vmatmul.f32.gmra.mxu2 %v717_v36  ;;  %846 = vmatmul.f32.gmra.mxu3 %v717_v36 }
 0x21c   :  { %866 = vmatmul.f32.vlgmr.msrb.gmra.mxu2 %v4236_v27  ;;  %895 = vmatmul.f32.vlgmr.msrb.gmra.mxu3 %v4236_v27 }
 0x21d   :  { %1409 = vmatpush.msrb.mxu2 %v4096_v41  ;;  %1533 = vmatpush.msrb.mxu3 %v4101_v42 }
 0x21f   :  { %1410 = vmatpush.msrb.mxu2 %v4108_v32  ;;  %1534 = vmatpush.msrb.mxu3 %v4114_v48 }
 0x221   :  { %1411 = vmatpush.msrb.mxu2 %v4120_v51  ;;  %1535 = vmatpush.msrb.mxu3 %v4125_v52 }
 0x223   :  { %1412 = vmatpush.msrb.mxu2 %v4138_v10  ;;  %1536 = vmatpush.msrb.mxu3 %v4143_v8 }
 0x224   :  { %869 = vmatmul.f32.gmra.mxu2 %v4252_v19  ;;  %898 = vmatmul.f32.gmra.mxu3 %v4252_v19 }
 0x225   :  { %1413 = vmatpush.msrb.mxu2 %v4154_v16  ;;  %1537 = vmatpush.msrb.mxu3 %v4159_v17 }
 0x227   :  { %1414 = vmatpush.msrb.mxu2 %v4170_v24  ;;  %1538 = vmatpush.msrb.mxu3 %v4176_v26 }
 0x229   :  { %1415 = vmatpush.msrb.mxu2 %v4185_v31  ;;  %1539 = vmatpush.msrb.mxu3 %v4191_v35 }
 0x22b   :  { %1416 = vmatpush.msrb.mxu2 %v4197_v37  ;;  %1540 = vmatpush.msrb.mxu3 %v4203_v39 }
 0x22c   :  { %872 = vmatmul.f32.gmra.mxu2 %v716_v4  ;;  %901 = vmatmul.f32.gmra.mxu3 %v716_v4 }
 0x234   :  { %875 = vmatmul.f32.gmra.mxu2 %v717_v36  ;;  %904 = vmatmul.f32.gmra.mxu3 %v717_v36 }
 0x276   :  { %v809_v45 = vpop.f32.mrf.mxu2  ;;  %v838_v14 = vpop.f32.mrf.mxu3 }
 0x277   :  { %v810_v27 = vadd.f32 %v809_v45, %v784_v63  ;;  %v839_v28 = vadd.f32 %v838_v14, %v785_v12 }
 0x279   :  { %908 = vst [vmem:[#allocation5] sm:$0xff] %v810_v27 }
 0x27a   :  { %909 = vst [vmem:[#allocation5 + $0x8] sm:$0xff] %v839_v28 }
 0x27e   :  { %v812_v34 = vpop.f32.mrf.mxu2  ;;  %v841_v38 = vpop.f32.mrf.mxu3 }
 0x27f   :  { %v813_v40 = vadd.f32 %v812_v34, %v784_v63  ;;  %v842_v43 = vadd.f32 %v841_v38, %v785_v12 }
 0x281   :  { %912 = vst [vmem:[#allocation5 + $0x20] sm:$0xff] %v813_v40  ;;  %v941_v46 = vld [vmem:[#allocation5] ss:$8 sm:$0x3] }
 0x282   :  { %913 = vst [vmem:[#allocation5 + $0x28] sm:$0xff] %v842_v43  ;;  %v997_v47 = vadd.f32 %v991_v44, %v941_v46 }
 0x284   :  { %1039 = vrot.lane.b32.xlu1 %v997_v47, %s3759_s1  ;;  %v3206_v18 = vmul.f32 -1.442695, %v997_v47 }
 0x286   :  { %v815_v11 = vpop.f32.mrf.mxu2  ;;  %v844_v13 = vpop.f32.mrf.mxu3 }
 0x287   :  { %v816_v49 = vadd.f32 %v815_v11, %v784_v63  ;;  %v845_v50 = vadd.f32 %v844_v13, %v785_v12 }
 0x289   :  { %917 = vst [vmem:[#allocation5 + $0x40] sm:$0xff] %v816_v49 }
 0x28a   :  { %918 = vst [vmem:[#allocation5 + $0x48] sm:$0xff] %v845_v50 }
 0x291   :  { %v943_v56 = vld [vmem:[#allocation5 + $0x40] ss:$8 sm:$0x3] }
 0x292   :  { %v998_v57 = vadd.f32 %v994_v55, %v943_v56 }
 0x294   :  { %1041 = vrot.lane.b32.xlu2 %v998_v57, %s3759_s1  ;;  %v3207_v9 = vmul.f32 -1.442695, %v998_v57 }
 0x296   :  { %3321 = vpow2.f32 %v3207_v9 }
 0x297   :  { %v818_v19 = vpop.f32.mrf.mxu2  ;;  %v847_v58 = vpop.f32.mrf.mxu3  ;;  %3323 = vpow2.f32 %v3206_v18 }
 0x298   :  { %v819_v59 = vadd.f32 %v818_v19, %v784_v63  ;;  %v848_v61 = vadd.f32 %v847_v58, %v785_v12 }
 0x29a   :  { %921 = vst [vmem:[#allocation5 + $0x60] sm:$0xff] %v819_v59 }
 0x29b   :  { %922 = vst [vmem:[#allocation5 + $0x68] sm:$0xff] %v848_v61 }
 0x29c   :  { %v3322_v25 = vpop.eup %3321 }
 0x29d   :  { %v1006_v30 = vadd.f32 1.0, %v3322_v25  ;;  %v3324_v36 = vpop.eup %3323 }
 0x29e   :  { %v1005_v53 = vadd.f32 1.0, %v3324_v36 }
 0x29f   :  { %v867_v20 = vpop.f32.mrf.mxu2  ;;  %v896_v60 = vpop.f32.mrf.mxu3  ;;  %3325 = vrcp.f32 %v1006_v30  ;;  %v1033_v38 = vand.u32 2147483648, %v1006_v30  ;;  %vm1027_vm10 = vweird.f32 %v1006_v30  ;;  %v1031_v40 = vand.u32 2147483647, %v1006_v30 }
 0x2a0   :  { %3327 = vrcp.f32 %v1005_v53  ;;  %v1018_v55 = vand.u32 2147483648, %v1005_v53  ;;  %vm1012_vm14 = vweird.f32 %v1005_v53  ;;  %v1016_v56 = vand.u32 2147483647, %v1005_v53 }
 0x2a1   :  { %v1034_v46 = vor.u32 1.1754944e-38, %v1033_v38  ;;  %vm1032_vm12 = vcmp.eq.f32.partialorder %v1031_v40, 8.507059e+37 }
 0x2a2   :  { %v1019_v19 = vor.u32 1.1754944e-38, %v1018_v55  ;;  %vm1017_vm1 = vcmp.eq.f32.partialorder %v1016_v56, 8.507059e+37 }
 0x2a5   :  { %v3326_v63 = vpop.eup %3325 }
 0x2a6   :  { %v1023_v12 = vmul.f32 %v3326_v63, %v1006_v30  ;;  %v3328_v14 = vpop.eup %3327  ;;  %vm1028_vm9 = vweird.f32 %v3326_v63  ;;  %v1084_v30 = vld [vmem:[#allocation5 + $0x41] ss:$8 sm:$0x3] }
 0x2a7   :  { %v870_v1 = vpop.f32.mrf.mxu2  ;;  %v899_v3 = vpop.f32.mrf.mxu3  ;;  %v1008_v28 = vmul.f32 %v3328_v14, %v1005_v53  ;;  %vm1029_vm11 = vmor %vm1027_vm10, %vm1028_vm9  ;;  %vm1013_vm13 = vweird.f32 %v3328_v14 }
 0x2a8   :  { %v871_v4 = vadd.f32 %v870_v1, %v786_v62  ;;  %v900_v21 = vadd.f32 %v899_v3, %v787_v0  ;;  %v1024_v45 = vsub.f32 1.0, %v1023_v12  ;;  %vm1014_vm15 = vmor %vm1012_vm14, %vm1013_vm13 }
 0x2a9   :  { %v1009_v34 = vsub.f32 1.0, %v1008_v28 }
 0x2aa   :  { %914 = vst [vmem:[#allocation5 + $0x30] sm:$0xff] %v871_v4  ;;  %v1025_v27 = vmul.f32 %v3326_v63, %v1024_v45 }
 0x2ab   :  { %915 = vst [vmem:[#allocation5 + $0x38] sm:$0xff] %v900_v21  ;;  %v1010_v44 = vmul.f32 %v3328_v14, %v1009_v34 }
 0x2ac   :  { %v1026_v33 = vadd.f32 %v3326_v63, %v1025_v27 }
 0x2ad   :  { %v1011_v54 = vadd.f32 %v3328_v14, %v1010_v44 }
 0x2ae   :  { %v1030_v43 = vsel %vm1029_vm11, %v3326_v63, %v1026_v33 }
 0x2af   :  { %v873_v29 = vpop.f32.mrf.mxu2  ;;  %v902_v5 = vpop.f32.mrf.mxu3  ;;  %v1035_v49 = vsel %vm1032_vm12, %v1034_v46, %v1030_v43  ;;  %v1015_v57 = vsel %vm1014_vm15, %v3328_v14, %v1011_v54 }
 0x2b0   :  { %v1020_v59 = vsel %vm1017_vm1, %v1019_v19, %v1015_v57 }
 0x2b1   :  { %v1049_v60 = vmul.f32 0.0, %v1020_v59  ;;  %v1067_v29 = vrot.slane %v1020_v59, 1 }
 0x2b7   :  { %v876_v23 = vpop.f32.mrf.mxu2  ;;  %v905_v6 = vpop.f32.mrf.mxu3 }
 0x2b8   :  { %v877_v2 = vadd.f32 %v876_v23, %v786_v62  ;;  %v906_v7 = vadd.f32 %v905_v6, %v787_v0  ;;  %v1050_v62 = vmul.f32 0.0, %v1035_v49  ;;  %v1068_v6 = vrot.slane %v1035_v49, 1 }
 0x2ba   :  { %923 = vst [vmem:[#allocation5 + $0x70] sm:$0xff] %v877_v2 }
 0x2bb   :  { %924 = vst [vmem:[#allocation5 + $0x78] sm:$0xff] %v906_v7 }
 0x2ee   :  { %v1042_v22 = vpop.permute.xlu2 %1041 }
 0x2ef   :  { %v1044_v15 = vrot.slane %v1042_v22, 1 }
 0x2f1   :  { %3329 = vtanh.f32 %v1044_v15 }
 0x2f6   :  { %v1040_v47 = vpop.permute.xlu1 %1039 }
 0x2f7   :  { %v3330_v11 = vpop.eup %3329  ;;  %v1043_v13 = vrot.slane %v1040_v47, 1 }
 0x2f8   :  { %v1052_v50 = vmul.f32 %v3330_v11, %v1035_v49 }
 0x2f9   :  { %3331 = vtanh.f32 %v1043_v13 }
 0x2fa   :  { %1057 = vrot.lane.b32.xlu1 %v1052_v50, %s3759_s1 }
 0x2ff   :  { %v3332_v58 = vpop.eup %3331 }
 0x300   :  { %v1051_v61 = vmul.f32 %v3332_v58, %v1020_v59 }
 0x302   :  { %1055 = vrot.lane.b32.xlu0 %v1051_v61, %s3759_s1 }
 0x36c   :  { %v1058_v0 = vpop.permute.xlu1 %1057 }
 0x36d   :  { %v4324_v20 = vadd.f32 %v1058_v0, %v1050_v62 }
 0x36f   :  { %3333 = vtanh.f32 %v4324_v20 }
 0x374   :  { %v1056_v1 = vpop.permute.xlu0 %1055 }
 0x375   :  { %v3334_v3 = vpop.eup %3333  ;;  %v4327_v4 = vadd.f32 %v1056_v1, %v1049_v60 }
 0x376   :  { %1075 = vrot.lane.b32.xlu0 %v3334_v3, %s3759_s1 }
 0x377   :  { %3335 = vtanh.f32 %v4327_v4 }
 0x37d   :  { %v3336_v21 = vpop.eup %3335 }
 0x37e   :  { %1073 = vrot.lane.b32.xlu2 %v3336_v21, %s3759_s1 }
 0x3d8   :  { %v1074_v5 = vpop.permute.xlu2 %1073 }
 0x3d9   :  { %v1079_v23 = vmul.f32 %v1074_v5, %v1067_v29 }
 0x3db   :  { %1087 = vst [vmem:[#allocation1] ss:$9 sm:$0xff] %v1079_v23 }
 0x3e8   :  { %v1076_v2 = vpop.permute.xlu0 %1075 }
 0x3e9   :  { %v1080_v7 = vmul.f32 %v1076_v2, %v1068_v6 }
 0x3eb   :  { %1089 = vst [vmem:[#allocation1 + $0x1] ss:$9 sm:$0xff] %v1080_v7 }
 0x3f2   :  { %v1090_v9 = vld [vmem:[#allocation1] sm:$0xff] }
 0x3f3   :  { %3208 = vmatmul.msk.f32.vlgmr.msra.gmra.mxu1 %vm273_vm0, %v1090_v9  ;;  %3209 = vmatmul.msk.f32.vlgmr.msra.gmra.mxu2 %vm273_vm0, %v1090_v9 }
 0x3f4   :  { %1677 = vmatpush.msra.mxu1 %v4101_v42  ;;  %1697 = vmatpush.msra.mxu2 %v4096_v41 }
 0x3f6   :  { %1678 = vmatpush.msra.mxu1 %v4114_v48  ;;  %1698 = vmatpush.msra.mxu2 %v4108_v32 }
 0x3f8   :  { %1679 = vmatpush.msra.mxu1 %v4125_v52  ;;  %1699 = vmatpush.msra.mxu2 %v4120_v51  ;;  %v1082_v51 = vld [vmem:[#allocation5 + $0x1] ss:$8 sm:$0x3] }
 0x3fa   :  { %1680 = vmatpush.msra.mxu1 %v4143_v8  ;;  %1700 = vmatpush.msra.mxu2 %v4138_v10 }
 0x3fc   :  { %1681 = vmatpush.msra.mxu1 %v4159_v17  ;;  %1701 = vmatpush.msra.mxu2 %v4154_v16 }
 0x3fe   :  { %1682 = vmatpush.msra.mxu1 %v4176_v26  ;;  %1702 = vmatpush.msra.mxu2 %v4170_v24 }
 0x400   :  { %1683 = vmatpush.msra.mxu1 %v4191_v35  ;;  %1703 = vmatpush.msra.mxu2 %v4185_v31 }
 0x402   :  { %1684 = vmatpush.msra.mxu1 %v4203_v39  ;;  %1704 = vmatpush.msra.mxu2 %v4197_v37 }
 0x470   :  { %v1110_v32 = vpop.f32.mrf.mxu1 }
 0x476   :  { %v1130_v41 = vpop.f32.mrf.mxu2 }
 0x477   :  { %v1135_v42 = vrot.slane %v1130_v41, 7 }
 0x479   :  { %v1137_v48 = vsel %vm992_vm8, %v1110_v32, %v1135_v42  ;;  %v1136_v52 = vsel %vm990_vm7, %v1110_v32, %v1135_v42 }
 0x47a   :  { %v1138_v18 = vrot.slane %v1137_v48, 1  ;;  %v1141_v25 = vadd.f32 %v1136_v52, %v1082_v51 }
 0x47c   :  { %1183 = vrot.lane.b32.xlu1 %v1141_v25, %s3759_s1  ;;  %v1142_v36 = vadd.f32 %v1138_v18, %v1084_v30  ;;  %v3210_v45 = vmul.f32 -1.442695, %v1141_v25  ;;  %v4377_v18 = vld [vmem:[%s4912_s5 + $0x78] sm:$0xff]  ;;  %v4383_v25 = vld [vmem:[%s4912_s5 + $0x60] sm:$0xff]  ;;  %v4389_v30 = vld [vmem:[%s4912_s5 + $0x68] sm:$0xff] }
 0x47e   :  { %1185 = vrot.lane.b32.xlu2 %v1142_v36, %s3759_s1  ;;  %v3211_v53 = vmul.f32 -1.442695, %v1142_v36  ;;  %v4395_v36 = vld [vmem:[%s4912_s5 + $0x50] sm:$0xff] }
 0x480   :  { %3337 = vpow2.f32 %v3211_v53  ;;  %v4401_v53 = vld [vmem:[%s4912_s5 + $0x58] sm:$0xff] }
 0x486   :  { %v3338_v63 = vpop.eup %3337 }
 0x487   :  { %v1150_v12 = vadd.f32 1.0, %v3338_v63 }
 0x489   :  { %3339 = vrcp.f32 %v1150_v12  ;;  %v1177_v43 = vand.u32 2147483648, %v1150_v12  ;;  %vm1171_vm3 = vweird.f32 %v1150_v12  ;;  %v1175_v44 = vand.u32 2147483647, %v1150_v12 }
 0x48a   :  { %3341 = vpow2.f32 %v3210_v45 }
 0x48b   :  { %v1178_v47 = vor.u32 1.1754944e-38, %v1177_v43  ;;  %vm1176_vm5 = vcmp.eq.f32.partialorder %v1175_v44, 8.507059e+37 }
 0x48f   :  { %v3340_v14 = vpop.eup %3339 }
 0x490   :  { %v1167_v27 = vmul.f32 %v3340_v14, %v1150_v12  ;;  %v3342_v22 = vpop.eup %3341  ;;  %vm1172_vm2 = vweird.f32 %v3340_v14 }
 0x491   :  { %v1149_v15 = vadd.f32 1.0, %v3342_v22  ;;  %vm1173_vm4 = vmor %vm1171_vm3, %vm1172_vm2 }
 0x492   :  { %v1168_v28 = vsub.f32 1.0, %v1167_v27 }
 0x493   :  { %3343 = vrcp.f32 %v1149_v15  ;;  %v1162_v59 = vand.u32 2147483648, %v1149_v15  ;;  %vm1156_vm9 = vweird.f32 %v1149_v15  ;;  %v1160_v61 = vand.u32 2147483647, %v1149_v15 }
 0x494   :  { %v1169_v33 = vmul.f32 %v3340_v14, %v1168_v28 }
 0x495   :  { %v1163_v0 = vor.u32 1.1754944e-38, %v1162_v59  ;;  %vm1161_vm11 = vcmp.eq.f32.partialorder %v1160_v61, 8.507059e+37 }
 0x496   :  { %v1170_v40 = vadd.f32 %v3340_v14, %v1169_v33 }
 0x498   :  { %v1174_v46 = vsel %vm1173_vm4, %v3340_v14, %v1170_v40  ;;  %v1228_v14 = vld [vmem:[#allocation5 + $0x42] ss:$8 sm:$0x3] }
 0x499   :  { %v3344_v11 = vpop.eup %3343  ;;  %v1179_v49 = vsel %vm1176_vm5, %v1178_v47, %v1174_v46 }
 0x49a   :  { %v1152_v54 = vmul.f32 %v3344_v11, %v1149_v15  ;;  %vm1157_vm6 = vweird.f32 %v3344_v11  ;;  %v1194_v21 = vmul.f32 %v1179_v49, %v4324_v20  ;;  %v1212_v32 = vrot.slane %v1179_v49, 1 }
 0x49b   :  { %vm1158_vm10 = vmor %vm1156_vm9, %vm1157_vm6 }
 0x49c   :  { %v1153_v55 = vsub.f32 1.0, %v1152_v54 }
 0x49e   :  { %v1154_v56 = vmul.f32 %v3344_v11, %v1153_v55 }
 0x4a0   :  { %v1155_v58 = vadd.f32 %v3344_v11, %v1154_v56 }
 0x4a2   :  { %v1159_v62 = vsel %vm1158_vm10, %v3344_v11, %v1155_v58 }
 0x4a3   :  { %v1164_v1 = vsel %vm1161_vm11, %v1163_v0, %v1159_v62 }
 0x4a4   :  { %v1193_v6 = vmul.f32 %v1164_v1, %v4327_v4  ;;  %v1211_v41 = vrot.slane %v1164_v1, 1  ;;  %v4371_v4 = vld [vmem:[%s4912_s5 + $0x70] sm:$0xff] }
 0x4d8   :  { %v1186_v34 = vpop.permute.xlu2 %1185 }
 0x4d9   :  { %v1188_v38 = vrot.slane %v1186_v34, 1 }
 0x4db   :  { %3345 = vtanh.f32 %v1188_v38 }
 0x4e1   :  { %v3346_v13 = vpop.eup %3345 }
 0x4e2   :  { %v1196_v50 = vmul.f32 %v3346_v13, %v1179_v49 }
 0x4e4   :  { %1201 = vrot.lane.b32.xlu1 %v1196_v50, %s3759_s1 }
 0x4ee   :  { %v1184_v57 = vpop.permute.xlu1 %1183 }
 0x4ef   :  { %v1187_v19 = vrot.slane %v1184_v57, 1 }
 0x4f1   :  { %3347 = vtanh.f32 %v1187_v19 }
 0x4f7   :  { %v3348_v60 = vpop.eup %3347 }
 0x4f8   :  { %v1195_v3 = vmul.f32 %v3348_v60, %v1164_v1 }
 0x4fa   :  { %1199 = vrot.lane.b32.xlu0 %v1195_v3, %s3759_s1 }
 0x556   :  { %v1202_v29 = vpop.permute.xlu1 %1201 }
 0x557   :  { %v4357_v5 = vadd.f32 %v1202_v29, %v1194_v21 }
 0x559   :  { %3349 = vtanh.f32 %v4357_v5 }
 0x55f   :  { %v3350_v23 = vpop.eup %3349 }
 0x560   :  { %1219 = vrot.lane.b32.xlu0 %v3350_v23, %s3759_s1 }
 0x56c   :  { %v1200_v2 = vpop.permute.xlu0 %1199 }
 0x56d   :  { %v4362_v7 = vadd.f32 %v1200_v2, %v1193_v6 }
 0x56f   :  { %3351 = vtanh.f32 %v4362_v7 }
 0x575   :  { %v3352_v9 = vpop.eup %3351 }
 0x576   :  { %1217 = vrot.lane.b32.xlu2 %v3352_v9, %s3759_s1 }
 0x5d0   :  { %v1218_v20 = vpop.permute.xlu2 %1217 }
 0x5d1   :  { %v1223_v42 = vmul.f32 %v1218_v20, %v1211_v41 }
 0x5d2   :  { %v1220_v48 = vpop.permute.xlu0 %1219 }
 0x5d3   :  { %1231 = vst [vmem:[#allocation1] ss:$9 sm:$0xff] %v1223_v42  ;;  %v1224_v51 = vmul.f32 %v1220_v48, %v1212_v32 }
 0x5d5   :  { %1233 = vst [vmem:[#allocation1 + $0x1] ss:$9 sm:$0xff] %v1224_v51 }
 0x5dc   :  { %v1234_v52 = vld [vmem:[#allocation1] sm:$0xff] }
 0x5dd   :  { %3212 = vmatmul.msk.f32.vlgmr.msra.gmra.mxu3 %vm273_vm0, %v1234_v52  ;;  %3213 = vmatmul.msk.f32.vlgmr.msra.gmra.mxu0 %vm273_vm0, %v1234_v52 }
 0x5de   :  { %1821 = vmatpush.msra.mxu3 %v4371_v4  ;;  %1841 = vmatpush.msra.mxu0 %v4377_v18 }
 0x5e0   :  { %1822 = vmatpush.msra.mxu3 %v4383_v25  ;;  %1842 = vmatpush.msra.mxu0 %v4389_v30 }
 0x5e2   :  { %1823 = vmatpush.msra.mxu3 %v4395_v36  ;;  %1843 = vmatpush.msra.mxu0 %v4401_v53 }
 0x5e4   :  { %1824 = vmatpush.msra.mxu3 %v4143_v8  ;;  %1844 = vmatpush.msra.mxu0 %v4138_v10  ;;  %v1226_v10 = vld [vmem:[#allocation5 + $0x2] ss:$8 sm:$0x3] }
 0x5e6   :  { %1825 = vmatpush.msra.mxu3 %v4159_v17  ;;  %1845 = vmatpush.msra.mxu0 %v4154_v16 }
 0x5e8   :  { %1826 = vmatpush.msra.mxu3 %v4176_v26  ;;  %1846 = vmatpush.msra.mxu0 %v4170_v24 }
 0x5ea   :  { %1827 = vmatpush.msra.mxu3 %v4191_v35  ;;  %1847 = vmatpush.msra.mxu0 %v4185_v31 }
 0x5ec   :  { %1828 = vmatpush.msra.mxu3 %v4203_v39  ;;  %1848 = vmatpush.msra.mxu0 %v4197_v37 }
 0x65a   :  { %v1274_v63 = vpop.f32.mrf.mxu0 }
 0x65b   :  { %v1279_v8 = vrot.slane %v1274_v63, 7 }
 0x660   :  { %v1254_v12 = vpop.f32.mrf.mxu3 }
 0x661   :  { %v1280_v17 = vsel %vm990_vm7, %v1254_v12, %v1279_v8  ;;  %v1281_v16 = vsel %vm992_vm8, %v1254_v12, %v1279_v8  ;;  %v4447_v12 = vld [vmem:[%s4912_s5 + $0x48] sm:$0xff] }
 0x662   :  { %v1282_v45 = vrot.slane %v1281_v16, 1  ;;  %v1285_v26 = vadd.f32 %v1280_v17, %v1226_v10  ;;  %v4453_v10 = vld [vmem:[%s4912_s5 + $0x30] sm:$0xff]  ;;  %v4459_v17 = vld [vmem:[%s4912_s5 + $0x38] sm:$0xff]  ;;  %v4465_v16 = vld [vmem:[%s4912_s5 + $0x20] sm:$0xff] }
 0x664   :  { %1327 = vrot.lane.b32.xlu1 %v1285_v26, %s3759_s1  ;;  %v1286_v24 = vadd.f32 %v1282_v45, %v1228_v14  ;;  %v3214_v39 = vmul.f32 -1.442695, %v1285_v26  ;;  %v4471_v45 = vld [vmem:[%s4912_s5 + $0x28] sm:$0xff]  ;;  %v4477_v26 = vld [vmem:[%s4912_s5 + $0x10] sm:$0xff]  ;;  %v4483_v14 = vld [vmem:[%s4912_s5 + $0x18] sm:$0xff] }
 0x666   :  { %1329 = vrot.lane.b32.xlu2 %v1286_v24, %s3759_s1  ;;  %v3215_v31 = vmul.f32 -1.442695, %v1286_v24  ;;  %v4489_v24 = vld [vmem:[%s4912_s5] sm:$0xff] }
 0x668   :  { %3353 = vpow2.f32 %v3215_v31  ;;  %v4495_v31 = vld [vmem:[%s4912_s5 + $0x8] sm:$0xff] }
 0x66e   :  { %v3354_v35 = vpop.eup %3353 }
 0x66f   :  { %v1294_v37 = vadd.f32 1.0, %v3354_v35 }
 0x671   :  { %3355 = vrcp.f32 %v1294_v37  ;;  %v1321_v44 = vand.u32 2147483648, %v1294_v37  ;;  %vm1315_vm13 = vweird.f32 %v1294_v37  ;;  %v1319_v46 = vand.u32 2147483647, %v1294_v37 }
 0x672   :  { %3357 = vpow2.f32 %v3214_v39 }
 0x673   :  { %v1322_v11 = vor.u32 1.1754944e-38, %v1321_v44  ;;  %vm1320_vm15 = vcmp.eq.f32.partialorder %v1319_v46, 8.507059e+37 }
 0x677   :  { %v3356_v27 = vpop.eup %3355 }
 0x678   :  { %v1311_v28 = vmul.f32 %v3356_v27, %v1294_v37  ;;  %v3358_v15 = vpop.eup %3357  ;;  %vm1316_vm12 = vweird.f32 %v3356_v27 }
 0x679   :  { %v1293_v33 = vadd.f32 1.0, %v3358_v15  ;;  %vm1317_vm14 = vmor %vm1315_vm13, %vm1316_vm12 }
 0x67a   :  { %v1312_v22 = vsub.f32 1.0, %v1311_v28  ;;  %v1370_v28 = vld [vmem:[#allocation5 + $0x3] ss:$8 sm:$0x3] }
 0x67b   :  { %3359 = vrcp.f32 %v1293_v33  ;;  %v1306_v61 = vand.u32 2147483648, %v1293_v33  ;;  %vm1300_vm2 = vweird.f32 %v1293_v33  ;;  %v1304_v62 = vand.u32 2147483647, %v1293_v33 }
 0x67c   :  { %v1313_v34 = vmul.f32 %v3356_v27, %v1312_v22 }
 0x67d   :  { %v1307_v60 = vor.u32 1.1754944e-38, %v1306_v61  ;;  %vm1305_vm4 = vcmp.eq.f32.partialorder %v1304_v62, 8.507059e+37 }
 0x67e   :  { %v1314_v43 = vadd.f32 %v3356_v27, %v1313_v34  ;;  %v1372_v34 = vld [vmem:[#allocation5 + $0x43] ss:$8 sm:$0x3] }
 0x680   :  { %v1318_v47 = vsel %vm1317_vm14, %v3356_v27, %v1314_v43 }
 0x681   :  { %v3360_v13 = vpop.eup %3359  ;;  %v1323_v50 = vsel %vm1320_vm15, %v1322_v11, %v1318_v47 }
 0x682   :  { %v1296_v55 = vmul.f32 %v3360_v13, %v1293_v33  ;;  %vm1301_vm1 = vweird.f32 %v3360_v13  ;;  %v1338_v29 = vmul.f32 %v1323_v50, %v4357_v5  ;;  %v1356_v51 = vrot.slane %v1323_v50, 1 }
 0x683   :  { %vm1302_vm3 = vmor %vm1300_vm2, %vm1301_vm1 }
 0x684   :  { %v1297_v56 = vsub.f32 1.0, %v1296_v55 }
 0x686   :  { %v1298_v57 = vmul.f32 %v3360_v13, %v1297_v56 }
 0x688   :  { %v1299_v59 = vadd.f32 %v3360_v13, %v1298_v57 }
 0x68a   :  { %v1303_v0 = vsel %vm1302_vm3, %v3360_v13, %v1299_v59 }
 0x68b   :  { %v1308_v3 = vsel %vm1305_vm4, %v1307_v60, %v1303_v0 }
 0x68c   :  { %v1337_v9 = vmul.f32 %v1308_v3, %v4362_v7  ;;  %v1355_v32 = vrot.slane %v1308_v3, 1  ;;  %v4441_v7 = vld [vmem:[%s4912_s5 + $0x40] sm:$0xff] }
 0x6c0   :  { %v1330_v38 = vpop.permute.xlu2 %1329 }
 0x6c1   :  { %v1332_v40 = vrot.slane %v1330_v38, 1 }
 0x6c3   :  { %3361 = vtanh.f32 %v1332_v40 }
 0x6c9   :  { %v3362_v49 = vpop.eup %3361 }
 0x6ca   :  { %v1340_v54 = vmul.f32 %v3362_v49, %v1323_v50 }
 0x6cc   :  { %1345 = vrot.lane.b32.xlu1 %v1340_v54, %s3759_s1 }
 0x6d6   :  { %v1328_v19 = vpop.permute.xlu1 %1327 }
 0x6d7   :  { %v1331_v58 = vrot.slane %v1328_v19, 1 }
 0x6d9   :  { %3363 = vtanh.f32 %v1331_v58 }
 0x6df   :  { %v3364_v1 = vpop.eup %3363 }
 0x6e0   :  { %v1339_v21 = vmul.f32 %v3364_v1, %v1308_v3 }
 0x6e2   :  { %1343 = vrot.lane.b32.xlu0 %v1339_v21, %s3759_s1 }
 0x73e   :  { %v1346_v23 = vpop.permute.xlu1 %1345 }
 0x73f   :  { %v4421_v6 = vadd.f32 %v1346_v23, %v1338_v29 }
 0x741   :  { %3365 = vtanh.f32 %v4421_v6 }
 0x747   :  { %v3366_v2 = vpop.eup %3365 }
 0x748   :  { %1363 = vrot.lane.b32.xlu0 %v3366_v2, %s3759_s1 }
 0x754   :  { %v1344_v41 = vpop.permute.xlu0 %1343 }
 0x755   :  { %v4426_v20 = vadd.f32 %v1344_v41, %v1337_v9 }
 0x757   :  { %3367 = vtanh.f32 %v4426_v20 }
 0x75d   :  { %v3368_v42 = vpop.eup %3367 }
 0x75e   :  { %1361 = vrot.lane.b32.xlu2 %v3368_v42, %s3759_s1 }
 0x7b8   :  { %v1362_v5 = vpop.permute.xlu2 %1361 }
 0x7b9   :  { %v1367_v48 = vmul.f32 %v1362_v5, %v1355_v32 }
 0x7ba   :  { %v1364_v52 = vpop.permute.xlu0 %1363 }
 0x7bb   :  { %1375 = vst [vmem:[#allocation1] ss:$9 sm:$0xff] %v1367_v48  ;;  %v1368_v63 = vmul.f32 %v1364_v52, %v1356_v51 }
 0x7bd   :  { %1377 = vst [vmem:[#allocation1 + $0x1] ss:$9 sm:$0xff] %v1368_v63 }
 0x7c4   :  { %v1378_v8 = vld [vmem:[#allocation1] sm:$0xff] }
 0x7c5   :  { %3216 = vmatmul.msk.f32.vlgmr.msrb.gmra.mxu1 %vm273_vm0, %v1378_v8  ;;  %3217 = vmatmul.msk.f32.vlgmr.msrb.gmra.mxu2 %vm273_vm0, %v1378_v8 }
 0x7c6   :  { %1965 = vmatpush.msrb.mxu1 %v4371_v4  ;;  %1985 = vmatpush.msrb.mxu2 %v4377_v18 }
 0x7c8   :  { %1966 = vmatpush.msrb.mxu1 %v4383_v25  ;;  %1986 = vmatpush.msrb.mxu2 %v4389_v30 }
 0x7ca   :  { %1967 = vmatpush.msrb.mxu1 %v4395_v36  ;;  %1987 = vmatpush.msrb.mxu2 %v4401_v53 }
 0x7cc   :  { %1968 = vmatpush.msrb.mxu1 %v4441_v7  ;;  %1988 = vmatpush.msrb.mxu2 %v4447_v12 }
 0x7ce   :  { %1969 = vmatpush.msrb.mxu1 %v4453_v10  ;;  %1989 = vmatpush.msrb.mxu2 %v4459_v17 }
 0x7d0   :  { %1970 = vmatpush.msrb.mxu1 %v4465_v16  ;;  %1990 = vmatpush.msrb.mxu2 %v4471_v45 }
 0x7d2   :  { %1971 = vmatpush.msrb.mxu1 %v4477_v26  ;;  %1991 = vmatpush.msrb.mxu2 %v4483_v14 }
 0x7d4   :  { %1972 = vmatpush.msrb.mxu1 %v4489_v24  ;;  %1992 = vmatpush.msrb.mxu2 %v4495_v31 }
 0x842   :  { %v1398_v39 = vpop.f32.mrf.mxu1 }
 0x848   :  { %v1418_v35 = vpop.f32.mrf.mxu2 }
 0x849   :  { %v1423_v37 = vrot.slane %v1418_v35, 7 }
 0x84b   :  { %v1425_v27 = vsel %vm992_vm8, %v1398_v39, %v1423_v37  ;;  %v1424_v22 = vsel %vm990_vm7, %v1398_v39, %v1423_v37 }
 0x84c   :  { %v1426_v15 = vrot.slane %v1425_v27, 1  ;;  %v1429_v33 = vadd.f32 %v1424_v22, %v1370_v28 }
 0x84e   :  { %1471 = vrot.lane.b32.xlu1 %v1429_v33, %s3759_s1  ;;  %v1430_v38 = vadd.f32 %v1426_v15, %v1372_v34  ;;  %v3218_v46 = vmul.f32 -1.442695, %v1429_v33 }
 0x850   :  { %1473 = vrot.lane.b32.xlu2 %v1430_v38, %s3759_s1  ;;  %v3219_v40 = vmul.f32 -1.442695, %v1430_v38 }
 0x852   :  { %3369 = vpow2.f32 %v3219_v40 }
 0x858   :  { %v3370_v43 = vpop.eup %3369 }
 0x859   :  { %v1438_v44 = vadd.f32 1.0, %v3370_v43 }
 0x85b   :  { %3371 = vrcp.f32 %v1438_v44  ;;  %v1465_v19 = vand.u32 2147483648, %v1438_v44  ;;  %vm1459_vm6 = vweird.f32 %v1438_v44  ;;  %v1463_v58 = vand.u32 2147483647, %v1438_v44 }
 0x85c   :  { %3373 = vpow2.f32 %v3218_v46 }
 0x85d   :  { %v1466_v61 = vor.u32 1.1754944e-38, %v1465_v19  ;;  %vm1464_vm10 = vcmp.eq.f32.partialorder %v1463_v58, 8.507059e+37 }
 0x861   :  { %v3372_v47 = vpop.eup %3371 }
 0x862   :  { %v1455_v11 = vmul.f32 %v3372_v47, %v1438_v44  ;;  %v3374_v49 = vpop.eup %3373  ;;  %vm1460_vm5 = vweird.f32 %v3372_v47 }
 0x863   :  { %v1437_v50 = vadd.f32 1.0, %v3374_v49  ;;  %vm1461_vm9 = vmor %vm1459_vm6, %vm1460_vm5 }
 0x864   :  { %v1456_v13 = vsub.f32 1.0, %v1455_v11 }
 0x865   :  { %3375 = vrcp.f32 %v1437_v50  ;;  %v1450_v41 = vand.u32 2147483648, %v1437_v50  ;;  %vm1444_vm12 = vweird.f32 %v1437_v50  ;;  %v1448_v42 = vand.u32 2147483647, %v1437_v50 }
 0x866   :  { %v1457_v54 = vmul.f32 %v3372_v47, %v1456_v13 }
 0x867   :  { %v1451_v5 = vor.u32 1.1754944e-38, %v1450_v41  ;;  %vm1449_vm14 = vcmp.eq.f32.partialorder %v1448_v42, 8.507059e+37 }
 0x868   :  { %v1458_v57 = vadd.f32 %v3372_v47, %v1457_v54  ;;  %v1516_v54 = vld [vmem:[#allocation5 + $0x44] ss:$8 sm:$0x3] }
 0x86a   :  { %v1462_v59 = vsel %vm1461_vm9, %v3372_v47, %v1458_v57  ;;  %v1514_v47 = vld [vmem:[#allocation5 + $0x4] ss:$8 sm:$0x3] }
 0x86b   :  { %v3376_v62 = vpop.eup %3375  ;;  %v1467_v60 = vsel %vm1464_vm10, %v1466_v61, %v1462_v59 }
 0x86c   :  { %v1440_v3 = vmul.f32 %v3376_v62, %v1437_v50  ;;  %vm1445_vm11 = vweird.f32 %v3376_v62  ;;  %v1482_v63 = vmul.f32 %v1467_v60, %v4421_v6  ;;  %v1500_v34 = vrot.slane %v1467_v60, 1 }
 0x86d   :  { %vm1446_vm13 = vmor %vm1444_vm12, %vm1445_vm11 }
 0x86e   :  { %v1441_v21 = vsub.f32 1.0, %v1440_v3 }
 0x870   :  { %v1442_v29 = vmul.f32 %v3376_v62, %v1441_v21 }
 0x872   :  { %v1443_v9 = vadd.f32 %v3376_v62, %v1442_v29 }
 0x874   :  { %v1447_v32 = vsel %vm1446_vm13, %v3376_v62, %v1443_v9 }
 0x875   :  { %v1452_v51 = vsel %vm1449_vm14, %v1451_v5, %v1447_v32 }
 0x876   :  { %v1481_v39 = vmul.f32 %v1452_v51, %v4426_v20  ;;  %v1499_v15 = vrot.slane %v1452_v51, 1 }
 0x8aa   :  { %v1474_v55 = vpop.permute.xlu2 %1473 }
 0x8ab   :  { %v1476_v56 = vrot.slane %v1474_v55, 1 }
 0x8ad   :  { %3377 = vtanh.f32 %v1476_v56 }
 0x8b3   :  { %v3378_v0 = vpop.eup %3377 }
 0x8b4   :  { %v1484_v1 = vmul.f32 %v3378_v0, %v1467_v60 }
 0x8b6   :  { %1489 = vrot.lane.b32.xlu1 %v1484_v1, %s3759_s1 }
 0x8c0   :  { %v1472_v23 = vpop.permute.xlu1 %1471 }
 0x8c1   :  { %v1475_v2 = vrot.slane %v1472_v23, 1 }
 0x8c3   :  { %3379 = vtanh.f32 %v1475_v2 }
 0x8c9   :  { %v3380_v48 = vpop.eup %3379 }
 0x8ca   :  { %v1483_v52 = vmul.f32 %v3380_v48, %v1452_v51 }
 0x8cc   :  { %1487 = vrot.lane.b32.xlu0 %v1483_v52, %s3759_s1 }
 0x928   :  { %v1490_v8 = vpop.permute.xlu1 %1489 }
 0x929   :  { %v4505_v35 = vadd.f32 %v1490_v8, %v1482_v63 }
 0x92b   :  { %3381 = vtanh.f32 %v4505_v35 }
 0x931   :  { %v3382_v37 = vpop.eup %3381 }
 0x932   :  { %1507 = vrot.lane.b32.xlu0 %v3382_v37, %s3759_s1 }
 0x93e   :  { %v1488_v27 = vpop.permute.xlu0 %1487 }
 0x93f   :  { %v4510_v28 = vadd.f32 %v1488_v27, %v1481_v39 }
 0x941   :  { %3383 = vtanh.f32 %v4510_v28 }
 0x947   :  { %v3384_v22 = vpop.eup %3383 }
 0x948   :  { %1505 = vrot.lane.b32.xlu2 %v3384_v22, %s3759_s1 }
 0x9a2   :  { %v1506_v6 = vpop.permute.xlu2 %1505 }
 0x9a3   :  { %v1511_v33 = vmul.f32 %v1506_v6, %v1499_v15 }
 0x9a4   :  { %v1508_v38 = vpop.permute.xlu0 %1507 }
 0x9a5   :  { %1519 = vst [vmem:[#allocation1] ss:$9 sm:$0xff] %v1511_v33  ;;  %v1512_v40 = vmul.f32 %v1508_v38, %v1500_v34 }
 0x9a7   :  { %1521 = vst [vmem:[#allocation1 + $0x1] ss:$9 sm:$0xff] %v1512_v40 }
 0x9ae   :  { %v1522_v43 = vld [vmem:[#allocation1] sm:$0xff] }
 0x9af   :  { %3220 = vmatmul.msk.f32.vlgmr.msrb.gmra.mxu3 %vm273_vm0, %v1522_v43  ;;  %3221 = vmatmul.msk.f32.vlgmr.msrb.gmra.mxu0 %vm273_vm0, %v1522_v43 }
 0x9b0   :  { %2109 = vmatpush.msrb.mxu3 %v4371_v4  ;;  %2129 = vmatpush.msrb.mxu0 %v4377_v18 }
 0x9b2   :  { %2110 = vmatpush.msrb.mxu3 %v4383_v25  ;;  %2130 = vmatpush.msrb.mxu0 %v4389_v30 }
 0x9b4   :  { %2111 = vmatpush.msrb.mxu3 %v4395_v36  ;;  %2131 = vmatpush.msrb.mxu0 %v4401_v53 }
 0x9b6   :  { %2112 = vmatpush.msrb.mxu3 %v4441_v7  ;;  %2132 = vmatpush.msrb.mxu0 %v4447_v12 }
 0x9b8   :  { %2113 = vmatpush.msrb.mxu3 %v4453_v10  ;;  %2133 = vmatpush.msrb.mxu0 %v4459_v17 }
 0x9ba   :  { %2114 = vmatpush.msrb.mxu3 %v4465_v16  ;;  %2134 = vmatpush.msrb.mxu0 %v4471_v45 }
 0x9bc   :  { %2115 = vmatpush.msrb.mxu3 %v4477_v26  ;;  %2135 = vmatpush.msrb.mxu0 %v4483_v14 }
 0x9be   :  { %2116 = vmatpush.msrb.mxu3 %v4489_v24  ;;  %2136 = vmatpush.msrb.mxu0 %v4495_v31 }
 0xa2c   :  { %v1562_v20 = vpop.f32.mrf.mxu0 }
 0xa2d   :  { %v1567_v44 = vrot.slane %v1562_v20, 7 }
 0xa32   :  { %v1542_v46 = vpop.f32.mrf.mxu3 }
 0xa33   :  { %v1568_v11 = vsel %vm990_vm7, %v1542_v46, %v1567_v44  ;;  %v1569_v13 = vsel %vm992_vm8, %v1542_v46, %v1567_v44 }
 0xa34   :  { %v1570_v49 = vrot.slane %v1569_v13, 1  ;;  %v1573_v50 = vadd.f32 %v1568_v11, %v1514_v47 }
 0xa36   :  { %1615 = vrot.lane.b32.xlu1 %v1573_v50, %s3759_s1  ;;  %v1574_v55 = vadd.f32 %v1570_v49, %v1516_v54  ;;  %v3222_v58 = vmul.f32 -1.442695, %v1573_v50 }
 0xa38   :  { %1617 = vrot.lane.b32.xlu2 %v1574_v55, %s3759_s1  ;;  %v3223_v56 = vmul.f32 -1.442695, %v1574_v55 }
 0xa3a   :  { %3385 = vpow2.f32 %v3223_v56 }
 0xa40   :  { %v3386_v57 = vpop.eup %3385 }
 0xa41   :  { %v1582_v19 = vadd.f32 1.0, %v3386_v57 }
 0xa43   :  { %3387 = vrcp.f32 %v1582_v19  ;;  %v1609_v23 = vand.u32 2147483648, %v1582_v19  ;;  %vm1603_vm1 = vweird.f32 %v1582_v19  ;;  %v1607_v2 = vand.u32 2147483647, %v1582_v19 }
 0xa44   :  { %3389 = vpow2.f32 %v3222_v58 }
 0xa45   :  { %v1610_v41 = vor.u32 1.1754944e-38, %v1609_v23  ;;  %vm1608_vm3 = vcmp.eq.f32.partialorder %v1607_v2, 8.507059e+37 }
 0xa49   :  { %v3388_v59 = vpop.eup %3387 }
 0xa4a   :  { %v1599_v61 = vmul.f32 %v3388_v59, %v1582_v19  ;;  %v3390_v0 = vpop.eup %3389  ;;  %vm1604_vm15 = vweird.f32 %v3388_v59 }
 0xa4b   :  { %v1581_v60 = vadd.f32 1.0, %v3390_v0  ;;  %vm1605_vm2 = vmor %vm1603_vm1, %vm1604_vm15 }
 0xa4c   :  { %v1600_v62 = vsub.f32 1.0, %v1599_v61  ;;  %v1658_v61 = vld [vmem:[#allocation5 + $0x5] ss:$8 sm:$0x3] }
 0xa4d   :  { %3391 = vrcp.f32 %v1581_v60  ;;  %v1594_v27 = vand.u32 2147483648, %v1581_v60  ;;  %vm1588_vm5 = vweird.f32 %v1581_v60  ;;  %v1592_v22 = vand.u32 2147483647, %v1581_v60 }
 0xa4e   :  { %v1601_v1 = vmul.f32 %v3388_v59, %v1600_v62 }
 0xa4f   :  { %v1595_v6 = vor.u32 1.1754944e-38, %v1594_v27  ;;  %vm1593_vm9 = vcmp.eq.f32.partialorder %v1592_v22, 8.507059e+37 }
 0xa50   :  { %v1602_v29 = vadd.f32 %v3388_v59, %v1601_v1  ;;  %v1660_v1 = vld [vmem:[#allocation5 + $0x45] ss:$8 sm:$0x3] }
 0xa52   :  { %v1606_v9 = vsel %vm1605_vm2, %v3388_v59, %v1602_v29 }
 0xa53   :  { %v3392_v42 = vpop.eup %3391  ;;  %v1611_v5 = vsel %vm1608_vm3, %v1610_v41, %v1606_v9 }
 0xa54   :  { %v1584_v51 = vmul.f32 %v3392_v42, %v1581_v60  ;;  %vm1589_vm4 = vweird.f32 %v3392_v42  ;;  %v1626_v40 = vmul.f32 %v1611_v5, %v4505_v35  ;;  %v1644_v54 = vrot.slane %v1611_v5, 1 }
 0xa55   :  { %vm1590_vm6 = vmor %vm1588_vm5, %vm1589_vm4 }
 0xa56   :  { %v1585_v52 = vsub.f32 1.0, %v1584_v51 }
 0xa58   :  { %v1586_v63 = vmul.f32 %v3392_v42, %v1585_v52 }
 0xa5a   :  { %v1587_v39 = vadd.f32 %v3392_v42, %v1586_v63 }
 0xa5c   :  { %v1591_v15 = vsel %vm1590_vm6, %v3392_v42, %v1587_v39 }
 0xa5d   :  { %v1596_v34 = vsel %vm1593_vm9, %v1595_v6, %v1591_v15 }
 0xa5e   :  { %v1625_v46 = vmul.f32 %v1596_v34, %v4510_v28  ;;  %v1643_v49 = vrot.slane %v1596_v34, 1 }
 0xa92   :  { %v1618_v3 = vpop.permute.xlu2 %1617 }
 0xa93   :  { %v1620_v21 = vrot.slane %v1618_v3, 1 }
 0xa95   :  { %3393 = vtanh.f32 %v1620_v21 }
 0xa9b   :  { %v3394_v32 = vpop.eup %3393 }
 0xa9c   :  { %v1628_v48 = vmul.f32 %v3394_v32, %v1611_v5 }
 0xa9e   :  { %1633 = vrot.lane.b32.xlu1 %v1628_v48, %s3759_s1 }
 0xaa8   :  { %v1616_v8 = vpop.permute.xlu1 %1615 }
 0xaa9   :  { %v1619_v37 = vrot.slane %v1616_v8, 1 }
 0xaab   :  { %3395 = vtanh.f32 %v1619_v37 }
 0xab1   :  { %v3396_v33 = vpop.eup %3395 }
 0xab2   :  { %v1627_v38 = vmul.f32 %v3396_v33, %v1596_v34 }
 0xab4   :  { %1631 = vrot.lane.b32.xlu0 %v1627_v38, %s3759_s1 }
 0xb10   :  { %v1634_v43 = vpop.permute.xlu1 %1633 }
 0xb11   :  { %v4539_v20 = vadd.f32 %v1634_v43, %v1626_v40 }
 0xb13   :  { %3397 = vtanh.f32 %v4539_v20 }
 0xb19   :  { %v3398_v44 = vpop.eup %3397 }
 0xb1a   :  { %1651 = vrot.lane.b32.xlu0 %v3398_v44, %s3759_s1 }
 0xb26   :  { %v1632_v47 = vpop.permute.xlu0 %1631 }
 0xb27   :  { %v4544_v11 = vadd.f32 %v1632_v47, %v1625_v46 }
 0xb29   :  { %3399 = vtanh.f32 %v4544_v11 }
 0xb2f   :  { %v3400_v13 = vpop.eup %3399 }
 0xb30   :  { %1649 = vrot.lane.b32.xlu2 %v3400_v13, %s3759_s1 }
 0xb8a   :  { %v1650_v35 = vpop.permute.xlu2 %1649 }
 0xb8b   :  { %v1655_v50 = vmul.f32 %v1650_v35, %v1643_v49 }
 0xb8c   :  { %v1652_v55 = vpop.permute.xlu0 %1651 }
 0xb8d   :  { %1663 = vst [vmem:[#allocation1] ss:$9 sm:$0xff] %v1655_v50  ;;  %v1656_v56 = vmul.f32 %v1652_v55, %v1644_v54 }
 0xb8f   :  { %1665 = vst [vmem:[#allocation1 + $0x1] ss:$9 sm:$0xff] %v1656_v56 }
 0xb96   :  { %v1666_v57 = vld [vmem:[#allocation1] sm:$0xff] }
 0xb97   :  { %3224 = vmatmul.msk.f32.vlgmr.msra.gmra.mxu1 %vm273_vm0, %v1666_v57  ;;  %3225 = vmatmul.msk.f32.vlgmr.msra.gmra.mxu2 %vm273_vm0, %v1666_v57 }
 0xb98   :  { %2253 = vmatpush.msra.mxu1 %v4371_v4  ;;  %2273 = vmatpush.msra.mxu2 %v4377_v18 }
 0xb9a   :  { %2254 = vmatpush.msra.mxu1 %v4383_v25  ;;  %2274 = vmatpush.msra.mxu2 %v4389_v30 }
 0xb9c   :  { %2255 = vmatpush.msra.mxu1 %v4395_v36  ;;  %2275 = vmatpush.msra.mxu2 %v4401_v53 }
 0xb9e   :  { %2256 = vmatpush.msra.mxu1 %v4441_v7  ;;  %2276 = vmatpush.msra.mxu2 %v4447_v12 }
 0xba0   :  { %2257 = vmatpush.msra.mxu1 %v4453_v10  ;;  %2277 = vmatpush.msra.mxu2 %v4459_v17 }
 0xba2   :  { %2258 = vmatpush.msra.mxu1 %v4465_v16  ;;  %2278 = vmatpush.msra.mxu2 %v4471_v45 }
 0xba4   :  { %2259 = vmatpush.msra.mxu1 %v4477_v26  ;;  %2279 = vmatpush.msra.mxu2 %v4483_v14 }
 0xba6   :  { %2260 = vmatpush.msra.mxu1 %v4489_v24  ;;  %2280 = vmatpush.msra.mxu2 %v4495_v31 }
 0xc14   :  { %v1686_v58 = vpop.f32.mrf.mxu1 }
 0xc1a   :  { %v1706_v28 = vpop.f32.mrf.mxu2 }
 0xc1b   :  { %v1711_v19 = vrot.slane %v1706_v28, 7 }
 0xc1d   :  { %v1713_v59 = vsel %vm992_vm8, %v1686_v58, %v1711_v19  ;;  %v1712_v62 = vsel %vm990_vm7, %v1686_v58, %v1711_v19 }
 0xc1e   :  { %v1714_v0 = vrot.slane %v1713_v59, 1  ;;  %v1717_v60 = vadd.f32 %v1712_v62, %v1658_v61 }
 0xc20   :  { %1759 = vrot.lane.b32.xlu1 %v1717_v60, %s3759_s1  ;;  %v1718_v3 = vadd.f32 %v1714_v0, %v1660_v1  ;;  %v3226_v2 = vmul.f32 -1.442695, %v1717_v60 }
 0xc22   :  { %1761 = vrot.lane.b32.xlu2 %v1718_v3, %s3759_s1  ;;  %v3227_v21 = vmul.f32 -1.442695, %v1718_v3 }
 0xc24   :  { %3401 = vpow2.f32 %v3227_v21 }
 0xc2a   :  { %v3402_v29 = vpop.eup %3401 }
 0xc2b   :  { %v1726_v23 = vadd.f32 1.0, %v3402_v29 }
 0xc2d   :  { %3403 = vrcp.f32 %v1726_v23  ;;  %v1753_v8 = vand.u32 2147483648, %v1726_v23  ;;  %vm1747_vm11 = vweird.f32 %v1726_v23  ;;  %v1751_v37 = vand.u32 2147483647, %v1726_v23 }
 0xc2e   :  { %3405 = vpow2.f32 %v3226_v2 }
 0xc2f   :  { %v1754_v27 = vor.u32 1.1754944e-38, %v1753_v8  ;;  %vm1752_vm13 = vcmp.eq.f32.partialorder %v1751_v37, 8.507059e+37 }
 0xc33   :  { %v3404_v9 = vpop.eup %3403 }
 0xc34   :  { %v1743_v41 = vmul.f32 %v3404_v9, %v1726_v23  ;;  %v3406_v32 = vpop.eup %3405  ;;  %vm1748_vm10 = vweird.f32 %v3404_v9 }
 0xc35   :  { %v1725_v5 = vadd.f32 1.0, %v3406_v32  ;;  %vm1749_vm12 = vmor %vm1747_vm11, %vm1748_vm10 }
 0xc36   :  { %v1744_v42 = vsub.f32 1.0, %v1743_v41 }
 0xc37   :  { %3407 = vrcp.f32 %v1725_v5  ;;  %v1738_v47 = vand.u32 2147483648, %v1725_v5  ;;  %vm1732_vm15 = vweird.f32 %v1725_v5  ;;  %v1736_v13 = vand.u32 2147483647, %v1725_v5 }
 0xc38   :  { %v1745_v48 = vmul.f32 %v3404_v9, %v1744_v42 }
 0xc39   :  { %v1739_v35 = vor.u32 1.1754944e-38, %v1738_v47  ;;  %vm1737_vm2 = vcmp.eq.f32.partialorder %v1736_v13, 8.507059e+37 }
 0xc3a   :  { %v1746_v63 = vadd.f32 %v3404_v9, %v1745_v48  ;;  %v1804_v48 = vld [vmem:[#allocation5 + $0x46] ss:$8 sm:$0x3] }
 0xc3c   :  { %v1750_v39 = vsel %vm1749_vm12, %v3404_v9, %v1746_v63  ;;  %v1802_v9 = vld [vmem:[#allocation5 + $0x6] ss:$8 sm:$0x3] }
 0xc3d   :  { %v3408_v22 = vpop.eup %3407  ;;  %v1755_v6 = vsel %vm1752_vm13, %v1754_v27, %v1750_v39 }
 0xc3e   :  { %v1728_v34 = vmul.f32 %v3408_v22, %v1725_v5  ;;  %vm1733_vm14 = vweird.f32 %v3408_v22  ;;  %v1770_v56 = vmul.f32 %v1755_v6, %v4539_v20  ;;  %v1788_v1 = vrot.slane %v1755_v6, 1 }
 0xc3f   :  { %vm1734_vm1 = vmor %vm1732_vm15, %vm1733_vm14 }
 0xc40   :  { %v1729_v38 = vsub.f32 1.0, %v1728_v34 }
 0xc42   :  { %v1730_v40 = vmul.f32 %v3408_v22, %v1729_v38 }
 0xc44   :  { %v1731_v46 = vadd.f32 %v3408_v22, %v1730_v40 }
 0xc46   :  { %v1735_v49 = vsel %vm1734_vm1, %v3408_v22, %v1731_v46 }
 0xc47   :  { %v1740_v54 = vsel %vm1737_vm2, %v1739_v35, %v1735_v49 }
 0xc48   :  { %v1769_v58 = vmul.f32 %v1740_v54, %v4544_v11  ;;  %v1787_v0 = vrot.slane %v1740_v54, 1 }
 0xc7c   :  { %v1762_v51 = vpop.permute.xlu2 %1761 }
 0xc7d   :  { %v1764_v52 = vrot.slane %v1762_v51, 1 }
 0xc7f   :  { %3409 = vtanh.f32 %v1764_v52 }
 0xc85   :  { %v3410_v15 = vpop.eup %3409 }
 0xc86   :  { %v1772_v33 = vmul.f32 %v3410_v15, %v1755_v6 }
 0xc88   :  { %1777 = vrot.lane.b32.xlu1 %v1772_v33, %s3759_s1 }
 0xc92   :  { %v1760_v43 = vpop.permute.xlu1 %1759 }
 0xc93   :  { %v1763_v44 = vrot.slane %v1760_v43, 1 }
 0xc95   :  { %3411 = vtanh.f32 %v1763_v44 }
 0xc9b   :  { %v3412_v50 = vpop.eup %3411 }
 0xc9c   :  { %v1771_v55 = vmul.f32 %v3412_v50, %v1740_v54 }
 0xc9e   :  { %1775 = vrot.lane.b32.xlu0 %v1771_v55, %s3759_s1 }
 0xcfa   :  { %v1778_v57 = vpop.permute.xlu1 %1777 }
 0xcfb   :  { %v4573_v28 = vadd.f32 %v1778_v57, %v1770_v56 }
 0xcfd   :  { %3413 = vtanh.f32 %v4573_v28 }
 0xd03   :  { %v3414_v19 = vpop.eup %3413 }
 0xd04   :  { %1795 = vrot.lane.b32.xlu0 %v3414_v19, %s3759_s1 }
 0xd10   :  { %v1776_v59 = vpop.permute.xlu0 %1775 }
 0xd11   :  { %v4578_v61 = vadd.f32 %v1776_v59, %v1769_v58 }
 0xd13   :  { %3415 = vtanh.f32 %v4578_v61 }
 0xd19   :  { %v3416_v62 = vpop.eup %3415 }
 0xd1a   :  { %1793 = vrot.lane.b32.xlu2 %v3416_v62, %s3759_s1 }
 0xd74   :  { %v1794_v20 = vpop.permute.xlu2 %1793 }
 0xd75   :  { %v1799_v60 = vmul.f32 %v1794_v20, %v1787_v0 }
 0xd76   :  { %v1796_v3 = vpop.permute.xlu0 %1795 }
 0xd77   :  { %1807 = vst [vmem:[#allocation1] ss:$9 sm:$0xff] %v1799_v60  ;;  %v1800_v21 = vmul.f32 %v1796_v3, %v1788_v1 }
 0xd79   :  { %1809 = vst [vmem:[#allocation1 + $0x1] ss:$9 sm:$0xff] %v1800_v21 }
 0xd80   :  { %v1810_v29 = vld [vmem:[#allocation1] sm:$0xff] }
 0xd81   :  { %3228 = vmatmul.msk.f32.vlgmr.msra.gmra.mxu3 %vm273_vm0, %v1810_v29  ;;  %3229 = vmatmul.msk.f32.vlgmr.msra.gmra.mxu0 %vm273_vm0, %v1810_v29 }
 0xd82   :  { %2397 = vmatpush.msra.mxu3 %v4371_v4  ;;  %2417 = vmatpush.msra.mxu0 %v4377_v18 }
 0xd84   :  { %2398 = vmatpush.msra.mxu3 %v4383_v25  ;;  %2418 = vmatpush.msra.mxu0 %v4389_v30 }
 0xd86   :  { %2399 = vmatpush.msra.mxu3 %v4395_v36  ;;  %2419 = vmatpush.msra.mxu0 %v4401_v53 }
 0xd88   :  { %2400 = vmatpush.msra.mxu3 %v4441_v7  ;;  %2420 = vmatpush.msra.mxu0 %v4447_v12 }
 0xd8a   :  { %2401 = vmatpush.msra.mxu3 %v4453_v10  ;;  %2421 = vmatpush.msra.mxu0 %v4459_v17 }
 0xd8c   :  { %2402 = vmatpush.msra.mxu3 %v4465_v16  ;;  %2422 = vmatpush.msra.mxu0 %v4471_v45 }
 0xd8e   :  { %2403 = vmatpush.msra.mxu3 %v4477_v26  ;;  %2423 = vmatpush.msra.mxu0 %v4483_v14 }
 0xd90   :  { %2404 = vmatpush.msra.mxu3 %v4489_v24  ;;  %2424 = vmatpush.msra.mxu0 %v4495_v31 }
 0xdfe   :  { %v1850_v11 = vpop.f32.mrf.mxu0 }
 0xdff   :  { %v1855_v23 = vrot.slane %v1850_v11, 7 }
 0xe04   :  { %v1830_v2 = vpop.f32.mrf.mxu3 }
 0xe05   :  { %v1856_v41 = vsel %vm990_vm7, %v1830_v2, %v1855_v23  ;;  %v1857_v42 = vsel %vm992_vm8, %v1830_v2, %v1855_v23 }
 0xe06   :  { %v1858_v32 = vrot.slane %v1857_v42, 1  ;;  %v1861_v5 = vadd.f32 %v1856_v41, %v1802_v9 }
 0xe08   :  { %1903 = vrot.lane.b32.xlu1 %v1861_v5, %s3759_s1  ;;  %v1862_v51 = vadd.f32 %v1858_v32, %v1804_v48  ;;  %v3230_v37 = vmul.f32 -1.442695, %v1861_v5 }
 0xe0a   :  { %1905 = vrot.lane.b32.xlu2 %v1862_v51, %s3759_s1  ;;  %v3231_v52 = vmul.f32 -1.442695, %v1862_v51 }
 0xe0c   :  { %3417 = vpow2.f32 %v3231_v52 }
 0xe12   :  { %v3418_v63 = vpop.eup %3417 }
 0xe13   :  { %v1870_v8 = vadd.f32 1.0, %v3418_v63 }
 0xe15   :  { %3419 = vrcp.f32 %v1870_v8  ;;  %v1897_v43 = vand.u32 2147483648, %v1870_v8  ;;  %vm1891_vm4 = vweird.f32 %v1870_v8  ;;  %v1895_v44 = vand.u32 2147483647, %v1870_v8 }
 0xe16   :  { %3421 = vpow2.f32 %v3230_v37  ;;  %v1948_v37 = vld [vmem:[#allocation5 + $0x47] ss:$8 sm:$0x3] }
 0xe17   :  { %v1898_v47 = vor.u32 1.1754944e-38, %v1897_v43  ;;  %vm1896_vm6 = vcmp.eq.f32.partialorder %v1895_v44, 8.507059e+37 }
 0xe1b   :  { %v3420_v39 = vpop.eup %3419 }
 0xe1c   :  { %v1887_v27 = vmul.f32 %v3420_v39, %v1870_v8  ;;  %v3422_v15 = vpop.eup %3421  ;;  %vm1892_vm3 = vweird.f32 %v3420_v39 }
 0xe1d   :  { %v1869_v6 = vadd.f32 1.0, %v3422_v15  ;;  %vm1893_vm5 = vmor %vm1891_vm4, %vm1892_vm3 }
 0xe1e   :  { %v1888_v22 = vsub.f32 1.0, %v1887_v27 }
 0xe1f   :  { %3423 = vrcp.f32 %v1869_v6  ;;  %v1882_v59 = vand.u32 2147483648, %v1869_v6  ;;  %vm1876_vm10 = vweird.f32 %v1869_v6  ;;  %v1880_v62 = vand.u32 2147483647, %v1869_v6 }
 0xe20   :  { %v1889_v33 = vmul.f32 %v3420_v39, %v1888_v22 }
 0xe21   :  { %v1883_v20 = vor.u32 1.1754944e-38, %v1882_v59  ;;  %vm1881_vm12 = vcmp.eq.f32.partialorder %v1880_v62, 8.507059e+37 }
 0xe22   :  { %v1890_v40 = vadd.f32 %v3420_v39, %v1889_v33 }
 0xe24   :  { %v1894_v46 = vsel %vm1893_vm5, %v3420_v39, %v1890_v40 }
 0xe25   :  { %v3424_v13 = vpop.eup %3423  ;;  %v1899_v35 = vsel %vm1896_vm6, %v1898_v47, %v1894_v46 }
 0xe26   :  { %v1872_v54 = vmul.f32 %v3424_v13, %v1869_v6  ;;  %vm1877_vm9 = vweird.f32 %v3424_v13  ;;  %v1914_v21 = vmul.f32 %v1899_v35, %v4573_v28  ;;  %v1932_v48 = vrot.slane %v1899_v35, 1 }
 0xe27   :  { %vm1878_vm11 = vmor %vm1876_vm10, %vm1877_vm9 }
 0xe28   :  { %v1873_v55 = vsub.f32 1.0, %v1872_v54 }
 0xe2a   :  { %v1874_v56 = vmul.f32 %v3424_v13, %v1873_v55 }
 0xe2c   :  { %v1875_v58 = vadd.f32 %v3424_v13, %v1874_v56 }
 0xe2e   :  { %v1879_v0 = vsel %vm1878_vm11, %v3424_v13, %v1875_v58 }
 0xe2f   :  { %v1884_v1 = vsel %vm1881_vm12, %v1883_v20, %v1879_v0 }
 0xe30   :  { %v1913_v2 = vmul.f32 %v1884_v1, %v4578_v61  ;;  %v1931_v32 = vrot.slane %v1884_v1, 1 }
 0xe64   :  { %v1906_v34 = vpop.permute.xlu2 %1905 }
 0xe65   :  { %v1908_v38 = vrot.slane %v1906_v34, 1 }
 0xe67   :  { %3425 = vtanh.f32 %v1908_v38 }
 0xe6d   :  { %v3426_v49 = vpop.eup %3425 }
 0xe6e   :  { %v1916_v50 = vmul.f32 %v3426_v49, %v1899_v35 }
 0xe70   :  { %1921 = vrot.lane.b32.xlu1 %v1916_v50, %s3759_s1 }
 0xe7a   :  { %v1904_v57 = vpop.permute.xlu1 %1903 }
 0xe7b   :  { %v1907_v19 = vrot.slane %v1904_v57, 1 }
 0xe7d   :  { %3427 = vtanh.f32 %v1907_v19 }
 0xe83   :  { %v3428_v60 = vpop.eup %3427 }
 0xe84   :  { %v1915_v3 = vmul.f32 %v3428_v60, %v1884_v1 }
 0xe86   :  { %1919 = vrot.lane.b32.xlu0 %v1915_v3, %s3759_s1 }
 0xee2   :  { %v1922_v29 = vpop.permute.xlu1 %1921 }
 0xee3   :  { %v4607_v11 = vadd.f32 %v1922_v29, %v1914_v21 }
 0xee5   :  { %3429 = vtanh.f32 %v4607_v11 }
 0xeeb   :  { %v3430_v23 = vpop.eup %3429 }
 0xeec   :  { %1939 = vrot.lane.b32.xlu0 %v3430_v23, %s3759_s1 }
 0xef8   :  { %v1920_v9 = vpop.permute.xlu0 %1919 }
 0xef9   :  { %v4612_v41 = vadd.f32 %v1920_v9, %v1913_v2 }
 0xefb   :  { %3431 = vtanh.f32 %v4612_v41 }
 0xf01   :  { %v3432_v42 = vpop.eup %3431 }
 0xf02   :  { %1937 = vrot.lane.b32.xlu2 %v3432_v42, %s3759_s1 }
 0xf5c   :  { %v1938_v28 = vpop.permute.xlu2 %1937 }
 0xf5d   :  { %v1943_v5 = vmul.f32 %v1938_v28, %v1931_v32 }
 0xf5e   :  { %v1940_v51 = vpop.permute.xlu0 %1939 }
 0xf5f   :  { %1951 = vst [vmem:[#allocation1] ss:$9 sm:$0xff] %v1943_v5  ;;  %v1944_v52 = vmul.f32 %v1940_v51, %v1932_v48 }
 0xf61   :  { %1953 = vst [vmem:[#allocation1 + $0x1] ss:$9 sm:$0xff] %v1944_v52 }
 0xf68   :  { %v1954_v63 = vld [vmem:[#allocation1] sm:$0xff] }
 0xf69   :  { %3232 = vmatmul.msk.f32.vlgmr.msrb.gmra.mxu1 %vm273_vm0, %v1954_v63  ;;  %3233 = vmatmul.msk.f32.vlgmr.msrb.gmra.mxu2 %vm273_vm0, %v1954_v63 }
 0xf6a   :  { %2541 = vmatpush.msrb.mxu1 %v4371_v4  ;;  %2561 = vmatpush.msrb.mxu2 %v4377_v18 }
 0xf6c   :  { %2542 = vmatpush.msrb.mxu1 %v4383_v25  ;;  %2562 = vmatpush.msrb.mxu2 %v4389_v30 }
 0xf6e   :  { %2543 = vmatpush.msrb.mxu1 %v4395_v36  ;;  %2563 = vmatpush.msrb.mxu2 %v4401_v53  ;;  %v1946_v36 = vld [vmem:[#allocation5 + $0x7] ss:$8 sm:$0x3] }
 0xf70   :  { %2544 = vmatpush.msrb.mxu1 %v4441_v7  ;;  %2564 = vmatpush.msrb.mxu2 %v4447_v12 }
 0xf72   :  { %2545 = vmatpush.msrb.mxu1 %v4453_v10  ;;  %2565 = vmatpush.msrb.mxu2 %v4459_v17 }
 0xf74   :  { %2546 = vmatpush.msrb.mxu1 %v4465_v16  ;;  %2566 = vmatpush.msrb.mxu2 %v4471_v45 }
 0xf76   :  { %2547 = vmatpush.msrb.mxu1 %v4477_v26  ;;  %2567 = vmatpush.msrb.mxu2 %v4483_v14 }
 0xf78   :  { %2548 = vmatpush.msrb.mxu1 %v4489_v24  ;;  %2568 = vmatpush.msrb.mxu2 %v4495_v31 }
 0xfe6   :  { %v1974_v25 = vpop.f32.mrf.mxu1 }
 0xfec   :  { %v1994_v4 = vpop.f32.mrf.mxu2 }
 0xfed   :  { %v1999_v18 = vrot.slane %v1994_v4, 7 }
 0xfef   :  { %v2001_v30 = vsel %vm992_vm8, %v1974_v25, %v1999_v18  ;;  %v2000_v53 = vsel %vm990_vm7, %v1974_v25, %v1999_v18 }
 0xff0   :  { %v2002_v61 = vrot.slane %v2001_v30, 1  ;;  %v2005_v8 = vadd.f32 %v2000_v53, %v1946_v36 }
 0xff2   :  { %2047 = vrot.lane.b32.xlu1 %v2005_v8, %s3759_s1  ;;  %v2006_v39 = vadd.f32 %v2002_v61, %v1948_v37  ;;  %v3234_v6 = vmul.f32 -1.442695, %v2005_v8  ;;  %v4661_v61 = vld [vmem:[%s4912_s5 + $0x78] sm:$0xff]  ;;  %v4667_v8 = vld [vmem:[%s4912_s5 + $0x60] sm:$0xff]  ;;  %v4673_v37 = vld [vmem:[%s4912_s5 + $0x68] sm:$0xff] }
 0xff4   :  { %2049 = vrot.lane.b32.xlu2 %v2006_v39, %s3759_s1  ;;  %v3235_v27 = vmul.f32 -1.442695, %v2006_v39  ;;  %v4679_v39 = vld [vmem:[%s4912_s5 + $0x50] sm:$0xff] }
 0xff6   :  { %3433 = vpow2.f32 %v3235_v27  ;;  %v4685_v27 = vld [vmem:[%s4912_s5 + $0x58] sm:$0xff] }
 0xffc   :  { %v3434_v22 = vpop.eup %3433 }
 0xffd   :  { %v2014_v15 = vadd.f32 1.0, %v3434_v22 }
 0xfff   :  { %3435 = vrcp.f32 %v2014_v15  ;;  %v2041_v49 = vand.u32 2147483648, %v2014_v15  ;;  %vm2035_vm14 = vweird.f32 %v2014_v15  ;;  %v2039_v35 = vand.u32 2147483647, %v2014_v15 }
0x1000   :  { %3437 = vpow2.f32 %v3234_v6 }
0x1001   :  { %v2042_v54 = vor.u32 1.1754944e-38, %v2041_v49  ;;  %vm2040_vm1 = vcmp.eq.f32.partialorder %v2039_v35, 8.507059e+37 }
0x1005   :  { %v3436_v33 = vpop.eup %3435 }
0x1006   :  { %v2031_v34 = vmul.f32 %v3436_v33, %v2014_v15  ;;  %v3438_v40 = vpop.eup %3437  ;;  %vm2036_vm13 = vweird.f32 %v3436_v33 }
0x1007   :  { %v2013_v43 = vadd.f32 1.0, %v3438_v40  ;;  %vm2037_vm15 = vmor %vm2035_vm14, %vm2036_vm13 }
0x1008   :  { %v2032_v38 = vsub.f32 1.0, %v2031_v34 }
0x1009   :  { %3439 = vrcp.f32 %v2013_v43  ;;  %v2026_v1 = vand.u32 2147483648, %v2013_v43  ;;  %vm2020_vm3 = vweird.f32 %v2013_v43  ;;  %v2024_v3 = vand.u32 2147483647, %v2013_v43 }
0x100a   :  { %v2033_v44 = vmul.f32 %v3436_v33, %v2032_v38 }
0x100b   :  { %v2027_v29 = vor.u32 1.1754944e-38, %v2026_v1  ;;  %vm2025_vm5 = vcmp.eq.f32.partialorder %v2024_v3, 8.507059e+37 }
0x100c   :  { %v2034_v13 = vadd.f32 %v3436_v33, %v2033_v44 }
0x100e   :  { %v2038_v50 = vsel %vm2037_vm15, %v3436_v33, %v2034_v13  ;;  %v2092_v33 = vld [vmem:[#allocation5 + $0x60] ss:$8 sm:$0x3] }
0x100f   :  { %v3440_v55 = vpop.eup %3439  ;;  %v2043_v57 = vsel %vm2040_vm1, %v2042_v54, %v2038_v50 }
0x1010   :  { %v2016_v58 = vmul.f32 %v3440_v55, %v2013_v43  ;;  %vm2021_vm2 = vweird.f32 %v3440_v55  ;;  %v2058_v42 = vmul.f32 %v2043_v57, %v4607_v11  ;;  %v2076_v25 = vrot.slane %v2043_v57, 1 }
0x1011   :  { %vm2022_vm4 = vmor %vm2020_vm3, %vm2021_vm2 }
0x1012   :  { %v2017_v59 = vsub.f32 1.0, %v2016_v58 }
0x1014   :  { %v2018_v62 = vmul.f32 %v3440_v55, %v2017_v59 }
0x1016   :  { %v2019_v60 = vadd.f32 %v3440_v55, %v2018_v62 }
0x1018   :  { %v2023_v21 = vsel %vm2022_vm4, %v3440_v55, %v2019_v60 }
0x1019   :  { %v2028_v2 = vsel %vm2025_vm5, %v2027_v29, %v2023_v21 }
0x101a   :  { %v2057_v48 = vmul.f32 %v2028_v2, %v4612_v41  ;;  %v2075_v4 = vrot.slane %v2028_v2, 1  ;;  %v4655_v41 = vld [vmem:[%s4912_s5 + $0x70] sm:$0xff] }
0x104e   :  { %v2050_v46 = vpop.permute.xlu2 %2049 }
0x104f   :  { %v2052_v47 = vrot.slane %v2050_v46, 1 }
0x1051   :  { %3441 = vtanh.f32 %v2052_v47 }
0x1057   :  { %v3442_v56 = vpop.eup %3441 }
0x1058   :  { %v2060_v19 = vmul.f32 %v3442_v56, %v2043_v57 }
0x105a   :  { %2065 = vrot.lane.b32.xlu1 %v2060_v19, %s3759_s1 }
0x1064   :  { %v2048_v0 = vpop.permute.xlu1 %2047 }
0x1065   :  { %v2051_v20 = vrot.slane %v2048_v0, 1 }
0x1067   :  { %3443 = vtanh.f32 %v2051_v20 }
0x106d   :  { %v3444_v23 = vpop.eup %3443 }
0x106e   :  { %v2059_v9 = vmul.f32 %v3444_v23, %v2028_v2 }
0x1070   :  { %2063 = vrot.lane.b32.xlu0 %v2059_v9, %s3759_s1 }
0x10cc   :  { %v2066_v32 = vpop.permute.xlu1 %2065 }
0x10cd   :  { %v4641_v28 = vadd.f32 %v2066_v32, %v2058_v42 }
0x10cf   :  { %3445 = vtanh.f32 %v4641_v28 }
0x10d5   :  { %v3446_v5 = vpop.eup %3445 }
0x10d6   :  { %2083 = vrot.lane.b32.xlu0 %v3446_v5, %s3759_s1 }
0x10e2   :  { %v2064_v51 = vpop.permute.xlu0 %2063 }
0x10e3   :  { %v4646_v52 = vadd.f32 %v2064_v51, %v2057_v48 }
0x10e5   :  { %3447 = vtanh.f32 %v4646_v52 }
0x10eb   :  { %v3448_v63 = vpop.eup %3447 }
0x10ec   :  { %2081 = vrot.lane.b32.xlu2 %v3448_v63, %s3759_s1 }
0x1146   :  { %v2082_v11 = vpop.permute.xlu2 %2081 }
0x1147   :  { %v2087_v18 = vmul.f32 %v2082_v11, %v2075_v4 }
0x1148   :  { %v2084_v30 = vpop.permute.xlu0 %2083 }
0x1149   :  { %2095 = vst [vmem:[#allocation1] ss:$9 sm:$0xff] %v2087_v18  ;;  %v2088_v36 = vmul.f32 %v2084_v30, %v2076_v25 }
0x114b   :  { %2097 = vst [vmem:[#allocation1 + $0x1] ss:$9 sm:$0xff] %v2088_v36 }
0x1152   :  { %v2098_v53 = vld [vmem:[#allocation1] sm:$0xff] }
0x1153   :  { %3236 = vmatmul.msk.f32.vlgmr.msrb.gmra.mxu3 %vm273_vm0, %v2098_v53  ;;  %3237 = vmatmul.msk.f32.vlgmr.msrb.gmra.mxu0 %vm273_vm0, %v2098_v53 }
0x1154   :  { %2685 = vmatpush.msrb.mxu3 %v4655_v41  ;;  %2705 = vmatpush.msrb.mxu0 %v4661_v61 }
0x1156   :  { %2686 = vmatpush.msrb.mxu3 %v4667_v8  ;;  %2706 = vmatpush.msrb.mxu0 %v4673_v37 }
0x1158   :  { %2687 = vmatpush.msrb.mxu3 %v4679_v39  ;;  %2707 = vmatpush.msrb.mxu0 %v4685_v27 }
0x115a   :  { %2688 = vmatpush.msrb.mxu3 %v4441_v7  ;;  %2708 = vmatpush.msrb.mxu0 %v4447_v12  ;;  %v2090_v12 = vld [vmem:[#allocation5 + $0x20] ss:$8 sm:$0x3] }
0x115c   :  { %2689 = vmatpush.msrb.mxu3 %v4453_v10  ;;  %2709 = vmatpush.msrb.mxu0 %v4459_v17 }
0x115e   :  { %2690 = vmatpush.msrb.mxu3 %v4465_v16  ;;  %2710 = vmatpush.msrb.mxu0 %v4471_v45 }
0x1160   :  { %2691 = vmatpush.msrb.mxu3 %v4477_v26  ;;  %2711 = vmatpush.msrb.mxu0 %v4483_v14 }
0x1162   :  { %2692 = vmatpush.msrb.mxu3 %v4489_v24  ;;  %2712 = vmatpush.msrb.mxu0 %v4495_v31 }
0x11d0   :  { %v2138_v22 = vpop.f32.mrf.mxu0 }
0x11d1   :  { %v2143_v7 = vrot.slane %v2138_v22, 7 }
0x11d6   :  { %v2118_v15 = vpop.f32.mrf.mxu3 }
0x11d7   :  { %v2144_v10 = vsel %vm990_vm7, %v2118_v15, %v2143_v7  ;;  %v2145_v17 = vsel %vm992_vm8, %v2118_v15, %v2143_v7  ;;  %v3584_v15 = vld [vmem:[%s4912_s5 + $0x48] sm:$0xff] }
0x11d8   :  { %v2146_v6 = vrot.slane %v2145_v17, 1  ;;  %v2149_v16 = vadd.f32 %v2144_v10, %v2090_v12  ;;  %v3591_v12 = vld [vmem:[%s4912_s5] sm:$0xff]  ;;  %v3592_v10 = vld [vmem:[%s4912_s5 + $0x8] sm:$0xff] }
0x11da   :  { %2191 = vrot.lane.b32.xlu1 %v2149_v16, %s3759_s1  ;;  %v2150_v45 = vadd.f32 %v2146_v6, %v2092_v33  ;;  %v3238_v31 = vmul.f32 -1.442695, %v2149_v16 }
0x11dc   :  { %2193 = vrot.lane.b32.xlu2 %v2150_v45, %s3759_s1  ;;  %v3239_v26 = vmul.f32 -1.442695, %v2150_v45  ;;  %v2234_v45 = vld [vmem:[#allocation5 + $0x21] ss:$8 sm:$0x3] }
0x11de   :  { %3449 = vpow2.f32 %v3239_v26 }
0x11e4   :  { %v3450_v14 = vpop.eup %3449 }
0x11e5   :  { %v2158_v24 = vadd.f32 1.0, %v3450_v14 }
0x11e7   :  { %3451 = vrcp.f32 %v2158_v24  ;;  %v2185_v35 = vand.u32 2147483648, %v2158_v24  ;;  %vm2179_vm9 = vweird.f32 %v2158_v24  ;;  %v2183_v50 = vand.u32 2147483647, %v2158_v24 }
0x11e8   :  { %3453 = vpow2.f32 %v3238_v31  ;;  %v2236_v31 = vld [vmem:[#allocation5 + $0x61] ss:$8 sm:$0x3] }
0x11e9   :  { %v2186_v55 = vor.u32 1.1754944e-38, %v2185_v35  ;;  %vm2184_vm11 = vcmp.eq.f32.partialorder %v2183_v50, 8.507059e+37 }
0x11ed   :  { %v3452_v34 = vpop.eup %3451 }
0x11ee   :  { %v2175_v38 = vmul.f32 %v3452_v34, %v2158_v24  ;;  %v3454_v43 = vpop.eup %3453  ;;  %vm2180_vm6 = vweird.f32 %v3452_v34 }
0x11ef   :  { %v2157_v44 = vadd.f32 1.0, %v3454_v43  ;;  %vm2181_vm10 = vmor %vm2179_vm9, %vm2180_vm6 }
0x11f0   :  { %v2176_v40 = vsub.f32 1.0, %v2175_v38 }
0x11f1   :  { %3455 = vrcp.f32 %v2157_v44  ;;  %v2170_v3 = vand.u32 2147483648, %v2157_v44  ;;  %vm2164_vm13 = vweird.f32 %v2157_v44  ;;  %v2168_v21 = vand.u32 2147483647, %v2157_v44 }
0x11f2   :  { %v2177_v46 = vmul.f32 %v3452_v34, %v2176_v40 }
0x11f3   :  { %v2171_v23 = vor.u32 1.1754944e-38, %v2170_v3  ;;  %vm2169_vm15 = vcmp.eq.f32.partialorder %v2168_v21, 8.507059e+37 }
0x11f4   :  { %v2178_v49 = vadd.f32 %v3452_v34, %v2177_v46 }
0x11f6   :  { %v2182_v54 = vsel %vm2181_vm10, %v3452_v34, %v2178_v49 }
0x11f7   :  { %v3456_v56 = vpop.eup %3455  ;;  %v2187_v19 = vsel %vm2184_vm11, %v2186_v55, %v2182_v54 }
0x11f8   :  { %v2160_v59 = vmul.f32 %v3456_v56, %v2157_v44  ;;  %vm2165_vm12 = vweird.f32 %v3456_v56  ;;  %v2202_v32 = vmul.f32 %v2187_v19, %v4641_v28  ;;  %v2220_v36 = vrot.slane %v2187_v19, 1 }
0x11f9   :  { %vm2166_vm14 = vmor %vm2164_vm13, %vm2165_vm12 }
0x11fa   :  { %v2161_v62 = vsub.f32 1.0, %v2160_v59 }
0x11fc   :  { %v2162_v0 = vmul.f32 %v3456_v56, %v2161_v62 }
0x11fe   :  { %v2163_v1 = vadd.f32 %v3456_v56, %v2162_v0 }
0x1200   :  { %v2167_v29 = vsel %vm2166_vm14, %v3456_v56, %v2163_v1 }
0x1201   :  { %v2172_v9 = vsel %vm2169_vm15, %v2171_v23, %v2167_v29 }
0x1202   :  { %v2201_v63 = vmul.f32 %v2172_v9, %v4646_v52  ;;  %v2219_v25 = vrot.slane %v2172_v9, 1  ;;  %v3583_v52 = vld [vmem:[%s4912_s5 + $0x40] sm:$0xff] }
0x1236   :  { %v2194_v47 = vpop.permute.xlu2 %2193 }
0x1237   :  { %v2196_v13 = vrot.slane %v2194_v47, 1 }
0x1239   :  { %3457 = vtanh.f32 %v2196_v13 }
0x123f   :  { %v3458_v57 = vpop.eup %3457 }
0x1240   :  { %v2204_v58 = vmul.f32 %v3458_v57, %v2187_v19 }
0x1242   :  { %2209 = vrot.lane.b32.xlu1 %v2204_v58, %s3759_s1 }
0x124c   :  { %v2192_v20 = vpop.permute.xlu1 %2191 }
0x124d   :  { %v2195_v60 = vrot.slane %v2192_v20, 1 }
0x124f   :  { %3459 = vtanh.f32 %v2195_v60 }
0x1255   :  { %v3460_v2 = vpop.eup %3459 }
0x1256   :  { %v2203_v42 = vmul.f32 %v3460_v2, %v2172_v9 }
0x1258   :  { %2207 = vrot.lane.b32.xlu0 %v2203_v42, %s3759_s1 }
0x12b4   :  { %v2210_v5 = vpop.permute.xlu1 %2209 }
0x12b5   :  { %v4705_v48 = vadd.f32 %v2210_v5, %v2202_v32 }
0x12b7   :  { %3461 = vtanh.f32 %v4705_v48 }
0x12bd   :  { %v3462_v51 = vpop.eup %3461 }
0x12be   :  { %2227 = vrot.lane.b32.xlu0 %v3462_v51, %s3759_s1 }
0x12ca   :  { %v2208_v4 = vpop.permute.xlu0 %2207 }
0x12cb   :  { %v4710_v11 = vadd.f32 %v2208_v4, %v2201_v63 }
0x12cd   :  { %3463 = vtanh.f32 %v4710_v11 }
0x12d3   :  { %v3464_v18 = vpop.eup %3463 }
0x12d4   :  { %2225 = vrot.lane.b32.xlu2 %v3464_v18, %s3759_s1 }
0x132e   :  { %v2226_v28 = vpop.permute.xlu2 %2225 }
0x132f   :  { %v2231_v30 = vmul.f32 %v2226_v28, %v2219_v25 }
0x1330   :  { %v2228_v53 = vpop.permute.xlu0 %2227 }
0x1331   :  { %2239 = vst [vmem:[#allocation1] ss:$9 sm:$0xff] %v2231_v30  ;;  %v2232_v22 = vmul.f32 %v2228_v53, %v2220_v36 }
0x1333   :  { %2241 = vst [vmem:[#allocation1 + $0x1] ss:$9 sm:$0xff] %v2232_v22 }
0x133a   :  { %v2242_v7 = vld [vmem:[#allocation1] sm:$0xff] }
0x133b   :  { %3240 = vmatmul.msk.f32.vlgmr.msra.gmra.mxu1 %vm273_vm0, %v2242_v7  ;;  %3241 = vmatmul.msk.f32.vlgmr.msra.gmra.mxu2 %vm273_vm0, %v2242_v7 }
0x133c   :  { %2829 = vmatpush.msra.mxu1 %v4655_v41  ;;  %2849 = vmatpush.msra.mxu2 %v4661_v61  ;;  %v3585_v41 = vld [vmem:[%s4912_s5 + $0x30] sm:$0xff]  ;;  %v3586_v61 = vld [vmem:[%s4912_s5 + $0x38] sm:$0xff] }
0x133e   :  { %2830 = vmatpush.msra.mxu1 %v4667_v8  ;;  %2850 = vmatpush.msra.mxu2 %v4673_v37  ;;  %v3587_v8 = vld [vmem:[%s4912_s5 + $0x20] sm:$0xff]  ;;  %v3588_v37 = vld [vmem:[%s4912_s5 + $0x28] sm:$0xff] }
0x1340   :  { %2831 = vmatpush.msra.mxu1 %v4679_v39  ;;  %2851 = vmatpush.msra.mxu2 %v4685_v27  ;;  %v3589_v39 = vld [vmem:[%s4912_s5 + $0x10] sm:$0xff]  ;;  %v3590_v27 = vld [vmem:[%s4912_s5 + $0x18] sm:$0xff] }
0x1342   :  { %2832 = vmatpush.msra.mxu1 %v3583_v52  ;;  %2852 = vmatpush.msra.mxu2 %v3584_v15 }
0x1344   :  { %2833 = vmatpush.msra.mxu1 %v3585_v41  ;;  %2853 = vmatpush.msra.mxu2 %v3586_v61 }
0x1346   :  { %2834 = vmatpush.msra.mxu1 %v3587_v8  ;;  %2854 = vmatpush.msra.mxu2 %v3588_v37 }
0x1348   :  { %2835 = vmatpush.msra.mxu1 %v3589_v39  ;;  %2855 = vmatpush.msra.mxu2 %v3590_v27 }
0x134a   :  { %2836 = vmatpush.msra.mxu1 %v3591_v12  ;;  %2856 = vmatpush.msra.mxu2 %v3592_v10  ;;  %v2378_v12 = vld [vmem:[#allocation5 + $0x22] ss:$8 sm:$0x3] }
0x13b8   :  { %v2262_v16 = vpop.f32.mrf.mxu1 }
0x13be   :  { %v2282_v17 = vpop.f32.mrf.mxu2 }
0x13bf   :  { %v2287_v6 = vrot.slane %v2282_v17, 7 }
0x13c1   :  { %v2289_v33 = vsel %vm992_vm8, %v2262_v16, %v2287_v6  ;;  %v2288_v26 = vsel %vm990_vm7, %v2262_v16, %v2287_v6 }
0x13c2   :  { %v2290_v14 = vrot.slane %v2289_v33, 1  ;;  %v2293_v24 = vadd.f32 %v2288_v26, %v2234_v45  ;;  %v2380_v33 = vld [vmem:[#allocation5 + $0x62] ss:$8 sm:$0x3] }
0x13c4   :  { %2335 = vrot.lane.b32.xlu1 %v2293_v24, %s3759_s1  ;;  %v2294_v34 = vadd.f32 %v2290_v14, %v2236_v31  ;;  %v3242_v44 = vmul.f32 -1.442695, %v2293_v24 }
0x13c6   :  { %2337 = vrot.lane.b32.xlu2 %v2294_v34, %s3759_s1  ;;  %v3243_v38 = vmul.f32 -1.442695, %v2294_v34 }
0x13c8   :  { %3465 = vpow2.f32 %v3243_v38 }
0x13ce   :  { %v3466_v40 = vpop.eup %3465 }
0x13cf   :  { %v2302_v43 = vadd.f32 1.0, %v3466_v40 }
0x13d1   :  { %3467 = vrcp.f32 %v2302_v43  ;;  %v2329_v57 = vand.u32 2147483648, %v2302_v43  ;;  %vm2323_vm2 = vweird.f32 %v2302_v43  ;;  %v2327_v19 = vand.u32 2147483647, %v2302_v43 }
0x13d2   :  { %3469 = vpow2.f32 %v3242_v44 }
0x13d3   :  { %v2330_v59 = vor.u32 1.1754944e-38, %v2329_v57  ;;  %vm2328_vm4 = vcmp.eq.f32.partialorder %v2327_v19, 8.507059e+37 }
0x13d7   :  { %v3468_v46 = vpop.eup %3467 }
0x13d8   :  { %v2319_v47 = vmul.f32 %v3468_v46, %v2302_v43  ;;  %v3470_v49 = vpop.eup %3469  ;;  %vm2324_vm1 = vweird.f32 %v3468_v46 }
0x13d9   :  { %v2301_v35 = vadd.f32 1.0, %v3470_v49  ;;  %vm2325_vm3 = vmor %vm2323_vm2, %vm2324_vm1 }
0x13da   :  { %v2320_v13 = vsub.f32 1.0, %v2319_v47 }
0x13db   :  { %3471 = vrcp.f32 %v2301_v35  ;;  %v2314_v9 = vand.u32 2147483648, %v2301_v35  ;;  %vm2308_vm6 = vweird.f32 %v2301_v35  ;;  %v2312_v42 = vand.u32 2147483647, %v2301_v35 }
0x13dc   :  { %v2321_v50 = vmul.f32 %v3468_v46, %v2320_v13 }
0x13dd   :  { %v2315_v5 = vor.u32 1.1754944e-38, %v2314_v9  ;;  %vm2313_vm10 = vcmp.eq.f32.partialorder %v2312_v42, 8.507059e+37 }
0x13de   :  { %v2322_v56 = vadd.f32 %v3468_v46, %v2321_v50 }
0x13e0   :  { %v2326_v58 = vsel %vm2325_vm3, %v3468_v46, %v2322_v56 }
0x13e1   :  { %v3472_v62 = vpop.eup %3471  ;;  %v2331_v20 = vsel %vm2328_vm4, %v2330_v59, %v2326_v58 }
0x13e2   :  { %v2304_v1 = vmul.f32 %v3472_v62, %v2301_v35  ;;  %vm2309_vm5 = vweird.f32 %v3472_v62  ;;  %v2346_v18 = vmul.f32 %v2331_v20, %v4705_v48  ;;  %v2364_v41 = vrot.slane %v2331_v20, 1 }
0x13e3   :  { %vm2310_vm9 = vmor %vm2308_vm6, %vm2309_vm5 }
0x13e4   :  { %v2305_v3 = vsub.f32 1.0, %v2304_v1 }
0x13e6   :  { %v2306_v21 = vmul.f32 %v3472_v62, %v2305_v3 }
0x13e8   :  { %v2307_v2 = vadd.f32 %v3472_v62, %v2306_v21 }
0x13ea   :  { %v2311_v32 = vsel %vm2310_vm9, %v3472_v62, %v2307_v2 }
0x13eb   :  { %v2316_v63 = vsel %vm2313_vm10, %v2315_v5, %v2311_v32 }
0x13ec   :  { %v2345_v36 = vmul.f32 %v2316_v63, %v4710_v11  ;;  %v2363_v52 = vrot.slane %v2316_v63, 1 }
0x1420   :  { %v2338_v54 = vpop.permute.xlu2 %2337 }
0x1421   :  { %v2340_v55 = vrot.slane %v2338_v54, 1 }
0x1423   :  { %3473 = vtanh.f32 %v2340_v55 }
0x1429   :  { %v3474_v0 = vpop.eup %3473 }
0x142a   :  { %v2348_v60 = vmul.f32 %v3474_v0, %v2331_v20 }
0x142c   :  { %2353 = vrot.lane.b32.xlu1 %v2348_v60, %s3759_s1 }
0x1436   :  { %v2336_v29 = vpop.permute.xlu1 %2335 }
0x1437   :  { %v2339_v23 = vrot.slane %v2336_v29, 1 }
0x1439   :  { %3475 = vtanh.f32 %v2339_v23 }
0x143f   :  { %v3476_v51 = vpop.eup %3475 }
0x1440   :  { %v2347_v4 = vmul.f32 %v3476_v51, %v2316_v63 }
0x1442   :  { %2351 = vrot.lane.b32.xlu0 %v2347_v4, %s3759_s1 }
0x149e   :  { %v2354_v25 = vpop.permute.xlu1 %2353 }
0x149f   :  { %v4759_v28 = vadd.f32 %v2354_v25, %v2346_v18 }
0x14a1   :  { %3477 = vtanh.f32 %v4759_v28 }
0x14a7   :  { %v3478_v30 = vpop.eup %3477 }
0x14a8   :  { %2371 = vrot.lane.b32.xlu0 %v3478_v30, %s3759_s1 }
0x14b4   :  { %v2352_v53 = vpop.permute.xlu0 %2351 }
0x14b5   :  { %v4764_v22 = vadd.f32 %v2352_v53, %v2345_v36 }
0x14b7   :  { %3479 = vtanh.f32 %v4764_v22 }
0x14bd   :  { %v3480_v7 = vpop.eup %3479 }
0x14be   :  { %2369 = vrot.lane.b32.xlu2 %v3480_v7, %s3759_s1 }
0x1518   :  { %v2370_v48 = vpop.permute.xlu2 %2369 }
0x1519   :  { %v2375_v15 = vmul.f32 %v2370_v48, %v2363_v52 }
0x151a   :  { %v2372_v61 = vpop.permute.xlu0 %2371 }
0x151b   :  { %2383 = vst [vmem:[#allocation1] ss:$9 sm:$0xff] %v2375_v15  ;;  %v2376_v8 = vmul.f32 %v2372_v61, %v2364_v41 }
0x151d   :  { %2385 = vst [vmem:[#allocation1 + $0x1] ss:$9 sm:$0xff] %v2376_v8 }
0x1524   :  { %v2386_v37 = vld [vmem:[#allocation1] sm:$0xff] }
0x1525   :  { %3244 = vmatmul.msk.f32.vlgmr.msra.gmra.mxu3 %vm273_vm0, %v2386_v37  ;;  %3245 = vmatmul.msk.f32.vlgmr.msra.gmra.mxu0 %vm273_vm0, %v2386_v37  ;;  %v2522_v37 = vld [vmem:[#allocation5 + $0x23] ss:$8 sm:$0x3] }
0x15a2   :  { %v2426_v11 = vpop.f32.mrf.mxu0 }
0x15a3   :  { %v2431_v39 = vrot.slane %v2426_v11, 7 }
0x15a8   :  { %v2406_v27 = vpop.f32.mrf.mxu3 }
0x15a9   :  { %v2432_v10 = vsel %vm990_vm7, %v2406_v27, %v2431_v39  ;;  %v2433_v17 = vsel %vm992_vm8, %v2406_v27, %v2431_v39 }
0x15aa   :  { %v2434_v6 = vrot.slane %v2433_v17, 1  ;;  %v2437_v16 = vadd.f32 %v2432_v10, %v2378_v12  ;;  %v2524_v12 = vld [vmem:[#allocation5 + $0x63] ss:$8 sm:$0x3] }
0x15ac   :  { %2479 = vrot.lane.b32.xlu1 %v2437_v16, %s3759_s1  ;;  %v2438_v45 = vadd.f32 %v2434_v6, %v2380_v33  ;;  %v3246_v31 = vmul.f32 -1.442695, %v2437_v16 }
0x15ae   :  { %2481 = vrot.lane.b32.xlu2 %v2438_v45, %s3759_s1  ;;  %v3247_v26 = vmul.f32 -1.442695, %v2438_v45 }
0x15b0   :  { %3481 = vpow2.f32 %v3247_v26 }
0x15b6   :  { %v3482_v14 = vpop.eup %3481 }
0x15b7   :  { %v2446_v24 = vadd.f32 1.0, %v3482_v14 }
0x15b9   :  { %3483 = vrcp.f32 %v2446_v24  ;;  %v2473_v35 = vand.u32 2147483648, %v2446_v24  ;;  %vm2467_vm12 = vweird.f32 %v2446_v24  ;;  %v2471_v50 = vand.u32 2147483647, %v2446_v24 }
0x15ba   :  { %3485 = vpow2.f32 %v3246_v31 }
0x15bb   :  { %v2474_v55 = vor.u32 1.1754944e-38, %v2473_v35  ;;  %vm2472_vm14 = vcmp.eq.f32.partialorder %v2471_v50, 8.507059e+37 }
0x15bf   :  { %v3484_v34 = vpop.eup %3483 }
0x15c0   :  { %v2463_v38 = vmul.f32 %v3484_v34, %v2446_v24  ;;  %v3486_v43 = vpop.eup %3485  ;;  %vm2468_vm11 = vweird.f32 %v3484_v34 }
0x15c1   :  { %v2445_v44 = vadd.f32 1.0, %v3486_v43  ;;  %vm2469_vm13 = vmor %vm2467_vm12, %vm2468_vm11 }
0x15c2   :  { %v2464_v40 = vsub.f32 1.0, %v2463_v38 }
0x15c3   :  { %3487 = vrcp.f32 %v2445_v44  ;;  %v2458_v3 = vand.u32 2147483648, %v2445_v44  ;;  %vm2452_vm1 = vweird.f32 %v2445_v44  ;;  %v2456_v21 = vand.u32 2147483647, %v2445_v44 }
0x15c4   :  { %v2465_v46 = vmul.f32 %v3484_v34, %v2464_v40 }
0x15c5   :  { %v2459_v23 = vor.u32 1.1754944e-38, %v2458_v3  ;;  %vm2457_vm3 = vcmp.eq.f32.partialorder %v2456_v21, 8.507059e+37 }
0x15c6   :  { %v2466_v49 = vadd.f32 %v3484_v34, %v2465_v46 }
0x15c8   :  { %v2470_v54 = vsel %vm2469_vm13, %v3484_v34, %v2466_v49 }
0x15c9   :  { %v3488_v56 = vpop.eup %3487  ;;  %v2475_v19 = vsel %vm2472_vm14, %v2474_v55, %v2470_v54 }
0x15ca   :  { %v2448_v59 = vmul.f32 %v3488_v56, %v2445_v44  ;;  %vm2453_vm15 = vweird.f32 %v3488_v56  ;;  %v2490_v32 = vmul.f32 %v2475_v19, %v4759_v28  ;;  %v2508_v7 = vrot.slane %v2475_v19, 1 }
0x15cb   :  { %vm2454_vm2 = vmor %vm2452_vm1, %vm2453_vm15 }
0x15cc   :  { %v2449_v62 = vsub.f32 1.0, %v2448_v59 }
0x15ce   :  { %v2450_v0 = vmul.f32 %v3488_v56, %v2449_v62 }
0x15d0   :  { %v2451_v1 = vadd.f32 %v3488_v56, %v2450_v0 }
0x15d2   :  { %v2455_v29 = vsel %vm2454_vm2, %v3488_v56, %v2451_v1 }
0x15d3   :  { %v2460_v9 = vsel %vm2457_vm3, %v2459_v23, %v2455_v29 }
0x15d4   :  { %v2489_v4 = vmul.f32 %v2460_v9, %v4764_v22  ;;  %v2507_v36 = vrot.slane %v2460_v9, 1 }
0x1608   :  { %v2482_v47 = vpop.permute.xlu2 %2481 }
0x1609   :  { %v2484_v13 = vrot.slane %v2482_v47, 1 }
0x160b   :  { %3489 = vtanh.f32 %v2484_v13 }
0x1611   :  { %v3490_v57 = vpop.eup %3489 }
0x1612   :  { %v2492_v58 = vmul.f32 %v3490_v57, %v2475_v19 }
0x1614   :  { %2497 = vrot.lane.b32.xlu1 %v2492_v58, %s3759_s1 }
0x161e   :  { %v2480_v20 = vpop.permute.xlu1 %2479 }
0x161f   :  { %v2483_v60 = vrot.slane %v2480_v20, 1 }
0x1621   :  { %3491 = vtanh.f32 %v2483_v60 }
0x1627   :  { %v3492_v2 = vpop.eup %3491 }
0x1628   :  { %v2491_v42 = vmul.f32 %v3492_v2, %v2460_v9 }
0x162a   :  { %2495 = vrot.lane.b32.xlu0 %v2491_v42, %s3759_s1 }
0x1686   :  { %v2498_v5 = vpop.permute.xlu1 %2497 }
0x1687   :  { %v4777_v51 = vadd.f32 %v2498_v5, %v2490_v32 }
0x1689   :  { %3493 = vtanh.f32 %v4777_v51 }
0x168f   :  { %v3494_v63 = vpop.eup %3493 }
0x1690   :  { %2515 = vrot.lane.b32.xlu0 %v3494_v63, %s3759_s1 }
0x169c   :  { %v2496_v18 = vpop.permute.xlu0 %2495 }
0x169d   :  { %v4782_v25 = vadd.f32 %v2496_v18, %v2489_v4 }
0x169f   :  { %3495 = vtanh.f32 %v4782_v25 }
0x16a5   :  { %v3496_v30 = vpop.eup %3495 }
0x16a6   :  { %2513 = vrot.lane.b32.xlu2 %v3496_v30, %s3759_s1 }
0x1700   :  { %v2514_v28 = vpop.permute.xlu2 %2513 }
0x1701   :  { %v2519_v53 = vmul.f32 %v2514_v28, %v2507_v36 }
0x1702   :  { %v2516_v52 = vpop.permute.xlu0 %2515 }
0x1703   :  { %2527 = vst [vmem:[#allocation1] ss:$9 sm:$0xff] %v2519_v53  ;;  %v2520_v48 = vmul.f32 %v2516_v52, %v2508_v7 }
0x1705   :  { %2529 = vst [vmem:[#allocation1 + $0x1] ss:$9 sm:$0xff] %v2520_v48  ;;  %v2666_v48 = vld [vmem:[#allocation5 + $0x24] ss:$8 sm:$0x3] }
0x170c   :  { %v2530_v15 = vld [vmem:[#allocation1] sm:$0xff] }
0x170d   :  { %3248 = vmatmul.msk.f32.vlgmr.msrb.gmra.mxu1 %vm273_vm0, %v2530_v15  ;;  %3249 = vmatmul.msk.f32.vlgmr.msrb.gmra.mxu2 %vm273_vm0, %v2530_v15 }
0x178a   :  { %v2550_v61 = vpop.f32.mrf.mxu1 }
0x1790   :  { %v2570_v22 = vpop.f32.mrf.mxu2 }
0x1791   :  { %v2575_v41 = vrot.slane %v2570_v22, 7 }
0x1793   :  { %v2577_v8 = vsel %vm992_vm8, %v2550_v61, %v2575_v41  ;;  %v2576_v11 = vsel %vm990_vm7, %v2550_v61, %v2575_v41 }
0x1794   :  { %v2578_v39 = vrot.slane %v2577_v8, 1  ;;  %v2581_v27 = vadd.f32 %v2576_v11, %v2522_v37  ;;  %v2668_v8 = vld [vmem:[#allocation5 + $0x64] ss:$8 sm:$0x3] }
0x1796   :  { %2623 = vrot.lane.b32.xlu1 %v2581_v27, %s3759_s1  ;;  %v2582_v10 = vadd.f32 %v2578_v39, %v2524_v12  ;;  %v3250_v33 = vmul.f32 -1.442695, %v2581_v27 }
0x1798   :  { %2625 = vrot.lane.b32.xlu2 %v2582_v10, %s3759_s1  ;;  %v3251_v17 = vmul.f32 -1.442695, %v2582_v10 }
0x179a   :  { %3497 = vpow2.f32 %v3251_v17 }
0x17a0   :  { %v3498_v6 = vpop.eup %3497 }
0x17a1   :  { %v2590_v16 = vadd.f32 1.0, %v3498_v6 }
0x17a3   :  { %3499 = vrcp.f32 %v2590_v16  ;;  %v2617_v44 = vand.u32 2147483648, %v2590_v16  ;;  %vm2611_vm5 = vweird.f32 %v2590_v16  ;;  %v2615_v46 = vand.u32 2147483647, %v2590_v16 }
0x17a4   :  { %3501 = vpow2.f32 %v3250_v33 }
0x17a5   :  { %v2618_v13 = vor.u32 1.1754944e-38, %v2617_v44  ;;  %vm2616_vm9 = vcmp.eq.f32.partialorder %v2615_v46, 8.507059e+37 }
0x17a9   :  { %v3500_v45 = vpop.eup %3499 }
0x17aa   :  { %v2607_v26 = vmul.f32 %v3500_v45, %v2590_v16  ;;  %v3502_v24 = vpop.eup %3501  ;;  %vm2612_vm4 = vweird.f32 %v3500_v45 }
0x17ab   :  { %v2589_v31 = vadd.f32 1.0, %v3502_v24  ;;  %vm2613_vm6 = vmor %vm2611_vm5, %vm2612_vm4 }
0x17ac   :  { %v2608_v14 = vsub.f32 1.0, %v2607_v26 }
0x17ad   :  { %3503 = vrcp.f32 %v2589_v31  ;;  %v2602_v62 = vand.u32 2147483648, %v2589_v31  ;;  %vm2596_vm11 = vweird.f32 %v2589_v31  ;;  %v2600_v0 = vand.u32 2147483647, %v2589_v31 }
0x17ae   :  { %v2609_v34 = vmul.f32 %v3500_v45, %v2608_v14 }
0x17af   :  { %v2603_v60 = vor.u32 1.1754944e-38, %v2602_v62  ;;  %vm2601_vm13 = vcmp.eq.f32.partialorder %v2600_v0, 8.507059e+37 }
0x17b0   :  { %v2610_v43 = vadd.f32 %v3500_v45, %v2609_v34 }
0x17b2   :  { %v2614_v47 = vsel %vm2613_vm6, %v3500_v45, %v2610_v43 }
0x17b3   :  { %v3504_v49 = vpop.eup %3503  ;;  %v2619_v50 = vsel %vm2616_vm9, %v2618_v13, %v2614_v47 }
0x17b4   :  { %v2592_v55 = vmul.f32 %v3504_v49, %v2589_v31  ;;  %vm2597_vm10 = vweird.f32 %v3504_v49  ;;  %v2634_v29 = vmul.f32 %v2619_v50, %v4777_v51  ;;  %v2652_v30 = vrot.slane %v2619_v50, 1 }
0x17b5   :  { %vm2598_vm12 = vmor %vm2596_vm11, %vm2597_vm10 }
0x17b6   :  { %v2593_v56 = vsub.f32 1.0, %v2592_v55 }
0x17b8   :  { %v2594_v57 = vmul.f32 %v3504_v49, %v2593_v56 }
0x17ba   :  { %v2595_v59 = vadd.f32 %v3504_v49, %v2594_v57 }
0x17bc   :  { %v2599_v20 = vsel %vm2598_vm12, %v3504_v49, %v2595_v59 }
0x17bd   :  { %v2604_v3 = vsel %vm2601_vm13, %v2603_v60, %v2599_v20 }
0x17be   :  { %v2633_v42 = vmul.f32 %v2604_v3, %v4782_v25  ;;  %v2651_v4 = vrot.slane %v2604_v3, 1 }
0x17f2   :  { %v2626_v38 = vpop.permute.xlu2 %2625 }
0x17f3   :  { %v2628_v40 = vrot.slane %v2626_v38, 1 }
0x17f5   :  { %3505 = vtanh.f32 %v2628_v40 }
0x17fb   :  { %v3506_v35 = vpop.eup %3505 }
0x17fc   :  { %v2636_v54 = vmul.f32 %v3506_v35, %v2619_v50  ;;  %v2954_v35 = vld [vmem:[#allocation5 + $0x35] ss:$8 sm:$0x3] }
0x17fe   :  { %2641 = vrot.lane.b32.xlu1 %v2636_v54, %s3759_s1 }
0x1808   :  { %v2624_v19 = vpop.permute.xlu1 %2623 }
0x1809   :  { %v2627_v58 = vrot.slane %v2624_v19, 1 }
0x180b   :  { %3507 = vtanh.f32 %v2627_v58 }
0x1811   :  { %v3508_v1 = vpop.eup %3507 }
0x1812   :  { %v2635_v21 = vmul.f32 %v3508_v1, %v2604_v3  ;;  %v3260_v1 = vmul.f32 -1.442695, %v2954_v35 }
0x1814   :  { %2639 = vrot.lane.b32.xlu0 %v2635_v21, %s3759_s1 }
0x1870   :  { %v2642_v23 = vpop.permute.xlu1 %2641 }
0x1871   :  { %v4795_v2 = vadd.f32 %v2642_v23, %v2634_v29 }
0x1873   :  { %3509 = vtanh.f32 %v4795_v2 }
0x1879   :  { %v3510_v9 = vpop.eup %3509 }
0x187a   :  { %2659 = vrot.lane.b32.xlu0 %v3510_v9, %s3759_s1 }
0x1886   :  { %v2640_v32 = vpop.permute.xlu0 %2639 }
0x1887   :  { %v4800_v5 = vadd.f32 %v2640_v32, %v2633_v42 }
0x1889   :  { %3511 = vtanh.f32 %v4800_v5 }
0x188f   :  { %v3512_v63 = vpop.eup %3511 }
0x1890   :  { %2657 = vrot.lane.b32.xlu2 %v3512_v63, %s3759_s1 }
0x18ea   :  { %v2658_v51 = vpop.permute.xlu2 %2657 }
0x18eb   :  { %v2663_v18 = vmul.f32 %v2658_v51, %v2651_v4 }
0x18ec   :  { %v2660_v36 = vpop.permute.xlu0 %2659 }
0x18ed   :  { %2671 = vst [vmem:[#allocation1] ss:$9 sm:$0xff] %v2663_v18  ;;  %v2664_v28 = vmul.f32 %v2660_v36, %v2652_v30 }
0x18ef   :  { %2673 = vst [vmem:[#allocation1 + $0x1] ss:$9 sm:$0xff] %v2664_v28 }
0x18f6   :  { %v2674_v53 = vld [vmem:[#allocation1] sm:$0xff] }
0x18f7   :  { %3252 = vmatmul.msk.f32.vlgmr.msrb.gmra.mxu3 %vm273_vm0, %v2674_v53  ;;  %3253 = vmatmul.msk.f32.vlgmr.msrb.gmra.mxu0 %vm273_vm0, %v2674_v53 }
0x1974   :  { %v2714_v25 = vpop.f32.mrf.mxu0 }
0x1975   :  { %v2719_v7 = vrot.slane %v2714_v25, 7  ;;  %v2956_v25 = vld [vmem:[#allocation5 + $0x75] ss:$8 sm:$0x3] }
0x197a   :  { %v2694_v52 = vpop.f32.mrf.mxu3 }
0x197b   :  { %v2720_v15 = vsel %vm990_vm7, %v2694_v52, %v2719_v7  ;;  %v2721_v22 = vsel %vm992_vm8, %v2694_v52, %v2719_v7 }
0x197c   :  { %v2722_v41 = vrot.slane %v2721_v22, 1  ;;  %v2725_v61 = vadd.f32 %v2720_v15, %v2666_v48 }
0x197e   :  { %2767 = vrot.lane.b32.xlu1 %v2725_v61, %s3759_s1  ;;  %v2726_v37 = vadd.f32 %v2722_v41, %v2668_v8  ;;  %v3254_v12 = vmul.f32 -1.442695, %v2725_v61 }
0x1980   :  { %2769 = vrot.lane.b32.xlu2 %v2726_v37, %s3759_s1  ;;  %v3255_v11 = vmul.f32 -1.442695, %v2726_v37 }
0x1982   :  { %3513 = vpow2.f32 %v3255_v11 }
0x1988   :  { %v3514_v39 = vpop.eup %3513 }
0x1989   :  { %v2734_v27 = vadd.f32 1.0, %v3514_v39 }
0x198b   :  { %3515 = vrcp.f32 %v2734_v27  ;;  %v2761_v31 = vand.u32 2147483648, %v2734_v27  ;;  %vm2755_vm15 = vweird.f32 %v2734_v27  ;;  %v2759_v34 = vand.u32 2147483647, %v2734_v27 }
0x198c   :  { %3517 = vpow2.f32 %v3254_v12 }
0x198d   :  { %v2762_v40 = vor.u32 1.1754944e-38, %v2761_v31  ;;  %vm2760_vm2 = vcmp.eq.f32.partialorder %v2759_v34, 8.507059e+37 }
0x1991   :  { %v3516_v10 = vpop.eup %3515 }
0x1992   :  { %v2751_v17 = vmul.f32 %v3516_v10, %v2734_v27  ;;  %v3518_v16 = vpop.eup %3517  ;;  %vm2756_vm14 = vweird.f32 %v3516_v10 }
0x1993   :  { %v2733_v33 = vadd.f32 1.0, %v3518_v16  ;;  %vm2757_vm1 = vmor %vm2755_vm15, %vm2756_vm14 }
0x1994   :  { %v2752_v6 = vsub.f32 1.0, %v2751_v17 }
0x1995   :  { %3519 = vrcp.f32 %v2733_v33  ;;  %v2746_v57 = vand.u32 2147483648, %v2733_v33  ;;  %vm2740_vm4 = vweird.f32 %v2733_v33  ;;  %v2744_v19 = vand.u32 2147483647, %v2733_v33 }
0x1996   :  { %v2753_v45 = vmul.f32 %v3516_v10, %v2752_v6 }
0x1997   :  { %v2747_v59 = vor.u32 1.1754944e-38, %v2746_v57  ;;  %vm2745_vm6 = vcmp.eq.f32.partialorder %v2744_v19, 8.507059e+37 }
0x1998   :  { %v2754_v24 = vadd.f32 %v3516_v10, %v2753_v45 }
0x199a   :  { %v2758_v38 = vsel %vm2757_vm1, %v3516_v10, %v2754_v24  ;;  %v3261_v10 = vmul.f32 -1.442695, %v2956_v25 }
0x199b   :  { %v3520_v43 = vpop.eup %3519  ;;  %v4810_v46 = vsel %vm2760_vm2, %v2762_v40, %v2758_v38 }
0x199c   :  { %v2736_v13 = vmul.f32 %v3520_v43, %v2733_v33  ;;  %vm2741_vm3 = vweird.f32 %v3520_v43  ;;  %v2778_v60 = vmul.f32 %v4810_v46, %v4795_v2  ;;  %v2796_v11 = vrot.slane %v4810_v46, 1 }
0x199d   :  { %vm2742_vm5 = vmor %vm2740_vm4, %vm2741_vm3 }
0x199e   :  { %v2737_v49 = vsub.f32 1.0, %v2736_v13 }
0x19a0   :  { %v2738_v50 = vmul.f32 %v3520_v43, %v2737_v49  ;;  %v2812_v49 = vld [vmem:[#allocation5 + $0x65] ss:$8 sm:$0x3] }
0x19a2   :  { %v2739_v56 = vadd.f32 %v3520_v43, %v2738_v50 }
0x19a4   :  { %v2743_v58 = vsel %vm2742_vm5, %v3520_v43, %v2739_v56  ;;  %v2810_v43 = vld [vmem:[#allocation5 + $0x25] ss:$8 sm:$0x3] }
0x19a5   :  { %v2748_v0 = vsel %vm2745_vm6, %v2747_v59, %v2743_v58 }
0x19a6   :  { %v2777_v42 = vmul.f32 %v2748_v0, %v4800_v5  ;;  %v2795_v61 = vrot.slane %v2748_v0, 1 }
0x19da   :  { %v2770_v26 = vpop.permute.xlu2 %2769 }
0x19db   :  { %v2772_v14 = vrot.slane %v2770_v26, 1 }
0x19dd   :  { %3521 = vtanh.f32 %v2772_v14 }
0x19e3   :  { %v3522_v44 = vpop.eup %3521 }
0x19e4   :  { %v2780_v47 = vmul.f32 %v3522_v44, %v4810_v46 }
0x19e6   :  { %2785 = vrot.lane.b32.xlu1 %v2780_v47, %s3759_s1 }
0x19ee   :  { %2997 = vrot.lane.b32.xlu1 %v2954_v35, %s3759_s1 }
0x19f0   :  { %v2768_v54 = vpop.permute.xlu1 %2767 }
0x19f1   :  { %v2771_v55 = vrot.slane %v2768_v54, 1 }
0x19f3   :  { %3523 = vtanh.f32 %v2771_v55 }
0x19f9   :  { %v3524_v62 = vpop.eup %3523 }
0x19fa   :  { %v2779_v20 = vmul.f32 %v3524_v62, %v2748_v0 }
0x19fc   :  { %2783 = vrot.lane.b32.xlu0 %v2779_v20, %s3759_s1 }
0x1a58   :  { %v2786_v3 = vpop.permute.xlu1 %2785 }
0x1a59   :  { %v4818_v21 = vadd.f32 %v2786_v3, %v2778_v60 }
0x1a5b   :  { %3525 = vtanh.f32 %v4818_v21 }
0x1a5c   :  { %3527 = vpow2.f32 %v3260_v1 }
0x1a60   :  { %v2998_v51 = vpop.permute.xlu1 %2997 }
0x1a61   :  { %v3526_v29 = vpop.eup %3525  ;;  %v3001_v36 = vrot.slane %v2998_v51, 1 }
0x1a62   :  { %v3528_v23 = vpop.eup %3527  ;;  %2803 = vrot.lane.b32.xlu0 %v3526_v29, %s3759_s1 }
0x1a63   :  { %v2963_v9 = vadd.f32 1.0, %v3528_v23 }
0x1a65   :  { %3529 = vrcp.f32 %v2963_v9  ;;  %v2976_v7 = vand.u32 2147483648, %v2963_v9  ;;  %vm2970_vm10 = vweird.f32 %v2963_v9  ;;  %v2974_v5 = vand.u32 2147483647, %v2963_v9 }
0x1a67   :  { %v2977_v15 = vor.u32 1.1754944e-38, %v2976_v7  ;;  %vm2975_vm12 = vcmp.eq.f32.partialorder %v2974_v5, 8.507059e+37 }
0x1a6b   :  { %v3530_v63 = vpop.eup %3529 }
0x1a6c   :  { %v2966_v2 = vmul.f32 %v3530_v63, %v2963_v9  ;;  %vm2971_vm9 = vweird.f32 %v3530_v63 }
0x1a6d   :  { %vm2972_vm11 = vmor %vm2970_vm10, %vm2971_vm9  ;;  %vm3153_vm10 = vcmask 261120  }
0x1a6e   :  { %v2784_v32 = vpop.permute.xlu0 %2783  ;;  %v2967_v18 = vsub.f32 1.0, %v2966_v2 }
0x1a6f   :  { %v4823_v4 = vadd.f32 %v2784_v32, %v2777_v42 }
0x1a70   :  { %v2968_v28 = vmul.f32 %v3530_v63, %v2967_v18 }
0x1a71   :  { %3531 = vtanh.f32 %v4823_v4 }
0x1a72   :  { %3533 = vtanh.f32 %v3001_v36  ;;  %v2969_v53 = vadd.f32 %v3530_v63, %v2968_v28 }
0x1a73   :  { %3535 = vpow2.f32 %v3261_v10 }
0x1a74   :  { %v2973_v52 = vsel %vm2972_vm11, %v3530_v63, %v2969_v53 }
0x1a75   :  { %v4828_v22 = vsel %vm2975_vm12, %v2977_v15, %v2973_v52 }
0x1a76   :  { %v3007_v19 = vmul.f32 0.0, %v4828_v22 }
0x1a77   :  { %v3532_v30 = vpop.eup %3531 }
0x1a78   :  { %2801 = vrot.lane.b32.xlu2 %v3532_v30, %s3759_s1  ;;  %v3534_v48 = vpop.eup %3533 }
0x1a79   :  { %v3009_v41 = vmul.f32 %v3534_v48, %v4828_v22  ;;  %v3536_v17 = vpop.eup %3535 }
0x1a7a   :  { %v2964_v6 = vadd.f32 1.0, %v3536_v17 }
0x1a7c   :  { %3537 = vrcp.f32 %v2964_v6  ;;  %v2991_v35 = vand.u32 2147483648, %v2964_v6  ;;  %vm2985_vm14 = vweird.f32 %v2964_v6  ;;  %v2989_v54 = vand.u32 2147483647, %v2964_v6 }
0x1a7e   :  { %v2992_v58 = vor.u32 1.1754944e-38, %v2991_v35  ;;  %v3049_v35 = vld [vmem:[#allocation14 + $0x48] sm:$0xff] }
0x1a80   :  { %2999 = vrot.lane.b32.xlu2 %v2956_v25, %s3759_s1 }
0x1a82   :  { %v3538_v16 = vpop.eup %3537 }
0x1a83   :  { %v2981_v33 = vmul.f32 %v3538_v16, %v2964_v6  ;;  %vm2986_vm13 = vweird.f32 %v3538_v16 }
0x1a84   :  { %vm2987_vm15 = vmor %vm2985_vm14, %vm2986_vm13 }
0x1a85   :  { %v2982_v26 = vsub.f32 1.0, %v2981_v33 }
0x1a87   :  { %v2983_v31 = vmul.f32 %v3538_v16, %v2982_v26 }
0x1a88   :  { %3013 = vrot.lane.b32.xlu2 %v3009_v41, %s3759_s1 }
0x1a89   :  { %v2984_v13 = vadd.f32 %v3538_v16, %v2983_v31 }
0x1a8b   :  { %v2988_v56 = vsel %vm2987_vm15, %v3538_v16, %v2984_v13  ;;  %v3052_v13 = vld [vmem:[#allocation14 + $0x60] sm:$0xff] }
0x1ad2   :  { %v2802_v8 = vpop.permute.xlu2 %2801 }
0x1ad3   :  { %v2807_v37 = vmul.f32 %v2802_v8, %v2795_v61 }
0x1ad4   :  { %v2804_v39 = vpop.permute.xlu0 %2803 }
0x1ad5   :  { %2815 = vst [vmem:[#allocation1] ss:$9 sm:$0xff] %v2807_v37  ;;  %v2808_v27 = vmul.f32 %v2804_v39, %v2796_v11 }
0x1ad7   :  { %2817 = vst [vmem:[#allocation1 + $0x1] ss:$9 sm:$0xff] %v2808_v27 }
0x1ada   :  { %v3000_v45 = vpop.permute.xlu2 %2999 }
0x1adb   :  { %v3002_v14 = vrot.slane %v3000_v45, 1 }
0x1add   :  { %3539 = vtanh.f32 %v3002_v14  ;;  %v3025_v14 = vrot.slane %v4828_v22, 1  ;;  %v3050_v22 = vld [vmem:[#allocation14 + $0x50] sm:$0xff] }
0x1ade   :  { %v2818_v12 = vld [vmem:[#allocation1] sm:$0xff] }
0x1adf   :  { %3256 = vmatmul.msk.f32.vlgmr.msra.gmra.mxu1 %vm273_vm0, %v2818_v12  ;;  %3257 = vmatmul.msk.f32.vlgmr.msra.gmra.mxu2 %vm273_vm0, %v2818_v12 }
0x1ae2   :  { %v3014_v55 = vpop.permute.xlu2 %3013 }
0x1ae3   :  { %v3540_v57 = vpop.eup %3539  ;;  %v3019_v59 = vadd.f32 %v3014_v55, %v3007_v19  ;;  %v3046_v55 = vld [vmem:[#allocation14 + $0x38] sm:$0xff] }
0x1ae4   :  { %3100 = vmatpush.msra.mxu0 %v3046_v55 }
0x1ae5   :  { %3541 = vtanh.f32 %v3019_v59 }
0x1aeb   :  { %v3542_v20 = vpop.eup %3541 }
0x1b5c   :  { %v2838_v38 = vpop.f32.mrf.mxu1 }
0x1b62   :  { %v2858_v24 = vpop.f32.mrf.mxu2 }
0x1b63   :  { %v2863_v34 = vrot.slane %v2858_v24, 7 }
0x1b65   :  { %v2865_v40 = vsel %vm992_vm8, %v2838_v38, %v2863_v34  ;;  %v2864_v44 = vsel %vm990_vm7, %v2838_v38, %v2863_v34  ;;  %vm2990_vm7 = vcmp.eq.f32.partialorder %v2989_v54, 8.507059e+37  ;;  %v3055_v38 = vld [vmem:[#allocation14 + $0x78] sm:$0xff] }
0x1b66   :  { %v2866_v46 = vrot.slane %v2865_v40, 1  ;;  %v2869_v47 = vadd.f32 %v2864_v44, %v2810_v43  ;;  %v4840_v62 = vsel %vm2990_vm7, %v2992_v58, %v2988_v56  ;;  %v3054_v40 = vld [vmem:[#allocation14 + $0x70] sm:$0xff]  ;;  %3072 = vmatpush.msra.mxu3 %v3055_v38  ;;  %v3053_v43 = vld [vmem:[#allocation14 + $0x68] sm:$0xff] }
0x1b67   :  { %v3010_v0 = vmul.f32 %v3540_v57, %v4840_v62  ;;  %v3008_v37 = vmul.f32 0.0, %v4840_v62  ;;  %v3045_v56 = vld [vmem:[#allocation14 + $0x30] sm:$0xff]  ;;  %v3026_v58 = vrot.slane %v4840_v62, 1 }
0x1b68   :  { %2911 = vrot.lane.b32.xlu0 %v2869_v47, %s3759_s1  ;;  %v2870_v50 = vadd.f32 %v2866_v46, %v2812_v49  ;;  %v3258_v60 = vmul.f32 -1.442695, %v2869_v47  ;;  %3073 = vmatpush.msra.mxu3 %v3054_v40  ;;  %v3051_v49 = vld [vmem:[#allocation14 + $0x58] sm:$0xff] }
0x1b69   :  { %3101 = vmatpush.msra.mxu0 %v3045_v56 }
0x1b6a   :  { %2913 = vrot.lane.b32.xlu1 %v2870_v50, %s3759_s1  ;;  %v3259_v1 = vmul.f32 -1.442695, %v2870_v50  ;;  %3543 = vpow2.f32 %v3258_v60  ;;  %3074 = vmatpush.msra.mxu3 %v3053_v43  ;;  %v3048_v50 = vld [vmem:[#allocation14 + $0x40] sm:$0xff] }
0x1b6c   :  { %3545 = vpow2.f32 %v3259_v1  ;;  %3075 = vmatpush.msra.mxu3 %v3052_v13  ;;  %v3044_v1 = vld [vmem:[#allocation14 + $0x28] sm:$0xff] }
0x1b6d   :  { %3102 = vmatpush.msra.mxu0 %v3044_v1 }
0x1b6e   :  { %3076 = vmatpush.msra.mxu3 %v3051_v49 }
0x1b70   :  { %3015 = vrot.lane.b32.xlu0 %v3010_v0, %s3759_s1  ;;  %v3544_v3 = vpop.eup %3543  ;;  %3077 = vmatpush.msra.mxu3 %v3050_v22 }
0x1b71   :  { %v2877_v23 = vadd.f32 1.0, %v3544_v3  ;;  %v3043_v3 = vld [vmem:[#allocation14 + $0x20] sm:$0xff] }
0x1b72   :  { %v3546_v29 = vpop.eup %3545  ;;  %3078 = vmatpush.msra.mxu3 %v3049_v35  ;;  %3103 = vmatpush.msra.mxu0 %v3043_v3 }
0x1b73   :  { %v2878_v9 = vadd.f32 1.0, %v3546_v29  ;;  %3547 = vrcp.f32 %v2877_v23  ;;  %v2890_v52 = vand.u32 2147483648, %v2877_v23  ;;  %vm2884_vm1 = vweird.f32 %v2877_v23  ;;  %v3042_v29 = vld [vmem:[#allocation14 + $0x18] sm:$0xff] }
0x1b74   :  { %v2888_v48 = vand.u32 2147483647, %v2877_v23  ;;  %3079 = vmatpush.msra.mxu3 %v3048_v50  ;;  %3104 = vmatpush.msra.mxu0 %v3042_v29 }
0x1b75   :  { %3549 = vrcp.f32 %v2878_v9  ;;  %v2905_v41 = vand.u32 2147483648, %v2878_v9  ;;  %vm2899_vm4 = vweird.f32 %v2878_v9  ;;  %v2903_v8 = vand.u32 2147483647, %v2878_v9 }
0x1b76   :  { %v2891_v11 = vor.u32 1.1754944e-38, %v2890_v52  ;;  %vm2889_vm6 = vcmp.eq.f32.partialorder %v2888_v48, 8.507059e+37  ;;  %v3151_v52 = vld [vmem:[%s4915_s8 + $0x58] sm:$0xff]  ;;  %v3150_v48 = vld [vmem:[%s4915_s8 + $0x50] sm:$0xff] }
0x1b77   :  { %v2906_v6 = vor.u32 1.1754944e-38, %v2905_v41  ;;  %vm2904_vm9 = vcmp.eq.f32.partialorder %v2903_v8, 8.507059e+37  ;;  %3169 = vmatpush.msrb.mxu2 %v3151_v52  ;;  %v3112_v8 = vld [vmem:[#allocation12 + $0x1] ss:$0 sm:$0xff] }
0x1b78   :  { %3031 = vrot.lane.b32.xlu0 %v3542_v20, %s3759_s1 }
0x1b79   :  { %v3548_v42 = vpop.eup %3547  ;;  %3170 = vmatpush.msrb.mxu2 %v3150_v48 }
0x1b7a   :  { %v2880_v63 = vmul.f32 %v3548_v42, %v2877_v23  ;;  %vm2885_vm8 = vweird.f32 %v3548_v42  ;;  %v3040_v23 = vld [vmem:[#allocation14 + $0x8] sm:$0xff] }
0x1b7b   :  { %v3550_v32 = vpop.eup %3549  ;;  %vm2886_vm3 = vmor %vm2884_vm1, %vm2885_vm8 }
0x1b7c   :  { %v2895_v2 = vmul.f32 %v3550_v32, %v2878_v9  ;;  %v2881_v51 = vsub.f32 1.0, %v2880_v63  ;;  %vm2900_vm2 = vweird.f32 %v3550_v32  ;;  %v3039_v9 = vld [vmem:[#allocation14] sm:$0xff] }
0x1b7d   :  { %vm2901_vm5 = vmor %vm2899_vm4, %vm2900_vm2 }
0x1b7e   :  { %v2896_v18 = vsub.f32 1.0, %v2895_v2  ;;  %v2882_v30 = vmul.f32 %v3548_v42, %v2881_v51 }
0x1b80   :  { %v2897_v28 = vmul.f32 %v3550_v32, %v2896_v18  ;;  %v2883_v7 = vadd.f32 %v3548_v42, %v2882_v30  ;;  %v3122_v30 = vld [vmem:[%s4915_s8 + $0x38] sm:$0xff] }
0x1b81   :  { %3135 = vmatpush.msrb.mxu1 %v3122_v30 }
0x1b82   :  { %v2898_v15 = vadd.f32 %v3550_v32, %v2897_v28  ;;  %v2887_v61 = vsel %vm2886_vm3, %v3548_v42, %v2883_v7  ;;  %v3120_v28 = vld [vmem:[%s4915_s8 + $0x28] sm:$0xff]  ;;  %v3117_v7 = vld [vmem:[%s4915_s8 + $0x10] sm:$0xff] }
0x1b83   :  { %v4846_v17 = vsel %vm2889_vm6, %v2891_v11, %v2887_v61 }
0x1b84   :  { %v2902_v27 = vsel %vm2901_vm5, %v3550_v32, %v2898_v15  ;;  %v2939_v62 = vrot.slane %v4846_v17, 1  ;;  %v3115_v15 = vld [vmem:[%s4915_s8] sm:$0xff] }
0x1b85   :  { %v4849_v45 = vsel %vm2904_vm9, %v2906_v6, %v2902_v27  ;;  %v3149_v27 = vld [vmem:[%s4915_s8 + $0x48] sm:$0xff] }
0x1b86   :  { %v2922_v44 = vmul.f32 %v4849_v45, %v4818_v21  ;;  %v2921_v21 = vmul.f32 %v4846_v17, %v4823_v4  ;;  %v3041_v4 = vld [vmem:[#allocation14 + $0x10] sm:$0xff]  ;;  %v2940_v63 = vrot.slane %v4849_v45, 1  ;;  %3171 = vmatpush.msrb.mxu2 %v3149_v27 }
0x1b87   :  { %3105 = vmatpush.msra.mxu0 %v3041_v4 }
0x1b89   :  { %3106 = vmatpush.msra.mxu0 %v3040_v23 }
0x1b8b   :  { %3107 = vmatpush.msra.mxu0 %v3039_v9 }
0x1bda   :  { %v2912_v36 = vpop.permute.xlu0 %2911 }
0x1bdb   :  { %v2915_v53 = vrot.slane %v2912_v36, 1  ;;  %v3121_v36 = vld [vmem:[%s4915_s8 + $0x30] sm:$0xff] }
0x1bdc   :  { %v2914_v25 = vpop.permute.xlu1 %2913  ;;  %3136 = vmatpush.msrb.mxu1 %v3121_v36 }
0x1bdd   :  { %3551 = vtanh.f32 %v2915_v53  ;;  %v2916_v5 = vrot.slane %v2914_v25, 1  ;;  %v3119_v53 = vld [vmem:[%s4915_s8 + $0x20] sm:$0xff]  ;;  %v3118_v25 = vld [vmem:[%s4915_s8 + $0x18] sm:$0xff] }
0x1bde   :  { %3137 = vmatpush.msrb.mxu1 %v3120_v28 }
0x1bdf   :  { %3553 = vtanh.f32 %v2916_v5  ;;  %v3116_v5 = vld [vmem:[%s4915_s8 + $0x8] sm:$0xff] }
0x1be0   :  { %3138 = vmatpush.msrb.mxu1 %v3119_v53 }
0x1be2   :  { %v3016_v39 = vpop.permute.xlu0 %3015  ;;  %3139 = vmatpush.msrb.mxu1 %v3118_v25 }
0x1be3   :  { %v3552_v12 = vpop.eup %3551  ;;  %v3020_v10 = vadd.f32 %v3016_v39, %v3008_v37 }
0x1be4   :  { %v2923_v16 = vmul.f32 %v3552_v12, %v4846_v17  ;;  %3140 = vmatpush.msrb.mxu1 %v3117_v7  ;;  %v3148_v12 = vld [vmem:[%s4915_s8 + $0x40] sm:$0xff] }
0x1be5   :  { %v3554_v33 = vpop.eup %3553  ;;  %3555 = vtanh.f32 %v3020_v10  ;;  %3172 = vmatpush.msrb.mxu2 %v3148_v12  ;;  %v3123_v10 = vld [vmem:[#allocation12 + $0x2] ss:$0 sm:$0xff] }
0x1be6   :  { %2927 = vrot.lane.b32.xlu1 %v2923_v16, %s3759_s1  ;;  %v2924_v26 = vmul.f32 %v3554_v33, %v4849_v45  ;;  %3141 = vmatpush.msrb.mxu1 %v3116_v5  ;;  %v3152_v33 = vld [vmem:[#allocation12 + $0x3] ss:$0 sm:$0xff] }
0x1be8   :  { %2929 = vrot.lane.b32.xlu2 %v2924_v26, %s3759_s1  ;;  %3142 = vmatpush.msrb.mxu1 %v3115_v15 }
0x1bea   :  { %v3032_v24 = vpop.permute.xlu0 %3031 }
0x1beb   :  { %v3037_v31 = vmul.f32 %v3032_v24, %v3025_v14  ;;  %v3556_v34 = vpop.eup %3555 }
0x1bed   :  { %3058 = vst [vmem:[#allocation1] ss:$9 sm:$0xff] %v3037_v31 }
0x1bee   :  { %3033 = vrot.lane.b32.xlu1 %v3556_v34, %s3759_s1 }
0x1c42   :  { %v2930_v46 = vpop.permute.xlu2 %2929 }
0x1c43   :  { %v2934_v47 = vadd.f32 %v2930_v46, %v2922_v44 }
0x1c45   :  { %3557 = vtanh.f32 %v2934_v47 }
0x1c4b   :  { %v3558_v54 = vpop.eup %3557 }
0x1c4c   :  { %2947 = vrot.lane.b32.xlu0 %v3558_v54, %s3759_s1 }
0x1c58   :  { %v2928_v57 = vpop.permute.xlu1 %2927 }
0x1c59   :  { %v2933_v19 = vadd.f32 %v2928_v57, %v2921_v21 }
0x1c5b   :  { %3559 = vtanh.f32 %v2933_v19 }
0x1c60   :  { %v3034_v59 = vpop.permute.xlu1 %3033 }
0x1c61   :  { %v3560_v0 = vpop.eup %3559  ;;  %v3038_v20 = vmul.f32 %v3034_v59, %v3026_v58 }
0x1c62   :  { %2945 = vrot.lane.b32.xlu2 %v3560_v0, %s3759_s1 }
0x1c63   :  { %3060 = vst [vmem:[#allocation1 + $0x1] ss:$9 sm:$0xff] %v3038_v20 }
0x1c6a   :  { %v3061_v60 = vld [vmem:[#allocation1] sm:$0xff] }
0x1c6b   :  { %3262 = vmatmul.msk.f32.vlgmr.msra.gmra.mxu3 %vm273_vm0, %v3061_v60 }
0x1cbc   :  { %v2946_v42 = vpop.permute.xlu2 %2945 }
0x1cbd   :  { %v2951_v32 = vmul.f32 %v2946_v42, %v2939_v62 }
0x1cbe   :  { %v2948_v2 = vpop.permute.xlu0 %2947 }
0x1cbf   :  { %3086 = vst [vmem:[#allocation1] ss:$9 sm:$0xff] %v2951_v32  ;;  %v2952_v51 = vmul.f32 %v2948_v2, %v2940_v63 }
0x1cc1   :  { %3088 = vst [vmem:[#allocation1 + $0x1] ss:$9 sm:$0xff] %v2952_v51 }
0x1cc8   :  { %v3089_v18 = vld [vmem:[#allocation1] sm:$0xff] }
0x1cc9   :  { %3263 = vmatmul.msk.f32.vlgmr.msra.gmra.mxu0 %vm273_vm0, %v3089_v18 }
0x1cee   :  { %v3081_v41 = vpop.f32.mrf.mxu3 }
0x1d46   :  { %v3109_v61 = vpop.f32.mrf.mxu0 }
0x1d47   :  { %v3110_v37 = vadd.f32 %v3109_v61, %v3081_v41 }
0x1d49   :  { %v3113_v11 = vadd.f32 %v3112_v8, %v3110_v37 }
0x1d4b   :  { %v3114_v39 = vmax.f32 %v3113_v11, 0.0 }
0x1d4d   :  { %3264 = vmatmul.msk.f32.vlgmr.msrb.gmra.mxu1 %vm273_vm0, %v3114_v39  ;;  %vm3177_vm0 = vcmask 9216  }
0x1dca   :  { %v3144_v17 = vpop.f32.mrf.mxu1 }
0x1dcb   :  { %v3145_v6 = vadd.f32 %v3144_v17, %v3123_v10 }
0x1dcd   :  { %v3147_v16 = vmax.f32 %v3145_v6, 0.0 }
0x1dcf   :  { %3265 = vmatmul.msk.f32.vlgmr.msrb.gmra.mxu2 %vm3153_vm10, %v3147_v16 }
0x1e52   :  { %v3174_v45 = vpop.f32.mrf.mxu2 }
0x1e53   :  { %v3175_v26 = vadd.f32 %v3174_v45, %v3152_v33 }
0x1e55   :  { %3178 = vst.msk [vmem:[#allocation15] sm:$0x3] %vm3177_vm0, %v3175_v26 }
0x1e56   :  { %3189 = dma.vmem_to_hbm [thread:$0]  %s3185_s6, 32, %s3187_s29, [#allocation8]  }
0x1e57   :  { %3743 = dma.done.wait [#allocation8], 32  }
0x1e58   :  { %3744 = vsyncadd [#allocation8], 4294967264 }
0x1e59   :  { %3194 = vsyncpa [#allocation7], 1 }
0x1e5a   :  { %3195 = vsyncpa [#allocation10], 1 }
0x1e5b   :  { %3196 = vsyncpa [#allocation13], 1 }
0x1e5c   :  { %3197 = vsyncpa [#allocation8], 1 }

</bundles_post_ra>
